<compile_context>
chip_gen: v6e
topology: v6e:2x2x1
jax: 0.10.0
libtpu: 0.0.40
codegen_flags: <defaults>
</compile_context>

<pallas_src>
import functools
import math

import jax
import jax.numpy as jnp
from jax.experimental import pallas as pl
from jax.experimental.pallas import tpu as pltpu

# Matmul-operand dtype. Set to jnp.bfloat16 on v6e/v7x for the bf16 MXU rate; weights
# are stored in this dtype in HBM (see _pack_params) so DMA bytes halve too. All
# accumulation and softmax/LayerNorm math stays f32.
COMPUTE_DTYPE = jnp.float32

_N_PER_LAYER = 12  # number of weight arrays passed per encoder layer


def _layernorm(y, g, b, eps=1e-5):
    mean = jnp.mean(y, axis=-1, keepdims=True)
    var = jnp.mean((y - mean) ** 2, axis=-1, keepdims=True)
    return (y - mean) * jax.lax.rsqrt(var + eps) * g + b


# --------------------------- fused whole-model kernel ------------------------

def _fused_kernel(*refs, nhead, num_layers):
    # refs = (x, emb_w, emb_b, <12 weights per layer>*L, fc_w, fc_b, out)
    x_ref = refs[0]
    emb_w_ref, emb_b_ref = refs[1], refs[2]
    layer_refs = refs[3:3 + _N_PER_LAYER * num_layers]
    fc_w_ref = refs[3 + _N_PER_LAYER * num_layers]
    fc_b_ref = refs[4 + _N_PER_LAYER * num_layers]
    o_ref = refs[-1]

    S = x_ref.shape[0]
    D = emb_w_ref.shape[1]
    dk = D // nhead
    scale = 1.0 / math.sqrt(dk)
    cd = COMPUTE_DTYPE

    # Embedding: [S, IN] @ [IN, D]  (f32 accumulation)
    h = jnp.dot(x_ref[...].astype(cd), emb_w_ref[...],
                preferred_element_type=jnp.float32) + emb_b_ref[...]        # [S, D]

    for l in range(num_layers):
        (wqkv_ref, bqkv_ref, wo_ref, bo_ref, g1_ref, be1_ref,
         w1_ref, b1_ref, w2_ref, b2_ref, g2_ref, be2_ref) = layer_refs[
             l * _N_PER_LAYER:(l + 1) * _N_PER_LAYER]

        # ---- self-attention: all heads via batched dot_general, no lane slicing ----
        # Weights are head-major [3*nhead, D, dk]; broadcasting the activation along
        # the (major) batch axis is cheap and keeps dk on the lane axis end-to-end.
        hb = jnp.broadcast_to(h.astype(cd)[None], (3 * nhead, S, D))
        qkv = jnp.einsum("hsd,hde->hse", hb, wqkv_ref[...],
                         preferred_element_type=jnp.float32) + bqkv_ref[...]  # [3H,S,dk]
        q = qkv[:nhead]
        k = qkv[nhead:2 * nhead]
        v = qkv[2 * nhead:]

        s = jnp.einsum("hqd,hkd->hqk", q.astype(cd), k.astype(cd),
                       preferred_element_type=jnp.float32) * scale            # [H,S,S]
        m = jnp.max(s, axis=-1, keepdims=True)
        p = jnp.exp(s - m)
        p = p / jnp.sum(p, axis=-1, keepdims=True)  # exact divide: matches torch softmax

        o = jnp.einsum("hqk,hkd->hqd", p.astype(cd), v.astype(cd),
                       preferred_element_type=jnp.float32)                    # [H,S,dk]
        # concat(heads) @ Wo == sum_h (o_h @ Wo[h*dk:(h+1)*dk, :]); one batched matmul
        # followed by a reduction over the major head axis.
        attn = jnp.einsum("hqd,hde->hqe", o.astype(cd), wo_ref[...],
                          preferred_element_type=jnp.float32).sum(axis=0) + bo_ref[...]
        h = _layernorm(h + attn, g1_ref[...], be1_ref[...])

        # ---- feed-forward: FF1 -> relu -> FF2; hidden [S, F] stays on-chip ----
        f = jnp.dot(h.astype(cd), w1_ref[...],
                    preferred_element_type=jnp.float32) + b1_ref[...]         # [S, F]
        f = jnp.maximum(f, 0.0)
        y = jnp.dot(f.astype(cd), w2_ref[...],
                    preferred_element_type=jnp.float32) + b2_ref[...]         # [S, D]
        h = _layernorm(h + y, g2_ref[...], be2_ref[...])

    # Last token -> final fc. nn.Dropout(0.3) is identity in eval mode.
    # TODO(synk): train-mode dropout (stochastic masking) is not implemented.
    last = h[S - 1:S, :]                                                      # [1, D]
    out = jnp.dot(last.astype(cd), fc_w_ref[...],
                  preferred_element_type=jnp.float32) + fc_b_ref[...]         # [1, OUT]
    o_ref[...] = out.astype(o_ref.dtype)


# ------------------------------- wrapper --------------------------------------

def _pack_params(params, nhead, num_layers):
    """Flatten params into the kernel arg list with head-major weight layouts.

    Matmul weights are converted to COMPUTE_DTYPE here (HBM-side), so a bf16 setting
    genuinely halves weight DMA bytes; biases/LN params stay f32.
    """
    D = params["emb_w"].shape[1]
    dk = D // nhead
    cd = COMPUTE_DTYPE

    def heads_in(w):  # [D, D] (x @ W layout) -> [nhead, D, dk]
        return jnp.transpose(w.reshape(D, nhead, dk), (1, 0, 2))

    ws = [params["emb_w"].astype(cd), params["emb_b"].reshape(1, D)]
    for l in range(num_layers):
        p = params["layers"][l]
        wq = p["in_proj_w"][:, :D]
        wk = p["in_proj_w"][:, D:2 * D]
        wv = p["in_proj_w"][:, 2 * D:]
        wqkv_h = jnp.concatenate(
            [heads_in(wq), heads_in(wk), heads_in(wv)], axis=0)              # [3H, D, dk]
        bqkv_h = p["in_proj_b"].reshape(3 * nhead, 1, dk)                    # [3H, 1, dk]
        wo_h = p["out_proj_w"].reshape(nhead, dk, D)                         # [H, dk, D]
        ws += [
            wqkv_h.astype(cd), bqkv_h,
            wo_h.astype(cd), p["out_proj_b"].reshape(1, D),
            p["ln1_g"].reshape(1, D), p["ln1_b"].reshape(1, D),
            p["ff1_w"].astype(cd), p["ff1_b"].reshape(1, -1),
            p["ff2_w"].astype(cd), p["ff2_b"].reshape(1, D),
            p["ln2_g"].reshape(1, D), p["ln2_b"].reshape(1, D),
        ]
    ws += [params["fc_w"].astype(cd), params["fc_b"].reshape(1, -1)]
    return ws


def _const_spec(arr):
    nd = arr.ndim
    return pl.BlockSpec(arr.shape, lambda b, _nd=nd: (0,) * _nd)


def forward(x, params, nhead, num_layers):
    B, S, IN = x.shape
    D = params["emb_w"].shape[1]
    OUT = params["fc_w"].shape[1]
    assert D % nhead == 0, "d_model must be divisible by nhead"

    weights = _pack_params(params, nhead, num_layers)
    kernel = functools.partial(_fused_kernel, nhead=nhead, num_layers=num_layers)

    in_specs = [pl.BlockSpec((pl.Squeezed(), S, IN), lambda b: (b, 0, 0))]
    in_specs += [_const_spec(w) for w in weights]
    out_spec = pl.BlockSpec((pl.Squeezed(), 1, OUT), lambda b: (b, 0, 0))

    # VMEM limit derived from resident bytes (double-buffered I/O) plus headroom
    # for in-kernel intermediates ([S, 2048] FFN hidden, attention scores, relayouts).
    in_bytes = x.size * x.dtype.itemsize + sum(
        int(w.size) * w.dtype.itemsize for w in weights)
    out_bytes = B * OUT * 4
    vmem_limit = min(2 * (in_bytes + out_bytes) + 16 * 1024 * 1024, 64 * 1024 * 1024)

    out = pl.pallas_call(
        kernel,
        grid=(B,),
        in_specs=in_specs,
        out_specs=out_spec,
        out_shape=jax.ShapeDtypeStruct((B, 1, OUT), jnp.float32),
        compiler_params=pltpu.CompilerParams(
            dimension_semantics=("parallel",),
            vmem_limit_bytes=int(vmem_limit)),
    )(x, *weights)
    return out.reshape(B, OUT)


# ------------------------- pure-JAX reference (for checking) -----------------

def _reference_forward(x, params, nhead, num_layers):
    B, S, _ = x.shape
    D = params["emb_w"].shape[1]
    dk = D // nhead
    h = x @ params["emb_w"] + params["emb_b"]
    for l in range(num_layers):
        p = params["layers"][l]
        qkv = h @ p["in_proj_w"] + p["in_proj_b"]
        q, k, v = qkv[..., :D], qkv[..., D:2 * D], qkv[..., 2 * D:]

        def split(t):  # [B,S,D] -> [B,H,S,dk]
            return t.reshape(B, S, nhead, dk).transpose(0, 2, 1, 3)

        qh, kh, vh = split(q), split(k), split(v)
        s = jnp.einsum("bhqd,bhkd->bhqk", qh, kh) / jnp.sqrt(jnp.float32(dk))
        att = jax.nn.softmax(s, axis=-1)
        o = jnp.einsum("bhqk,bhkd->bhqd", att, vh)
        o = o.transpose(0, 2, 1, 3).reshape(B, S, D)
        attn = o @ p["out_proj_w"] + p["out_proj_b"]
        h = _layernorm(h + attn, p["ln1_g"], p["ln1_b"])
        f = jnp.maximum(h @ p["ff1_w"] + p["ff1_b"], 0.0)
        h = _layernorm(h + f @ p["ff2_w"] + p["ff2_b"], p["ln2_g"], p["ln2_b"])
    last = h[:, -1, :]
    return last @ params["fc_w"] + params["fc_b"]


# ------------------------------- params ---------------------------------------

def init_params(key, input_size, d_model, nhead, num_layers, output_size,
                dim_feedforward=2048):
    scale = 0.05

    def nrm(k, shape):
        return scale * jax.random.normal(k, shape, jnp.float32)

    keys = jax.random.split(key, 4 + num_layers)
    params = {
        "emb_w": nrm(keys[0], (input_size, d_model)),
        "emb_b": nrm(keys[1], (d_model,)),
        "fc_w": nrm(keys[2], (d_model, output_size)),
        "fc_b": nrm(keys[3], (output_size,)),
        "layers": [],
    }
    for l in range(num_layers):
        lk = jax.random.split(keys[4 + l], 8)
        params["layers"].append({
            "in_proj_w": nrm(lk[0], (d_model, 3 * d_model)),   # (K, N) = W^T
            "in_proj_b": nrm(lk[1], (3 * d_model,)),
            "out_proj_w": nrm(lk[2], (d_model, d_model)),
            "out_proj_b": nrm(lk[3], (d_model,)),
            "ln1_g": jnp.ones((d_model,), jnp.float32),
            "ln1_b": jnp.zeros((d_model,), jnp.float32),
            "ff1_w": nrm(lk[4], (d_model, dim_feedforward)),
            "ff1_b": nrm(lk[5], (dim_feedforward,)),
            "ff2_w": nrm(lk[6], (dim_feedforward, d_model)),
            "ff2_b": nrm(lk[7], (d_model,)),
            "ln2_g": jnp.ones((d_model,), jnp.float32),
            "ln2_b": jnp.zeros((d_model,), jnp.float32),
        })
    return params


if __name__ == "__main__":
    B, S = 2, 8
    input_size, d_model, nhead, num_layers, output_size = 16, 32, 4, 2, 4

    key = jax.random.PRNGKey(0)
    pkey, xkey = jax.random.split(key)
    params = init_params(pkey, input_size, d_model, nhead, num_layers, output_size)
    x = jax.random.normal(xkey, (B, S, input_size), jnp.float32)

    fwd = jax.jit(functools.partial(forward, nhead=nhead, num_layers=num_layers))
    out = jax.block_until_ready(fwd(x, params))

    assert out.shape == (B, output_size), out.shape
    assert bool(jnp.all(jnp.isfinite(out)))
    if COMPUTE_DTYPE == jnp.float32:
        ref = _reference_forward(x, params, nhead, num_layers)
        assert bool(jnp.allclose(out, ref, rtol=1e-3, atol=1e-3)), (
            "kernel / reference mismatch")
    print("KERNEL_OK")
</pallas_src>

<mosaic_0001>
module attributes {stable_mosaic.version = 11 : i64} {
  func.func @_fused_kernel(%arg0: i32, %arg1: memref<1x8x16xf32, #tpu.memory_space<vmem>>, %arg2: memref<16x32xf32, #tpu.memory_space<vmem>>, %arg3: memref<1x32xf32, #tpu.memory_space<vmem>>, %arg4: memref<12x32x8xf32, #tpu.memory_space<vmem>>, %arg5: memref<12x1x8xf32, #tpu.memory_space<vmem>>, %arg6: memref<4x8x32xf32, #tpu.memory_space<vmem>>, %arg7: memref<1x32xf32, #tpu.memory_space<vmem>>, %arg8: memref<1x32xf32, #tpu.memory_space<vmem>>, %arg9: memref<1x32xf32, #tpu.memory_space<vmem>>, %arg10: memref<32x2048xf32, #tpu.memory_space<vmem>>, %arg11: memref<1x2048xf32, #tpu.memory_space<vmem>>, %arg12: memref<2048x32xf32, #tpu.memory_space<vmem>>, %arg13: memref<1x32xf32, #tpu.memory_space<vmem>>, %arg14: memref<1x32xf32, #tpu.memory_space<vmem>>, %arg15: memref<1x32xf32, #tpu.memory_space<vmem>>, %arg16: memref<12x32x8xf32, #tpu.memory_space<vmem>>, %arg17: memref<12x1x8xf32, #tpu.memory_space<vmem>>, %arg18: memref<4x8x32xf32, #tpu.memory_space<vmem>>, %arg19: memref<1x32xf32, #tpu.memory_space<vmem>>, %arg20: memref<1x32xf32, #tpu.memory_space<vmem>>, %arg21: memref<1x32xf32, #tpu.memory_space<vmem>>, %arg22: memref<32x2048xf32, #tpu.memory_space<vmem>>, %arg23: memref<1x2048xf32, #tpu.memory_space<vmem>>, %arg24: memref<2048x32xf32, #tpu.memory_space<vmem>>, %arg25: memref<1x32xf32, #tpu.memory_space<vmem>>, %arg26: memref<1x32xf32, #tpu.memory_space<vmem>>, %arg27: memref<1x32xf32, #tpu.memory_space<vmem>>, %arg28: memref<32x4xf32, #tpu.memory_space<vmem>>, %arg29: memref<1x4xf32, #tpu.memory_space<vmem>>, %arg30: memref<1x1x4xf32, #tpu.memory_space<vmem>>) attributes {dimension_semantics = [#tpu.dimension_semantics<parallel>], iteration_bounds = array<i64: 2>, scalar_prefetch = 0 : i64, scratch_operands = 0 : i64, tpu.core_type = #tpu.core_type<tc>, window_params = [{transform_indices = @transform_0, window_bounds = array<i64: 1, 8, 16>}, {pipeline_mode = #tpu.pipeline_mode<synchronous>, transform_indices = @transform_1, window_bounds = array<i64: 16, 32>}, {pipeline_mode = #tpu.pipeline_mode<synchronous>, transform_indices = @transform_2, window_bounds = array<i64: 1, 32>}, {pipeline_mode = #tpu.pipeline_mode<synchronous>, transform_indices = @transform_3, window_bounds = array<i64: 12, 32, 8>}, {pipeline_mode = #tpu.pipeline_mode<synchronous>, transform_indices = @transform_4, window_bounds = array<i64: 12, 1, 8>}, {pipeline_mode = #tpu.pipeline_mode<synchronous>, transform_indices = @transform_5, window_bounds = array<i64: 4, 8, 32>}, {pipeline_mode = #tpu.pipeline_mode<synchronous>, transform_indices = @transform_6, window_bounds = array<i64: 1, 32>}, {pipeline_mode = #tpu.pipeline_mode<synchronous>, transform_indices = @transform_7, window_bounds = array<i64: 1, 32>}, {pipeline_mode = #tpu.pipeline_mode<synchronous>, transform_indices = @transform_8, window_bounds = array<i64: 1, 32>}, {pipeline_mode = #tpu.pipeline_mode<synchronous>, transform_indices = @transform_9, window_bounds = array<i64: 32, 2048>}, {pipeline_mode = #tpu.pipeline_mode<synchronous>, transform_indices = @transform_10, window_bounds = array<i64: 1, 2048>}, {pipeline_mode = #tpu.pipeline_mode<synchronous>, transform_indices = @transform_11, window_bounds = array<i64: 2048, 32>}, {pipeline_mode = #tpu.pipeline_mode<synchronous>, transform_indices = @transform_12, window_bounds = array<i64: 1, 32>}, {pipeline_mode = #tpu.pipeline_mode<synchronous>, transform_indices = @transform_13, window_bounds = array<i64: 1, 32>}, {pipeline_mode = #tpu.pipeline_mode<synchronous>, transform_indices = @transform_14, window_bounds = array<i64: 1, 32>}, {pipeline_mode = #tpu.pipeline_mode<synchronous>, transform_indices = @transform_15, window_bounds = array<i64: 12, 32, 8>}, {pipeline_mode = #tpu.pipeline_mode<synchronous>, transform_indices = @transform_16, window_bounds = array<i64: 12, 1, 8>}, {pipeline_mode = #tpu.pipeline_mode<synchronous>, transform_indices = @transform_17, window_bounds = array<i64: 4, 8, 32>}, {pipeline_mode = #tpu.pipeline_mode<synchronous>, transform_indices = @transform_18, window_bounds = array<i64: 1, 32>}, {pipeline_mode = #tpu.pipeline_mode<synchronous>, transform_indices = @transform_19, window_bounds = array<i64: 1, 32>}, {pipeline_mode = #tpu.pipeline_mode<synchronous>, transform_indices = @transform_20, window_bounds = array<i64: 1, 32>}, {pipeline_mode = #tpu.pipeline_mode<synchronous>, transform_indices = @transform_21, window_bounds = array<i64: 32, 2048>}, {pipeline_mode = #tpu.pipeline_mode<synchronous>, transform_indices = @transform_22, window_bounds = array<i64: 1, 2048>}, {pipeline_mode = #tpu.pipeline_mode<synchronous>, transform_indices = @transform_23, window_bounds = array<i64: 2048, 32>}, {pipeline_mode = #tpu.pipeline_mode<synchronous>, transform_indices = @transform_24, window_bounds = array<i64: 1, 32>}, {pipeline_mode = #tpu.pipeline_mode<synchronous>, transform_indices = @transform_25, window_bounds = array<i64: 1, 32>}, {pipeline_mode = #tpu.pipeline_mode<synchronous>, transform_indices = @transform_26, window_bounds = array<i64: 1, 32>}, {pipeline_mode = #tpu.pipeline_mode<synchronous>, transform_indices = @transform_27, window_bounds = array<i64: 32, 4>}, {pipeline_mode = #tpu.pipeline_mode<synchronous>, transform_indices = @transform_28, window_bounds = array<i64: 1, 4>}, {transform_indices = @transform_29, window_bounds = array<i64: 1, 1, 4>}]} {
    %c0 = arith.constant 0 : index
    %c0_0 = arith.constant 0 : index
    %c0_1 = arith.constant 0 : index
    %0 = vector.load %arg1[%c0, %c0_0, %c0_1] : memref<1x8x16xf32, #tpu.memory_space<vmem>>, vector<1x8x16xf32>
    %1 = vector.shape_cast %0 : vector<1x8x16xf32> to vector<8x16xf32>
    %c0_2 = arith.constant 0 : index
    %c0_3 = arith.constant 0 : index
    %2 = vector.load %arg2[%c0_2, %c0_3] : memref<16x32xf32, #tpu.memory_space<vmem>>, vector<16x32xf32>
    %cst = arith.constant dense<0.000000e+00> : vector<8x32xf32>
    %3 = tpu.matmul %1, %2, %cst {dimension_numbers = #tpu.dot_dimension_numbers<[1], [0], [0], [1], [0, 0, 1, 1], [], []>} : vector<8x16xf32>, vector<16x32xf32>, vector<8x32xf32> -> vector<8x32xf32>
    %c0_4 = arith.constant 0 : index
    %c0_5 = arith.constant 0 : index
    %4 = vector.load %arg3[%c0_4, %c0_5] : memref<1x32xf32, #tpu.memory_space<vmem>>, vector<1x32xf32>
    %5 = vector.broadcast %4 : vector<1x32xf32> to vector<8x32xf32>
    %6 = arith.addf %3, %5 : vector<8x32xf32>
    %7 = vector.shape_cast %6 : vector<8x32xf32> to vector<1x8x32xf32>
    %8 = vector.shape_cast %7 : vector<1x8x32xf32> to vector<1x8x32xf32>
    %9 = vector.broadcast %8 : vector<1x8x32xf32> to vector<12x8x32xf32>
    %c0_6 = arith.constant 0 : index
    %c0_7 = arith.constant 0 : index
    %c0_8 = arith.constant 0 : index
    %10 = vector.load %arg4[%c0_6, %c0_7, %c0_8] : memref<12x32x8xf32, #tpu.memory_space<vmem>>, vector<12x32x8xf32>
    "tpu.trace_start"() <{level = 10 : i32, message = "hsd,hde->hse"}> : () -> ()
    %cst_9 = arith.constant dense<0.000000e+00> : vector<12x8x8xf32>
    %11 = tpu.matmul %9, %10, %cst_9 {dimension_numbers = #tpu.dot_dimension_numbers<[2], [1], [1], [2], [0, 0, 0, 1, 1, 2], [0], [0]>} : vector<12x8x32xf32>, vector<12x32x8xf32>, vector<12x8x8xf32> -> vector<12x8x8xf32>
    "tpu.trace_stop"() : () -> ()
    %c0_10 = arith.constant 0 : index
    %c0_11 = arith.constant 0 : index
    %c0_12 = arith.constant 0 : index
    %12 = vector.load %arg5[%c0_10, %c0_11, %c0_12] : memref<12x1x8xf32, #tpu.memory_space<vmem>>, vector<12x1x8xf32>
    %13 = vector.broadcast %12 : vector<12x1x8xf32> to vector<12x8x8xf32>
    %14 = arith.addf %11, %13 : vector<12x8x8xf32>
    %15 = vector.extract_strided_slice %14 {offsets = [0, 0, 0], sizes = [4, 8, 8], strides = [1, 1, 1]} : vector<12x8x8xf32> to vector<4x8x8xf32>
    %16 = vector.extract_strided_slice %14 {offsets = [4, 0, 0], sizes = [4, 8, 8], strides = [1, 1, 1]} : vector<12x8x8xf32> to vector<4x8x8xf32>
    %17 = vector.extract_strided_slice %14 {offsets = [8, 0, 0], sizes = [4, 8, 8], strides = [1, 1, 1]} : vector<12x8x8xf32> to vector<4x8x8xf32>
    "tpu.trace_start"() <{level = 10 : i32, message = "hqd,hkd->hqk"}> : () -> ()
    %cst_13 = arith.constant dense<0.000000e+00> : vector<4x8x8xf32>
    %18 = tpu.matmul %15, %16, %cst_13 {dimension_numbers = #tpu.dot_dimension_numbers<[2], [2], [1], [1], [0, 0, 0, 1, 1, 1], [0], [0]>} : vector<4x8x8xf32>, vector<4x8x8xf32>, vector<4x8x8xf32> -> vector<4x8x8xf32>
    "tpu.trace_stop"() : () -> ()
    %cst_14 = arith.constant 0.353553385 : f32
    %19 = vector.broadcast %cst_14 : f32 to vector<4x8x8xf32>
    %20 = arith.mulf %18, %19 : vector<4x8x8xf32>
    %cst_15 = arith.constant dense<0xFF800000> : vector<4x8xf32>
    %21 = vector.multi_reduction <maximumf>, %20, %cst_15 [2] : vector<4x8x8xf32> to vector<4x8xf32>
    %22 = vector.shape_cast %21 : vector<4x8xf32> to vector<4x8x1xf32>
    %23 = vector.broadcast %22 : vector<4x8x1xf32> to vector<4x8x8xf32>
    %24 = arith.subf %20, %23 : vector<4x8x8xf32>
    %25 = math.exp %24 : vector<4x8x8xf32>
    %cst_16 = arith.constant dense<0.000000e+00> : vector<4x8xf32>
    %26 = vector.multi_reduction <add>, %25, %cst_16 [2] : vector<4x8x8xf32> to vector<4x8xf32>
    %27 = vector.shape_cast %26 : vector<4x8xf32> to vector<4x8x1xf32>
    %28 = vector.broadcast %27 : vector<4x8x1xf32> to vector<4x8x8xf32>
    %29 = arith.divf %25, %28 : vector<4x8x8xf32>
    "tpu.trace_start"() <{level = 10 : i32, message = "hqk,hkd->hqd"}> : () -> ()
    %cst_17 = arith.constant dense<0.000000e+00> : vector<4x8x8xf32>
    %30 = tpu.matmul %29, %17, %cst_17 {dimension_numbers = #tpu.dot_dimension_numbers<[2], [1], [1], [2], [0, 0, 0, 1, 1, 2], [0], [0]>} : vector<4x8x8xf32>, vector<4x8x8xf32>, vector<4x8x8xf32> -> vector<4x8x8xf32>
    "tpu.trace_stop"() : () -> ()
    %c0_18 = arith.constant 0 : index
    %c0_19 = arith.constant 0 : index
    %c0_20 = arith.constant 0 : index
    %31 = vector.load %arg6[%c0_18, %c0_19, %c0_20] : memref<4x8x32xf32, #tpu.memory_space<vmem>>, vector<4x8x32xf32>
    "tpu.trace_start"() <{level = 10 : i32, message = "hqd,hde->hqe"}> : () -> ()
    %cst_21 = arith.constant dense<0.000000e+00> : vector<4x8x32xf32>
    %32 = tpu.matmul %30, %31, %cst_21 {dimension_numbers = #tpu.dot_dimension_numbers<[2], [1], [1], [2], [0, 0, 0, 1, 1, 2], [0], [0]>} : vector<4x8x8xf32>, vector<4x8x32xf32>, vector<4x8x32xf32> -> vector<4x8x32xf32>
    "tpu.trace_stop"() : () -> ()
    %cst_22 = arith.constant dense<0.000000e+00> : vector<8x32xf32>
    %33 = vector.multi_reduction <add>, %32, %cst_22 [0] : vector<4x8x32xf32> to vector<8x32xf32>
    %c0_23 = arith.constant 0 : index
    %c0_24 = arith.constant 0 : index
    %34 = vector.load %arg7[%c0_23, %c0_24] : memref<1x32xf32, #tpu.memory_space<vmem>>, vector<1x32xf32>
    %35 = vector.broadcast %34 : vector<1x32xf32> to vector<8x32xf32>
    %36 = arith.addf %33, %35 : vector<8x32xf32>
    %37 = arith.addf %6, %36 : vector<8x32xf32>
    %c0_25 = arith.constant 0 : index
    %c0_26 = arith.constant 0 : index
    %38 = vector.load %arg8[%c0_25, %c0_26] : memref<1x32xf32, #tpu.memory_space<vmem>>, vector<1x32xf32>
    %c0_27 = arith.constant 0 : index
    %c0_28 = arith.constant 0 : index
    %39 = vector.load %arg9[%c0_27, %c0_28] : memref<1x32xf32, #tpu.memory_space<vmem>>, vector<1x32xf32>
    %cst_29 = arith.constant dense<0.000000e+00> : vector<8xf32>
    %40 = vector.multi_reduction <add>, %37, %cst_29 [1] : vector<8x32xf32> to vector<8xf32>
    %41 = vector.shape_cast %40 : vector<8xf32> to vector<8x1xf32>
    %cst_30 = arith.constant 3.200000e+01 : f32
    %42 = vector.broadcast %cst_30 : f32 to vector<8x1xf32>
    %43 = arith.divf %41, %42 : vector<8x1xf32>
    %44 = vector.broadcast %43 : vector<8x1xf32> to vector<8x32xf32>
    %45 = arith.subf %37, %44 : vector<8x32xf32>
    %46 = arith.mulf %45, %45 : vector<8x32xf32>
    %cst_31 = arith.constant dense<0.000000e+00> : vector<8xf32>
    %47 = vector.multi_reduction <add>, %46, %cst_31 [1] : vector<8x32xf32> to vector<8xf32>
    %48 = vector.shape_cast %47 : vector<8xf32> to vector<8x1xf32>
    %cst_32 = arith.constant 3.200000e+01 : f32
    %49 = vector.broadcast %cst_32 : f32 to vector<8x1xf32>
    %50 = arith.divf %48, %49 : vector<8x1xf32>
    %51 = vector.broadcast %43 : vector<8x1xf32> to vector<8x32xf32>
    %52 = arith.subf %37, %51 : vector<8x32xf32>
    %cst_33 = arith.constant 9.99999974E-6 : f32
    %53 = vector.broadcast %cst_33 : f32 to vector<8x1xf32>
    %54 = arith.addf %50, %53 : vector<8x1xf32>
    %55 = math.rsqrt %54 : vector<8x1xf32>
    %56 = vector.broadcast %55 : vector<8x1xf32> to vector<8x32xf32>
    %57 = arith.mulf %52, %56 : vector<8x32xf32>
    %58 = vector.broadcast %38 : vector<1x32xf32> to vector<8x32xf32>
    %59 = arith.mulf %57, %58 : vector<8x32xf32>
    %60 = vector.broadcast %39 : vector<1x32xf32> to vector<8x32xf32>
    %61 = arith.addf %59, %60 : vector<8x32xf32>
    %c0_34 = arith.constant 0 : index
    %c0_35 = arith.constant 0 : index
    %62 = vector.load %arg10[%c0_34, %c0_35] : memref<32x2048xf32, #tpu.memory_space<vmem>>, vector<32x2048xf32>
    %cst_36 = arith.constant dense<0.000000e+00> : vector<8x2048xf32>
    %63 = tpu.matmul %61, %62, %cst_36 {dimension_numbers = #tpu.dot_dimension_numbers<[1], [0], [0], [1], [0, 0, 1, 1], [], []>} : vector<8x32xf32>, vector<32x2048xf32>, vector<8x2048xf32> -> vector<8x2048xf32>
    %c0_37 = arith.constant 0 : index
    %c0_38 = arith.constant 0 : index
    %64 = vector.load %arg11[%c0_37, %c0_38] : memref<1x2048xf32, #tpu.memory_space<vmem>>, vector<1x2048xf32>
    %65 = vector.broadcast %64 : vector<1x2048xf32> to vector<8x2048xf32>
    %66 = arith.addf %63, %65 : vector<8x2048xf32>
    %cst_39 = arith.constant 0.000000e+00 : f32
    %67 = vector.broadcast %cst_39 : f32 to vector<8x2048xf32>
    %68 = arith.maximumf %66, %67 : vector<8x2048xf32>
    %c0_40 = arith.constant 0 : index
    %c0_41 = arith.constant 0 : index
    %69 = vector.load %arg12[%c0_40, %c0_41] : memref<2048x32xf32, #tpu.memory_space<vmem>>, vector<2048x32xf32>
    %cst_42 = arith.constant dense<0.000000e+00> : vector<8x32xf32>
    %70 = tpu.matmul %68, %69, %cst_42 {dimension_numbers = #tpu.dot_dimension_numbers<[1], [0], [0], [1], [0, 0, 1, 1], [], []>} : vector<8x2048xf32>, vector<2048x32xf32>, vector<8x32xf32> -> vector<8x32xf32>
    %c0_43 = arith.constant 0 : index
    %c0_44 = arith.constant 0 : index
    %71 = vector.load %arg13[%c0_43, %c0_44] : memref<1x32xf32, #tpu.memory_space<vmem>>, vector<1x32xf32>
    %72 = vector.broadcast %71 : vector<1x32xf32> to vector<8x32xf32>
    %73 = arith.addf %70, %72 : vector<8x32xf32>
    %74 = arith.addf %61, %73 : vector<8x32xf32>
    %c0_45 = arith.constant 0 : index
    %c0_46 = arith.constant 0 : index
    %75 = vector.load %arg14[%c0_45, %c0_46] : memref<1x32xf32, #tpu.memory_space<vmem>>, vector<1x32xf32>
    %c0_47 = arith.constant 0 : index
    %c0_48 = arith.constant 0 : index
    %76 = vector.load %arg15[%c0_47, %c0_48] : memref<1x32xf32, #tpu.memory_space<vmem>>, vector<1x32xf32>
    %cst_49 = arith.constant dense<0.000000e+00> : vector<8xf32>
    %77 = vector.multi_reduction <add>, %74, %cst_49 [1] : vector<8x32xf32> to vector<8xf32>
    %78 = vector.shape_cast %77 : vector<8xf32> to vector<8x1xf32>
    %cst_50 = arith.constant 3.200000e+01 : f32
    %79 = vector.broadcast %cst_50 : f32 to vector<8x1xf32>
    %80 = arith.divf %78, %79 : vector<8x1xf32>
    %81 = vector.broadcast %80 : vector<8x1xf32> to vector<8x32xf32>
    %82 = arith.subf %74, %81 : vector<8x32xf32>
    %83 = arith.mulf %82, %82 : vector<8x32xf32>
    %cst_51 = arith.constant dense<0.000000e+00> : vector<8xf32>
    %84 = vector.multi_reduction <add>, %83, %cst_51 [1] : vector<8x32xf32> to vector<8xf32>
    %85 = vector.shape_cast %84 : vector<8xf32> to vector<8x1xf32>
    %cst_52 = arith.constant 3.200000e+01 : f32
    %86 = vector.broadcast %cst_52 : f32 to vector<8x1xf32>
    %87 = arith.divf %85, %86 : vector<8x1xf32>
    %88 = vector.broadcast %80 : vector<8x1xf32> to vector<8x32xf32>
    %89 = arith.subf %74, %88 : vector<8x32xf32>
    %cst_53 = arith.constant 9.99999974E-6 : f32
    %90 = vector.broadcast %cst_53 : f32 to vector<8x1xf32>
    %91 = arith.addf %87, %90 : vector<8x1xf32>
    %92 = math.rsqrt %91 : vector<8x1xf32>
    %93 = vector.broadcast %92 : vector<8x1xf32> to vector<8x32xf32>
    %94 = arith.mulf %89, %93 : vector<8x32xf32>
    %95 = vector.broadcast %75 : vector<1x32xf32> to vector<8x32xf32>
    %96 = arith.mulf %94, %95 : vector<8x32xf32>
    %97 = vector.broadcast %76 : vector<1x32xf32> to vector<8x32xf32>
    %98 = arith.addf %96, %97 : vector<8x32xf32>
    %99 = vector.shape_cast %98 : vector<8x32xf32> to vector<1x8x32xf32>
    %100 = vector.shape_cast %99 : vector<1x8x32xf32> to vector<1x8x32xf32>
    %101 = vector.broadcast %100 : vector<1x8x32xf32> to vector<12x8x32xf32>
    %c0_54 = arith.constant 0 : index
    %c0_55 = arith.constant 0 : index
    %c0_56 = arith.constant 0 : index
    %102 = vector.load %arg16[%c0_54, %c0_55, %c0_56] : memref<12x32x8xf32, #tpu.memory_space<vmem>>, vector<12x32x8xf32>
    "tpu.trace_start"() <{level = 10 : i32, message = "hsd,hde->hse"}> : () -> ()
    %cst_57 = arith.constant dense<0.000000e+00> : vector<12x8x8xf32>
    %103 = tpu.matmul %101, %102, %cst_57 {dimension_numbers = #tpu.dot_dimension_numbers<[2], [1], [1], [2], [0, 0, 0, 1, 1, 2], [0], [0]>} : vector<12x8x32xf32>, vector<12x32x8xf32>, vector<12x8x8xf32> -> vector<12x8x8xf32>
    "tpu.trace_stop"() : () -> ()
    %c0_58 = arith.constant 0 : index
    %c0_59 = arith.constant 0 : index
    %c0_60 = arith.constant 0 : index
    %104 = vector.load %arg17[%c0_58, %c0_59, %c0_60] : memref<12x1x8xf32, #tpu.memory_space<vmem>>, vector<12x1x8xf32>
    %105 = vector.broadcast %104 : vector<12x1x8xf32> to vector<12x8x8xf32>
    %106 = arith.addf %103, %105 : vector<12x8x8xf32>
    %107 = vector.extract_strided_slice %106 {offsets = [0, 0, 0], sizes = [4, 8, 8], strides = [1, 1, 1]} : vector<12x8x8xf32> to vector<4x8x8xf32>
    %108 = vector.extract_strided_slice %106 {offsets = [4, 0, 0], sizes = [4, 8, 8], strides = [1, 1, 1]} : vector<12x8x8xf32> to vector<4x8x8xf32>
    %109 = vector.extract_strided_slice %106 {offsets = [8, 0, 0], sizes = [4, 8, 8], strides = [1, 1, 1]} : vector<12x8x8xf32> to vector<4x8x8xf32>
    "tpu.trace_start"() <{level = 10 : i32, message = "hqd,hkd->hqk"}> : () -> ()
    %cst_61 = arith.constant dense<0.000000e+00> : vector<4x8x8xf32>
    %110 = tpu.matmul %107, %108, %cst_61 {dimension_numbers = #tpu.dot_dimension_numbers<[2], [2], [1], [1], [0, 0, 0, 1, 1, 1], [0], [0]>} : vector<4x8x8xf32>, vector<4x8x8xf32>, vector<4x8x8xf32> -> vector<4x8x8xf32>
    "tpu.trace_stop"() : () -> ()
    %cst_62 = arith.constant 0.353553385 : f32
    %111 = vector.broadcast %cst_62 : f32 to vector<4x8x8xf32>
    %112 = arith.mulf %110, %111 : vector<4x8x8xf32>
    %cst_63 = arith.constant dense<0xFF800000> : vector<4x8xf32>
    %113 = vector.multi_reduction <maximumf>, %112, %cst_63 [2] : vector<4x8x8xf32> to vector<4x8xf32>
    %114 = vector.shape_cast %113 : vector<4x8xf32> to vector<4x8x1xf32>
    %115 = vector.broadcast %114 : vector<4x8x1xf32> to vector<4x8x8xf32>
    %116 = arith.subf %112, %115 : vector<4x8x8xf32>
    %117 = math.exp %116 : vector<4x8x8xf32>
    %cst_64 = arith.constant dense<0.000000e+00> : vector<4x8xf32>
    %118 = vector.multi_reduction <add>, %117, %cst_64 [2] : vector<4x8x8xf32> to vector<4x8xf32>
    %119 = vector.shape_cast %118 : vector<4x8xf32> to vector<4x8x1xf32>
    %120 = vector.broadcast %119 : vector<4x8x1xf32> to vector<4x8x8xf32>
    %121 = arith.divf %117, %120 : vector<4x8x8xf32>
    "tpu.trace_start"() <{level = 10 : i32, message = "hqk,hkd->hqd"}> : () -> ()
    %cst_65 = arith.constant dense<0.000000e+00> : vector<4x8x8xf32>
    %122 = tpu.matmul %121, %109, %cst_65 {dimension_numbers = #tpu.dot_dimension_numbers<[2], [1], [1], [2], [0, 0, 0, 1, 1, 2], [0], [0]>} : vector<4x8x8xf32>, vector<4x8x8xf32>, vector<4x8x8xf32> -> vector<4x8x8xf32>
    "tpu.trace_stop"() : () -> ()
    %c0_66 = arith.constant 0 : index
    %c0_67 = arith.constant 0 : index
    %c0_68 = arith.constant 0 : index
    %123 = vector.load %arg18[%c0_66, %c0_67, %c0_68] : memref<4x8x32xf32, #tpu.memory_space<vmem>>, vector<4x8x32xf32>
    "tpu.trace_start"() <{level = 10 : i32, message = "hqd,hde->hqe"}> : () -> ()
    %cst_69 = arith.constant dense<0.000000e+00> : vector<4x8x32xf32>
    %124 = tpu.matmul %122, %123, %cst_69 {dimension_numbers = #tpu.dot_dimension_numbers<[2], [1], [1], [2], [0, 0, 0, 1, 1, 2], [0], [0]>} : vector<4x8x8xf32>, vector<4x8x32xf32>, vector<4x8x32xf32> -> vector<4x8x32xf32>
    "tpu.trace_stop"() : () -> ()
    %cst_70 = arith.constant dense<0.000000e+00> : vector<8x32xf32>
    %125 = vector.multi_reduction <add>, %124, %cst_70 [0] : vector<4x8x32xf32> to vector<8x32xf32>
    %c0_71 = arith.constant 0 : index
    %c0_72 = arith.constant 0 : index
    %126 = vector.load %arg19[%c0_71, %c0_72] : memref<1x32xf32, #tpu.memory_space<vmem>>, vector<1x32xf32>
    %127 = vector.broadcast %126 : vector<1x32xf32> to vector<8x32xf32>
    %128 = arith.addf %125, %127 : vector<8x32xf32>
    %129 = arith.addf %98, %128 : vector<8x32xf32>
    %c0_73 = arith.constant 0 : index
    %c0_74 = arith.constant 0 : index
    %130 = vector.load %arg20[%c0_73, %c0_74] : memref<1x32xf32, #tpu.memory_space<vmem>>, vector<1x32xf32>
    %c0_75 = arith.constant 0 : index
    %c0_76 = arith.constant 0 : index
    %131 = vector.load %arg21[%c0_75, %c0_76] : memref<1x32xf32, #tpu.memory_space<vmem>>, vector<1x32xf32>
    %cst_77 = arith.constant dense<0.000000e+00> : vector<8xf32>
    %132 = vector.multi_reduction <add>, %129, %cst_77 [1] : vector<8x32xf32> to vector<8xf32>
    %133 = vector.shape_cast %132 : vector<8xf32> to vector<8x1xf32>
    %cst_78 = arith.constant 3.200000e+01 : f32
    %134 = vector.broadcast %cst_78 : f32 to vector<8x1xf32>
    %135 = arith.divf %133, %134 : vector<8x1xf32>
    %136 = vector.broadcast %135 : vector<8x1xf32> to vector<8x32xf32>
    %137 = arith.subf %129, %136 : vector<8x32xf32>
    %138 = arith.mulf %137, %137 : vector<8x32xf32>
    %cst_79 = arith.constant dense<0.000000e+00> : vector<8xf32>
    %139 = vector.multi_reduction <add>, %138, %cst_79 [1] : vector<8x32xf32> to vector<8xf32>
    %140 = vector.shape_cast %139 : vector<8xf32> to vector<8x1xf32>
    %cst_80 = arith.constant 3.200000e+01 : f32
    %141 = vector.broadcast %cst_80 : f32 to vector<8x1xf32>
    %142 = arith.divf %140, %141 : vector<8x1xf32>
    %143 = vector.broadcast %135 : vector<8x1xf32> to vector<8x32xf32>
    %144 = arith.subf %129, %143 : vector<8x32xf32>
    %cst_81 = arith.constant 9.99999974E-6 : f32
    %145 = vector.broadcast %cst_81 : f32 to vector<8x1xf32>
    %146 = arith.addf %142, %145 : vector<8x1xf32>
    %147 = math.rsqrt %146 : vector<8x1xf32>
    %148 = vector.broadcast %147 : vector<8x1xf32> to vector<8x32xf32>
    %149 = arith.mulf %144, %148 : vector<8x32xf32>
    %150 = vector.broadcast %130 : vector<1x32xf32> to vector<8x32xf32>
    %151 = arith.mulf %149, %150 : vector<8x32xf32>
    %152 = vector.broadcast %131 : vector<1x32xf32> to vector<8x32xf32>
    %153 = arith.addf %151, %152 : vector<8x32xf32>
    %c0_82 = arith.constant 0 : index
    %c0_83 = arith.constant 0 : index
    %154 = vector.load %arg22[%c0_82, %c0_83] : memref<32x2048xf32, #tpu.memory_space<vmem>>, vector<32x2048xf32>
    %cst_84 = arith.constant dense<0.000000e+00> : vector<8x2048xf32>
    %155 = tpu.matmul %153, %154, %cst_84 {dimension_numbers = #tpu.dot_dimension_numbers<[1], [0], [0], [1], [0, 0, 1, 1], [], []>} : vector<8x32xf32>, vector<32x2048xf32>, vector<8x2048xf32> -> vector<8x2048xf32>
    %c0_85 = arith.constant 0 : index
    %c0_86 = arith.constant 0 : index
    %156 = vector.load %arg23[%c0_85, %c0_86] : memref<1x2048xf32, #tpu.memory_space<vmem>>, vector<1x2048xf32>
    %157 = vector.broadcast %156 : vector<1x2048xf32> to vector<8x2048xf32>
    %158 = arith.addf %155, %157 : vector<8x2048xf32>
    %cst_87 = arith.constant 0.000000e+00 : f32
    %159 = vector.broadcast %cst_87 : f32 to vector<8x2048xf32>
    %160 = arith.maximumf %158, %159 : vector<8x2048xf32>
    %c0_88 = arith.constant 0 : index
    %c0_89 = arith.constant 0 : index
    %161 = vector.load %arg24[%c0_88, %c0_89] : memref<2048x32xf32, #tpu.memory_space<vmem>>, vector<2048x32xf32>
    %cst_90 = arith.constant dense<0.000000e+00> : vector<8x32xf32>
    %162 = tpu.matmul %160, %161, %cst_90 {dimension_numbers = #tpu.dot_dimension_numbers<[1], [0], [0], [1], [0, 0, 1, 1], [], []>} : vector<8x2048xf32>, vector<2048x32xf32>, vector<8x32xf32> -> vector<8x32xf32>
    %c0_91 = arith.constant 0 : index
    %c0_92 = arith.constant 0 : index
    %163 = vector.load %arg25[%c0_91, %c0_92] : memref<1x32xf32, #tpu.memory_space<vmem>>, vector<1x32xf32>
    %164 = vector.broadcast %163 : vector<1x32xf32> to vector<8x32xf32>
    %165 = arith.addf %162, %164 : vector<8x32xf32>
    %166 = arith.addf %153, %165 : vector<8x32xf32>
    %c0_93 = arith.constant 0 : index
    %c0_94 = arith.constant 0 : index
    %167 = vector.load %arg26[%c0_93, %c0_94] : memref<1x32xf32, #tpu.memory_space<vmem>>, vector<1x32xf32>
    %c0_95 = arith.constant 0 : index
    %c0_96 = arith.constant 0 : index
    %168 = vector.load %arg27[%c0_95, %c0_96] : memref<1x32xf32, #tpu.memory_space<vmem>>, vector<1x32xf32>
    %cst_97 = arith.constant dense<0.000000e+00> : vector<8xf32>
    %169 = vector.multi_reduction <add>, %166, %cst_97 [1] : vector<8x32xf32> to vector<8xf32>
    %170 = vector.shape_cast %169 : vector<8xf32> to vector<8x1xf32>
    %cst_98 = arith.constant 3.200000e+01 : f32
    %171 = vector.broadcast %cst_98 : f32 to vector<8x1xf32>
    %172 = arith.divf %170, %171 : vector<8x1xf32>
    %173 = vector.broadcast %172 : vector<8x1xf32> to vector<8x32xf32>
    %174 = arith.subf %166, %173 : vector<8x32xf32>
    %175 = arith.mulf %174, %174 : vector<8x32xf32>
    %cst_99 = arith.constant dense<0.000000e+00> : vector<8xf32>
    %176 = vector.multi_reduction <add>, %175, %cst_99 [1] : vector<8x32xf32> to vector<8xf32>
    %177 = vector.shape_cast %176 : vector<8xf32> to vector<8x1xf32>
    %cst_100 = arith.constant 3.200000e+01 : f32
    %178 = vector.broadcast %cst_100 : f32 to vector<8x1xf32>
    %179 = arith.divf %177, %178 : vector<8x1xf32>
    %180 = vector.broadcast %172 : vector<8x1xf32> to vector<8x32xf32>
    %181 = arith.subf %166, %180 : vector<8x32xf32>
    %cst_101 = arith.constant 9.99999974E-6 : f32
    %182 = vector.broadcast %cst_101 : f32 to vector<8x1xf32>
    %183 = arith.addf %179, %182 : vector<8x1xf32>
    %184 = math.rsqrt %183 : vector<8x1xf32>
    %185 = vector.broadcast %184 : vector<8x1xf32> to vector<8x32xf32>
    %186 = arith.mulf %181, %185 : vector<8x32xf32>
    %187 = vector.broadcast %167 : vector<1x32xf32> to vector<8x32xf32>
    %188 = arith.mulf %186, %187 : vector<8x32xf32>
    %189 = vector.broadcast %168 : vector<1x32xf32> to vector<8x32xf32>
    %190 = arith.addf %188, %189 : vector<8x32xf32>
    %191 = vector.extract_strided_slice %190 {offsets = [7, 0], sizes = [1, 32], strides = [1, 1]} : vector<8x32xf32> to vector<1x32xf32>
    %c0_102 = arith.constant 0 : index
    %c0_103 = arith.constant 0 : index
    %192 = vector.load %arg28[%c0_102, %c0_103] : memref<32x4xf32, #tpu.memory_space<vmem>>, vector<32x4xf32>
    %cst_104 = arith.constant dense<0.000000e+00> : vector<1x4xf32>
    %193 = tpu.matmul %191, %192, %cst_104 {dimension_numbers = #tpu.dot_dimension_numbers<[1], [0], [0], [1], [0, 0, 1, 1], [], []>} : vector<1x32xf32>, vector<32x4xf32>, vector<1x4xf32> -> vector<1x4xf32>
    %c0_105 = arith.constant 0 : index
    %c0_106 = arith.constant 0 : index
    %194 = vector.load %arg29[%c0_105, %c0_106] : memref<1x4xf32, #tpu.memory_space<vmem>>, vector<1x4xf32>
    %195 = arith.addf %193, %194 : vector<1x4xf32>
    %c0_107 = arith.constant 0 : index
    %c0_108 = arith.constant 0 : index
    %c0_109 = arith.constant 0 : index
    %196 = vector.load %arg30[%c0_107, %c0_108, %c0_109] : memref<1x1x4xf32, #tpu.memory_space<vmem>>, vector<1x1x4xf32>
    %197 = vector.shape_cast %196 : vector<1x1x4xf32> to vector<1x4xf32>
    %198 = vector.shape_cast %195 : vector<1x4xf32> to vector<1x1x4xf32>
    tpu.vector_store %arg30[%c0_107, %c0_108, %c0_109], %198 {strides = array<i32>} : memref<1x1x4xf32, #tpu.memory_space<vmem>>, vector<1x1x4xf32>,
    return
  }
  func.func @transform_0(%arg0: i32) -> (i32, i32, i32) {
    %c0_i32 = arith.constant 0 : i32
    %c0_i32_0 = arith.constant 0 : i32
    %c0_i32_1 = arith.constant 0 : i32
    return %arg0, %c0_i32, %c0_i32_0 : i32, i32, i32
  }
  func.func @transform_1(%arg0: i32) -> (i32, i32) {
    %c0_i32 = arith.constant 0 : i32
    %c0_i32_0 = arith.constant 0 : i32
    %c0_i32_1 = arith.constant 0 : i32
    return %c0_i32, %c0_i32_0 : i32, i32
  }
  func.func @transform_2(%arg0: i32) -> (i32, i32) {
    %c0_i32 = arith.constant 0 : i32
    %c0_i32_0 = arith.constant 0 : i32
    %c0_i32_1 = arith.constant 0 : i32
    return %c0_i32, %c0_i32_0 : i32, i32
  }
  func.func @transform_3(%arg0: i32) -> (i32, i32, i32) {
    %c0_i32 = arith.constant 0 : i32
    %c0_i32_0 = arith.constant 0 : i32
    %c0_i32_1 = arith.constant 0 : i32
    %c0_i32_2 = arith.constant 0 : i32
    return %c0_i32, %c0_i32_0, %c0_i32_1 : i32, i32, i32
  }
  func.func @transform_4(%arg0: i32) -> (i32, i32, i32) {
    %c0_i32 = arith.constant 0 : i32
    %c0_i32_0 = arith.constant 0 : i32
    %c0_i32_1 = arith.constant 0 : i32
    %c0_i32_2 = arith.constant 0 : i32
    return %c0_i32, %c0_i32_0, %c0_i32_1 : i32, i32, i32
  }
  func.func @transform_5(%arg0: i32) -> (i32, i32, i32) {
    %c0_i32 = arith.constant 0 : i32
    %c0_i32_0 = arith.constant 0 : i32
    %c0_i32_1 = arith.constant 0 : i32
    %c0_i32_2 = arith.constant 0 : i32
    return %c0_i32, %c0_i32_0, %c0_i32_1 : i32, i32, i32
  }
  func.func @transform_6(%arg0: i32) -> (i32, i32) {
    %c0_i32 = arith.constant 0 : i32
    %c0_i32_0 = arith.constant 0 : i32
    %c0_i32_1 = arith.constant 0 : i32
    return %c0_i32, %c0_i32_0 : i32, i32
  }
  func.func @transform_7(%arg0: i32) -> (i32, i32) {
    %c0_i32 = arith.constant 0 : i32
    %c0_i32_0 = arith.constant 0 : i32
    %c0_i32_1 = arith.constant 0 : i32
    return %c0_i32, %c0_i32_0 : i32, i32
  }
  func.func @transform_8(%arg0: i32) -> (i32, i32) {
    %c0_i32 = arith.constant 0 : i32
    %c0_i32_0 = arith.constant 0 : i32
    %c0_i32_1 = arith.constant 0 : i32
    return %c0_i32, %c0_i32_0 : i32, i32
  }
  func.func @transform_9(%arg0: i32) -> (i32, i32) {
    %c0_i32 = arith.constant 0 : i32
    %c0_i32_0 = arith.constant 0 : i32
    %c0_i32_1 = arith.constant 0 : i32
    return %c0_i32, %c0_i32_0 : i32, i32
  }
  func.func @transform_10(%arg0: i32) -> (i32, i32) {
    %c0_i32 = arith.constant 0 : i32
    %c0_i32_0 = arith.constant 0 : i32
    %c0_i32_1 = arith.constant 0 : i32
    return %c0_i32, %c0_i32_0 : i32, i32
  }
  func.func @transform_11(%arg0: i32) -> (i32, i32) {
    %c0_i32 = arith.constant 0 : i32
    %c0_i32_0 = arith.constant 0 : i32
    %c0_i32_1 = arith.constant 0 : i32
    return %c0_i32, %c0_i32_0 : i32, i32
  }
  func.func @transform_12(%arg0: i32) -> (i32, i32) {
    %c0_i32 = arith.constant 0 : i32
    %c0_i32_0 = arith.constant 0 : i32
    %c0_i32_1 = arith.constant 0 : i32
    return %c0_i32, %c0_i32_0 : i32, i32
  }
  func.func @transform_13(%arg0: i32) -> (i32, i32) {
    %c0_i32 = arith.constant 0 : i32
    %c0_i32_0 = arith.constant 0 : i32
    %c0_i32_1 = arith.constant 0 : i32
    return %c0_i32, %c0_i32_0 : i32, i32
  }
  func.func @transform_14(%arg0: i32) -> (i32, i32) {
    %c0_i32 = arith.constant 0 : i32
    %c0_i32_0 = arith.constant 0 : i32
    %c0_i32_1 = arith.constant 0 : i32
    return %c0_i32, %c0_i32_0 : i32, i32
  }
  func.func @transform_15(%arg0: i32) -> (i32, i32, i32) {
    %c0_i32 = arith.constant 0 : i32
    %c0_i32_0 = arith.constant 0 : i32
    %c0_i32_1 = arith.constant 0 : i32
    %c0_i32_2 = arith.constant 0 : i32
    return %c0_i32, %c0_i32_0, %c0_i32_1 : i32, i32, i32
  }
  func.func @transform_16(%arg0: i32) -> (i32, i32, i32) {
    %c0_i32 = arith.constant 0 : i32
    %c0_i32_0 = arith.constant 0 : i32
    %c0_i32_1 = arith.constant 0 : i32
    %c0_i32_2 = arith.constant 0 : i32
    return %c0_i32, %c0_i32_0, %c0_i32_1 : i32, i32, i32
  }
  func.func @transform_17(%arg0: i32) -> (i32, i32, i32) {
    %c0_i32 = arith.constant 0 : i32
    %c0_i32_0 = arith.constant 0 : i32
    %c0_i32_1 = arith.constant 0 : i32
    %c0_i32_2 = arith.constant 0 : i32
    return %c0_i32, %c0_i32_0, %c0_i32_1 : i32, i32, i32
  }
  func.func @transform_18(%arg0: i32) -> (i32, i32) {
    %c0_i32 = arith.constant 0 : i32
    %c0_i32_0 = arith.constant 0 : i32
    %c0_i32_1 = arith.constant 0 : i32
    return %c0_i32, %c0_i32_0 : i32, i32
  }
  func.func @transform_19(%arg0: i32) -> (i32, i32) {
    %c0_i32 = arith.constant 0 : i32
    %c0_i32_0 = arith.constant 0 : i32
    %c0_i32_1 = arith.constant 0 : i32
    return %c0_i32, %c0_i32_0 : i32, i32
  }
  func.func @transform_20(%arg0: i32) -> (i32, i32) {
    %c0_i32 = arith.constant 0 : i32
    %c0_i32_0 = arith.constant 0 : i32
    %c0_i32_1 = arith.constant 0 : i32
    return %c0_i32, %c0_i32_0 : i32, i32
  }
  func.func @transform_21(%arg0: i32) -> (i32, i32) {
    %c0_i32 = arith.constant 0 : i32
    %c0_i32_0 = arith.constant 0 : i32
    %c0_i32_1 = arith.constant 0 : i32
    return %c0_i32, %c0_i32_0 : i32, i32
  }
  func.func @transform_22(%arg0: i32) -> (i32, i32) {
    %c0_i32 = arith.constant 0 : i32
    %c0_i32_0 = arith.constant 0 : i32
    %c0_i32_1 = arith.constant 0 : i32
    return %c0_i32, %c0_i32_0 : i32, i32
  }
  func.func @transform_23(%arg0: i32) -> (i32, i32) {
    %c0_i32 = arith.constant 0 : i32
    %c0_i32_0 = arith.constant 0 : i32
    %c0_i32_1 = arith.constant 0 : i32
    return %c0_i32, %c0_i32_0 : i32, i32
  }
  func.func @transform_24(%arg0: i32) -> (i32, i32) {
    %c0_i32 = arith.constant 0 : i32
    %c0_i32_0 = arith.constant 0 : i32
    %c0_i32_1 = arith.constant 0 : i32
    return %c0_i32, %c0_i32_0 : i32, i32
  }
  func.func @transform_25(%arg0: i32) -> (i32, i32) {
    %c0_i32 = arith.constant 0 : i32
    %c0_i32_0 = arith.constant 0 : i32
    %c0_i32_1 = arith.constant 0 : i32
    return %c0_i32, %c0_i32_0 : i32, i32
  }
  func.func @transform_26(%arg0: i32) -> (i32, i32) {
    %c0_i32 = arith.constant 0 : i32
    %c0_i32_0 = arith.constant 0 : i32
    %c0_i32_1 = arith.constant 0 : i32
    return %c0_i32, %c0_i32_0 : i32, i32
  }
  func.func @transform_27(%arg0: i32) -> (i32, i32) {
    %c0_i32 = arith.constant 0 : i32
    %c0_i32_0 = arith.constant 0 : i32
    %c0_i32_1 = arith.constant 0 : i32
    return %c0_i32, %c0_i32_0 : i32, i32
  }
  func.func @transform_28(%arg0: i32) -> (i32, i32) {
    %c0_i32 = arith.constant 0 : i32
    %c0_i32_0 = arith.constant 0 : i32
    %c0_i32_1 = arith.constant 0 : i32
    return %c0_i32, %c0_i32_0 : i32, i32
  }
  func.func @transform_29(%arg0: i32) -> (i32, i32, i32) {
    %c0_i32 = arith.constant 0 : i32
    %c0_i32_0 = arith.constant 0 : i32
    %c0_i32_1 = arith.constant 0 : i32
    return %arg0, %c0_i32, %c0_i32_0 : i32, i32, i32
  }
}

</mosaic_0001>

<bundles_post_ra>
// kernel: forward.1
= control target key start
LH: loop header
LB: loop body
LE: loop exit
PB: predicated region body
PF: predicated region fallthrough
CT: control target
= control target key end

     0   :  { %s9687_s6 = smov 1   ;;  %s9688_s10 = smov 2   ;;  %s11296_s0 = inlined_call_operand.smem [shape: u32[30], index: -1, kind: input, shape index: {}] }
   0x1   :  { %s9727_s5 = sld [smem:[%s11296_s0]]   ;;  %s9689_s14 = smov 3  }
   0x2   :  { %s9732_s9 = sld [smem:[%s11296_s0 + %s9687_s6]]   ;;  %s9690_s18 = smov 4  }
   0x3   :  { %s9737_s13 = sld [smem:[%s11296_s0 + %s9688_s10]]   ;;  %s9691_s22 = smov 5  }
   0x4   :  { %s9742_s17 = sld [smem:[%s11296_s0 + %s9689_s14]]   ;;  %s9692_s26 = smov 6  }
   0x5   :  { %s9747_s21 = sld [smem:[%s11296_s0 + %s9690_s18]]   ;;  %s9693_s30 = smov 7  }
   0x6   :  { %s9752_s25 = sld [smem:[%s11296_s0 + %s9691_s22]]   ;;  %s9694_s4 = smov 8  }
   0x7   :  { %11307 = sst [smem:[#allocation5_spill]] %s9727_s5  ;;  %s9695_s10 = smov 9  }
   0x8   :  { %11308 = sst [smem:[#allocation6_spill]] %s9732_s9  ;;  %s9696_s15 = smov 10  }
   0x9   :  { %11309 = sst [smem:[#allocation7_spill]] %s9737_s13  ;;  %s9697_s20 = smov 11  }
   0xa   :  { %s9757_s29 = sld [smem:[%s11296_s0 + %s9692_s26]]   ;;  %s9698_s26 = smov 12  }
   0xb   :  { %s9762_s3 = sld [smem:[%s11296_s0 + %s9693_s30]]   ;;  %s9699_s1 = smov 13  }
   0xc   :  { %s9767_s8 = sld [smem:[%s11296_s0 + %s9694_s4]]   ;;  %s9700_s7 = smov 14  }
   0xd   :  { %s9772_s14 = sld [smem:[%s11296_s0 + %s9695_s10]]   ;;  %s9702_s22 = smov 16  }
   0xe   :  { %s9777_s19 = sld [smem:[%s11296_s0 + %s9696_s15]]   ;;  %s9701_s15 = smov 15  }
   0xf   :  { %s9782_s24 = sld [smem:[%s11296_s0 + %s9697_s20]]   ;;  %s9703_s28 = smov 17  }
  0x10   :  { %s9787_s30 = sld [smem:[%s11296_s0 + %s9698_s26]]  }
  0x11   :  { %11310 = sst [smem:[#allocation8_spill]] %s9762_s3 }
  0x12   :  { %11311 = sst [smem:[#allocation9_spill]] %s9767_s8 }
  0x13   :  { %11312 = sst [smem:[#allocation10_spill]] %s9772_s14 }
  0x14   :  { %s9792_s6 = sld [smem:[%s11296_s0 + %s9699_s1]]  }
  0x15   :  { %s9797_s12 = sld [smem:[%s11296_s0 + %s9700_s7]]   ;;  %s9704_s7 = smov 18  }
  0x16   :  { %s9802_s20 = sld [smem:[%s11296_s0 + %s9701_s15]]   ;;  %s9705_s15 = smov 19  }
  0x17   :  { %s9807_s27 = sld [smem:[%s11296_s0 + %s9702_s22]]   ;;  %s9706_s22 = smov 20  }
  0x18   :  { %s9812_s4 = sld [smem:[%s11296_s0 + %s9703_s28]]   ;;  %s9707_s28 = smov 21  }
  0x1a   :  { %11313 = sst [smem:[#allocation11_spill]] %s9792_s6 }
  0x1b   :  { %11314 = sst [smem:[#allocation12_spill]] %s9797_s12 }
  0x1c   :  { %s9817_s12 = sld [smem:[%s11296_s0 + %s9704_s7]]   ;;  %s9708_s7 = smov 22  }
  0x1d   :  { %11315 = sst [smem:[#allocation13_spill]] %s9807_s27 }
  0x1e   :  { %11316 = sst [smem:[#allocation14_spill]] %s9812_s4 }
  0x1f   :  { %s9822_s6 = sld [smem:[%s11296_s0 + %s9705_s15]]   ;;  %s9709_s15 = smov 23  }
  0x20   :  { %s9827_s27 = sld [smem:[%s11296_s0 + %s9706_s22]]   ;;  %s9710_s22 = smov 24  }
  0x21   :  { %s9832_s4 = sld [smem:[%s11296_s0 + %s9707_s28]]   ;;  %s9711_s28 = smov 25  }
  0x22   :  { %11317 = sst [smem:[#allocation15_spill]] %s9817_s12 }
  0x23   :  { %s9837_s12 = sld [smem:[%s11296_s0 + %s9708_s7]]   ;;  %s9712_s7 = smov 26  }
  0x25   :  { %11318 = sst [smem:[#allocation16_spill]] %s9822_s6 }
  0x26   :  { %11319 = sst [smem:[#allocation17_spill]] %s9827_s27 }
  0x27   :  { %11320 = sst [smem:[#allocation18_spill]] %s9832_s4 }
  0x28   :  { %s9842_s6 = sld [smem:[%s11296_s0 + %s9709_s15]]   ;;  %s9713_s15 = smov 27  }
  0x29   :  { %11321 = sst [smem:[#allocation19_spill]] %s9837_s12 }
  0x2a   :  { %s9847_s27 = sld [smem:[%s11296_s0 + %s9710_s22]]   ;;  %s9714_s22 = smov 28  }
  0x2b   :  { %s9852_s4 = sld [smem:[%s11296_s0 + %s9711_s28]]   ;;  %s9715_s28 = smov 29  }
  0x2c   :  { %s9857_s12 = sld [smem:[%s11296_s0 + %s9712_s7]]  }
  0x2e   :  { %11322 = sst [smem:[#allocation20_spill]] %s9842_s6 }
  0x2f   :  { %s9862_s6 = sld [smem:[%s11296_s0 + %s9713_s15]]  }
  0x30   :  { %11323 = sst [smem:[#allocation21_spill]] %s9847_s27 }
  0x31   :  { %11324 = sst [smem:[#allocation22_spill]] %s9852_s4 }
  0x32   :  { %11325 = sst [smem:[#allocation23_spill]] %s9857_s12 }
  0x33   :  { %s9867_s27 = sld [smem:[%s11296_s0 + %s9714_s22]]  }
  0x34   :  { %s9872_s4 = sld [smem:[%s11296_s0 + %s9715_s28]]  }
  0x35   :  { %11326 = sst [smem:[#allocation24_spill]] %s9862_s6 }
  0x36   :  { %64 = vsyncpa [#allocation3], 0 }
  0x37   :  { %66 = vsyncpa [#allocation3 + $0x1], 0  ;;  %s9874_s7 = smov 0   ;;  %s9876_s10 = smov 0  }
  0x38   :  { %s9878_s11 = smov 0   ;;  %s9880_s15 = smov 0  }
  0x39 LB: > { %s11327_s14 = sld [smem:[#allocation10_spill]]  ;;  %s9895_s0 = sadd.s32 4294967295, %s9685_s15   ;;  %s9681_s11 = sphi %s9878_s11, %s11351_s11   ;;  %s9677_s10 = sphi %s9876_s10, %s11350_s10   ;;  %s9673_s7 = sphi %s9874_s7, %s11349_s7   ;;  %s9685_s15 = sphi %s9880_s15, %s11352_s15  }
  0x3a   : > { %s11328_s9 = sld [smem:[#allocation6_spill]]  ;;  %s8258_s16 = sadd.s32 4294967294, %s9685_s15  }
  0x3b   : > { %s11329_s6 = sld [smem:[#allocation24_spill]]  ;;  %s9899_s18 = sadd.s32 1, %s9685_s15  }
  0x3c   : > { %s693_s22 = sadd.s32 1, %s9681_s11  ;;  %s690_s23 = ssub.s32 %s9685_s15, %s9899_s18 }
  0x3d   : > { %p703_p0 = scmp.ne.s32.totalorder %s9681_s11, %s9677_s10  ;;  %p691_p1 = scmp.eq.s32.totalorder %s690_s23, 0 }
  0x3e   : > { %p704_p2 = scmp.eq.s32.totalorder %s9895_s0, 1  ;;  %p709_p3 = scmp.ne.s32.totalorder %s9677_s10, %s9673_s7 }
  0x3f   : > { %p710_p4 = scmp.eq.s32.totalorder %s8258_s16, 1  ;;  %p8261_p7 = scmp.ge.s32.totalorder %s9685_s15, 1 }
  0x40   : > { %s9910_s26 = scalar_select %p691_p1, %s9681_s11, %s693_s22  }
  0x41   : > { %p9912_p5 = por %p704_p2, %p703_p0  ;;  %p9916_p6 = por %p710_p4, %p709_p3 }
  0x42   : > { %p819_p8 = scmp.lt.s32.totalorder %s9685_s15, 3 }
  0x44   : > { %p820_p9 = pnand %p8261_p7, %p819_p8 }
  0x45   : > { %p893_p10 = scmp.lt.s32.totalorder (!%p820_p9), %s9895_s0, 1  ;;  %s11332_s5 = sld [smem:[#allocation5_spill]] (!%p820_p9) }
  0x46   : > { %823 = sbr.rel (%p820_p9) target bundleno = 4988 (0x137c), region = 136  ;;  %s11333_s13 = sld [smem:[#allocation7_spill]] (!%p820_p9) }
  0x47   : > { %s11334_s3 = sld [smem:[#allocation8_spill]] (!%p820_p9) }
  0x48   : > { %s11335_s8 = sld [smem:[#allocation9_spill]] (!%p820_p9) }
  0x49   : > { %s11336_s23 = sld [smem:[#allocation11_spill]] (!%p820_p9) }
  0x4a   : > { %s11348_s12 = sld [smem:[#allocation23_spill]] (!%p820_p9) }
  0x4b   : > { %v899_v0 = vld [vmem:[%s11328_s9 + $0x8] sm:$0xff]  ;;  %v9716_v1 = vmov 0.0   ;;  %v898_v2 = vld [vmem:[%s11328_s9] sm:$0xff]  ;;  %vm9717_vm0 = vmmov 0   ;;  %v984_v3 = vld [vmem:[%s9742_s17 + $0x18] sm:$0xff]  ;;  %s894_s2 = scalar_select %p893_p10, %s9895_s0, 1 }
  0x4c   : > { %9113 = vmatprep.subr.mxu0 %v9716_v1  ;;  %9117 = vmatprep.mubr.msk.f32.mxu0 %vm9717_vm0, %v9716_v1  ;;  %v983_v4 = vld [vmem:[%s9742_s17 + $0x10] sm:$0xff]  ;;  %vm907_vm1 = vcmask 130048   ;;  %v982_v5 = vld [vmem:[%s9742_s17 + $0x8] sm:$0xff]  ;;  %v988_v6 = vld [vmem:[%s9742_s17 + $0x38] sm:$0xff]  ;;  %vm1113_vm2 = vcmask 261120   ;;  %vm1957_vm3 = vcmask 64512  }
  0x4d   : > { %9114 = vmatpush3.msra.mxu0 %v899_v0  ;;  %9120 = vmatprep.subr.mxu1 %v9716_v1  ;;  %s8262_s16 = sshll.u32 %s894_s2, 3  ;;  %v987_v8 = vld [vmem:[%s9742_s17 + $0x30] sm:$0xff]  ;;  %v986_v9 = vld [vmem:[%s9742_s17 + $0x28] sm:$0xff]  ;;  %v981_v10 = vld [vmem:[%s9742_s17] sm:$0xff]  ;;  %s11337_s2 = sld [smem:[#allocation12_spill]]  ;;  %vm8159_vm4 = vcmask 24576  }
  0x4e   : > { %9115 = vmatprep.subr.mxu0 %v9716_v1  ;;  %9121 = vmatpush3.msra.mxu1 %v984_v3  ;;  %s896_s22 = scalar_lea.vmem %s11332_s5, %s8262_s16  ;;  %v985_v11 = vld [vmem:[%s9742_s17 + $0x20] sm:$0xff]  ;;  %v992_v15 = vld [vmem:[%s9742_s17 + $0x58] sm:$0xff]  ;;  %v991_v18 = vld [vmem:[%s9742_s17 + $0x50] sm:$0xff]  ;;  %s11338_s16 = sld [smem:[#allocation13_spill]] }
  0x4f   : > { %9116 = vmatpush3.msra.mxu0 %v898_v2  ;;  %9122 = vmatprep.subr.mxu1 %v9716_v1  ;;  %v897_v7 = vld [vmem:[%s896_s22] sm:$0xff]  ;;  %v996_v16 = vld [vmem:[%s9742_s17 + $0x78] sm:$0xff]  ;;  %v995_v19 = vld [vmem:[%s9742_s17 + $0x70] sm:$0xff]  ;;  %s11339_s22 = sld [smem:[#allocation14_spill]]  ;;  %s8374_s5 = sshll.u32 %s9895_s0, 4 }
  0x50   : > { %9131 = vmatprep.subr.mxu0 %v9716_v1  ;;  %9123 = vmatpush3.msra.mxu1 %v983_v4  ;;  %v8263_v12 = vld [vmem:[%s11333_s13] ss:$0 sm:$0xff]  ;;  %v990_v20 = vld [vmem:[%s9742_s17 + $0x48] sm:$0xff]  ;;  %v1000_v24 = vld [vmem:[%s9742_s17 + $0x98] sm:$0xff]  ;;  %s11265_s9 = scalar_lea.hbm %s9872_s4, %s8374_s5  ;;  %s9718_s13 = smov [#allocation2]  }
  0x51   : > { %9124 = vmatprep.subr.mxu1 %v9716_v1  ;;  %9128 = vmatprep.mubr.msk.f32.mxu1 %vm9717_vm0, %v9716_v1  ;;  %v994_v21 = vld [vmem:[%s9742_s17 + $0x68] sm:$0xff]  ;;  %v989_v22 = vld [vmem:[%s9742_s17 + $0x40] sm:$0xff]  ;;  %v1004_v25 = vld [vmem:[%s9742_s17 + $0xb8] sm:$0xff] }
  0x52   : > { %9118 = vmatmul.mubr.msk.f32.vlgmr.msra.gmra.mxu0 %vm907_vm1, %v897_v7  ;;  %9125 = vmatpush3.msra.mxu1 %v982_v5  ;;  %v993_v23 = vld [vmem:[%s9742_s17 + $0x60] sm:$0xff]  ;;  %v999_v26 = vld [vmem:[%s9742_s17 + $0x90] sm:$0xff]  ;;  %v998_v28 = vld [vmem:[%s9742_s17 + $0x88] sm:$0xff] }
  0x53   : > { %9132 = vmatpush3.msra.mxu0 %v988_v6  ;;  %9126 = vmatprep.subr.mxu1 %v9716_v1  ;;  %v1003_v27 = vld [vmem:[%s9742_s17 + $0xb0] sm:$0xff]  ;;  %v1002_v29 = vld [vmem:[%s9742_s17 + $0xa8] sm:$0xff]  ;;  %v997_v30 = vld [vmem:[%s9742_s17 + $0x80] sm:$0xff] }
  0x54   : > { %9133 = vmatprep.subr.mxu0 %v9716_v1  ;;  %9139 = vmatprep.mubr.msk.f32.mxu0 %vm9717_vm0, %v9716_v1  ;;  %v1001_v31 = vld [vmem:[%s9742_s17 + $0xa0] sm:$0xff]  ;;  %v1008_v32 = vld [vmem:[%s9742_s17 + $0xd8] sm:$0xff]  ;;  %v1007_v34 = vld [vmem:[%s9742_s17 + $0xd0] sm:$0xff] }
  0x55   : > { %9134 = vmatpush3.msra.mxu0 %v987_v8  ;;  %9127 = vmatpush3.msra.mxu1 %v981_v10  ;;  %v1012_v33 = vld [vmem:[%s9742_s17 + $0xf8] sm:$0xff]  ;;  %v1011_v35 = vld [vmem:[%s9742_s17 + $0xf0] sm:$0xff]  ;;  %v1006_v36 = vld [vmem:[%s9742_s17 + $0xc8] sm:$0xff] }
  0x56   : > { %9135 = vmatprep.subr.mxu0 %v9716_v1  ;;  %9142 = vmatprep.subr.mxu1 %v9716_v1  ;;  %v1010_v37 = vld [vmem:[%s9742_s17 + $0xe8] sm:$0xff]  ;;  %v1005_v38 = vld [vmem:[%s9742_s17 + $0xc0] sm:$0xff]  ;;  %v1016_v40 = vld [vmem:[%s9742_s17 + $0x118] sm:$0xff] }
  0x57   : > { %9136 = vmatpush3.msra.mxu0 %v986_v9  ;;  %v1009_v39 = vld [vmem:[%s9742_s17 + $0xe0] sm:$0xff]  ;;  %v1020_v41 = vld [vmem:[%s9742_s17 + $0x138] sm:$0xff]  ;;  %v1015_v42 = vld [vmem:[%s9742_s17 + $0x110] sm:$0xff] }
  0x58   : > { %9137 = vmatprep.subr.mxu0 %v9716_v1  ;;  %v1019_v43 = vld [vmem:[%s9742_s17 + $0x130] sm:$0xff]  ;;  %v1014_v44 = vld [vmem:[%s9742_s17 + $0x108] sm:$0xff]  ;;  %v1013_v46 = vld [vmem:[%s9742_s17 + $0x100] sm:$0xff] }
  0x59   : > { %9138 = vmatpush3.msra.mxu0 %v985_v11  ;;  %v1018_v45 = vld [vmem:[%s9742_s17 + $0x128] sm:$0xff]  ;;  %v1017_v47 = vld [vmem:[%s9742_s17 + $0x120] sm:$0xff]  ;;  %v1024_v48 = vld [vmem:[%s9742_s17 + $0x158] sm:$0xff] }
  0x5a   : > { %9153 = vmatprep.subr.mxu0 %v9716_v1  ;;  %v1028_v49 = vld [vmem:[%s9742_s17 + $0x178] sm:$0xff]  ;;  %v1023_v50 = vld [vmem:[%s9742_s17 + $0x150] sm:$0xff]  ;;  %v1022_v52 = vld [vmem:[%s9742_s17 + $0x148] sm:$0xff] }
  0x5b   : > { %v1027_v51 = vld [vmem:[%s9742_s17 + $0x170] sm:$0xff]  ;;  %v1026_v53 = vld [vmem:[%s9742_s17 + $0x168] sm:$0xff]  ;;  %v1021_v54 = vld [vmem:[%s9742_s17 + $0x140] sm:$0xff] }
  0x5c   : > { %v1025_v55 = vld [vmem:[%s9742_s17 + $0x160] sm:$0xff] }
  0x5d   : > { %v8269_v0 = vld [vmem:[%s9747_s21 + $0x4] ss:$0 sm:$0xff]  ;;  %v8270_v2 = vld [vmem:[%s9747_s21 + $0x5] ss:$0 sm:$0xff]  ;;  %v8265_v5 = vld [vmem:[%s9747_s21] ss:$0 sm:$0xff] }
  0x5e   : > { %v8266_v6 = vld [vmem:[%s9747_s21 + $0x1] ss:$0 sm:$0xff] }
 0x112   : > { %v977_v13 = vpop.f32.mrf.mxu0 }
 0x113   : > { %v9954_v14 = vadd.f32 %v8263_v12, %v977_v13  ;;  %v8271_v13 = vld [vmem:[%s9747_s21 + $0x6] ss:$0 sm:$0xff] }
 0x114   : > { %v9119_v17 = vpop.f32.mrf.mxu0 }
 0x115   : > { %9129 = vmatmul.mubr.msk.f32.vlgmr.msra.gmra.mxu1 %vm1113_vm2, %v9954_v14  ;;  %9140 = vmatmul.mubr.msk.f32.vlgmr.msra.gmra.mxu0 %vm1113_vm2, %v9954_v14 }
 0x116   : > { %9143 = vmatpush3.msra.mxu1 %v992_v15  ;;  %9154 = vmatpush3.msra.mxu0 %v996_v16  ;;  %v8272_v15 = vld [vmem:[%s9747_s21 + $0x7] ss:$0 sm:$0xff] }
 0x117   : > { %9144 = vmatprep.subr.mxu1 %v9716_v1  ;;  %9155 = vmatprep.subr.mxu0 %v9716_v1 }
 0x118   : > { %9145 = vmatpush3.msra.mxu1 %v991_v18  ;;  %9156 = vmatpush3.msra.mxu0 %v995_v19  ;;  %v8267_v18 = vld [vmem:[%s9747_s21 + $0x2] ss:$0 sm:$0xff]  ;;  %v8268_v19 = vld [vmem:[%s9747_s21 + $0x3] ss:$0 sm:$0xff] }
 0x119   : > { %9146 = vmatprep.subr.mxu1 %v9716_v1  ;;  %9157 = vmatprep.subr.mxu0 %v9716_v1 }
 0x11a   : > { %9147 = vmatpush3.msra.mxu1 %v990_v20  ;;  %9158 = vmatpush3.msra.mxu0 %v994_v21 }
 0x11b   : > { %9148 = vmatprep.subr.mxu1 %v9716_v1  ;;  %9159 = vmatprep.subr.mxu0 %v9716_v1 }
 0x11c   : > { %9149 = vmatpush3.msra.mxu1 %v989_v22  ;;  %9150 = vmatprep.mubr.msk.f32.mxu1 %vm9717_vm0, %v9716_v1 }
 0x11d   : > { %9160 = vmatpush3.msra.mxu0 %v993_v23  ;;  %9161 = vmatprep.mubr.msk.f32.mxu0 %vm9717_vm0, %v9716_v1 }
 0x11e   : > { %9151 = vmatmul.mubr.msk.f32.vlgmr.msra.gmra.mxu1 %vm1113_vm2, %v9954_v14  ;;  %9162 = vmatmul.mubr.msk.f32.vlgmr.msra.gmra.mxu0 %vm1113_vm2, %v9954_v14 }
 0x11f   : > { %9164 = vmatprep.subr.mxu1 %v9716_v1  ;;  %9175 = vmatprep.subr.mxu0 %v9716_v1 }
 0x120   : > { %9165 = vmatpush3.msra.mxu1 %v1000_v24  ;;  %9176 = vmatpush3.msra.mxu0 %v1004_v25 }
 0x121   : > { %9166 = vmatprep.subr.mxu1 %v9716_v1  ;;  %9177 = vmatprep.subr.mxu0 %v9716_v1 }
 0x122   : > { %9167 = vmatpush3.msra.mxu1 %v999_v26  ;;  %9178 = vmatpush3.msra.mxu0 %v1003_v27  ;;  %v8273_v26 = vld [vmem:[%s9747_s21 + $0x8] ss:$0 sm:$0xff]  ;;  %v8274_v27 = vld [vmem:[%s9747_s21 + $0x9] ss:$0 sm:$0xff] }
 0x123   : > { %9168 = vmatprep.subr.mxu1 %v9716_v1  ;;  %9179 = vmatprep.subr.mxu0 %v9716_v1 }
 0x124   : > { %9169 = vmatpush3.msra.mxu1 %v998_v28  ;;  %9180 = vmatpush3.msra.mxu0 %v1002_v29 }
 0x125   : > { %9170 = vmatprep.subr.mxu1 %v9716_v1  ;;  %9181 = vmatprep.subr.mxu0 %v9716_v1 }
 0x126   : > { %9171 = vmatpush3.msra.mxu1 %v997_v30  ;;  %9172 = vmatprep.mubr.msk.f32.mxu1 %vm9717_vm0, %v9716_v1 }
 0x127   : > { %9182 = vmatpush3.msra.mxu0 %v1001_v31  ;;  %9183 = vmatprep.mubr.msk.f32.mxu0 %vm9717_vm0, %v9716_v1 }
 0x128   : > { %9173 = vmatmul.mubr.msk.f32.vlgmr.msra.gmra.mxu1 %vm1113_vm2, %v9954_v14  ;;  %9184 = vmatmul.mubr.msk.f32.vlgmr.msra.gmra.mxu0 %vm1113_vm2, %v9954_v14 }
 0x129   : > { %9186 = vmatprep.subr.mxu1 %v9716_v1  ;;  %9197 = vmatprep.subr.mxu0 %v9716_v1 }
 0x12a   : > { %9187 = vmatpush3.msra.mxu1 %v1008_v32  ;;  %9198 = vmatpush3.msra.mxu0 %v1012_v33 }
 0x12b   : > { %9188 = vmatprep.subr.mxu1 %v9716_v1  ;;  %9199 = vmatprep.subr.mxu0 %v9716_v1 }
 0x12c   : > { %9189 = vmatpush3.msra.mxu1 %v1007_v34  ;;  %9200 = vmatpush3.msra.mxu0 %v1011_v35 }
 0x12d   : > { %9190 = vmatprep.subr.mxu1 %v9716_v1  ;;  %9201 = vmatprep.subr.mxu0 %v9716_v1 }
 0x12e   : > { %9191 = vmatpush3.msra.mxu1 %v1006_v36  ;;  %9202 = vmatpush3.msra.mxu0 %v1010_v37 }
 0x12f   : > { %9192 = vmatprep.subr.mxu1 %v9716_v1  ;;  %9203 = vmatprep.subr.mxu0 %v9716_v1 }
 0x130   : > { %9193 = vmatpush3.msra.mxu1 %v1005_v38  ;;  %9194 = vmatprep.mubr.msk.f32.mxu1 %vm9717_vm0, %v9716_v1 }
 0x131   : > { %9204 = vmatpush3.msra.mxu0 %v1009_v39  ;;  %9205 = vmatprep.mubr.msk.f32.mxu0 %vm9717_vm0, %v9716_v1 }
 0x132   : > { %9195 = vmatmul.mubr.msk.f32.vlgmr.msra.gmra.mxu1 %vm1113_vm2, %v9954_v14  ;;  %9206 = vmatmul.mubr.msk.f32.vlgmr.msra.gmra.mxu0 %vm1113_vm2, %v9954_v14 }
 0x133   : > { %9208 = vmatprep.subr.mxu1 %v9716_v1  ;;  %9219 = vmatprep.subr.mxu0 %v9716_v1 }
 0x134   : > { %9209 = vmatpush3.msra.mxu1 %v1016_v40  ;;  %9220 = vmatpush3.msra.mxu0 %v1020_v41 }
 0x135   : > { %9210 = vmatprep.subr.mxu1 %v9716_v1  ;;  %9221 = vmatprep.subr.mxu0 %v9716_v1 }
 0x136   : > { %9211 = vmatpush3.msra.mxu1 %v1015_v42  ;;  %9222 = vmatpush3.msra.mxu0 %v1019_v43 }
 0x137   : > { %9212 = vmatprep.subr.mxu1 %v9716_v1  ;;  %9223 = vmatprep.subr.mxu0 %v9716_v1 }
 0x138   : > { %9213 = vmatpush3.msra.mxu1 %v1014_v44  ;;  %9224 = vmatpush3.msra.mxu0 %v1018_v45 }
 0x139   : > { %9214 = vmatprep.subr.mxu1 %v9716_v1  ;;  %9225 = vmatprep.subr.mxu0 %v9716_v1 }
 0x13a   : > { %9215 = vmatpush3.msra.mxu1 %v1013_v46  ;;  %9216 = vmatprep.mubr.msk.f32.mxu1 %vm9717_vm0, %v9716_v1 }
 0x13b   : > { %9226 = vmatpush3.msra.mxu0 %v1017_v47  ;;  %9227 = vmatprep.mubr.msk.f32.mxu0 %vm9717_vm0, %v9716_v1 }
 0x13c   : > { %9217 = vmatmul.mubr.msk.f32.vlgmr.msra.gmra.mxu1 %vm1113_vm2, %v9954_v14  ;;  %9228 = vmatmul.mubr.msk.f32.vlgmr.msra.gmra.mxu0 %vm1113_vm2, %v9954_v14 }
 0x13d   : > { %9230 = vmatprep.subr.mxu1 %v9716_v1  ;;  %9241 = vmatprep.subr.mxu0 %v9716_v1 }
 0x13e   : > { %9231 = vmatpush3.msra.mxu1 %v1024_v48  ;;  %9242 = vmatpush3.msra.mxu0 %v1028_v49 }
 0x13f   : > { %9232 = vmatprep.subr.mxu1 %v9716_v1  ;;  %9243 = vmatprep.subr.mxu0 %v9716_v1 }
 0x140   : > { %9233 = vmatpush3.msra.mxu1 %v1023_v50  ;;  %9244 = vmatpush3.msra.mxu0 %v1027_v51 }
 0x141   : > { %9234 = vmatprep.subr.mxu1 %v9716_v1  ;;  %9245 = vmatprep.subr.mxu0 %v9716_v1 }
 0x142   : > { %9235 = vmatpush3.msra.mxu1 %v1022_v52  ;;  %9246 = vmatpush3.msra.mxu0 %v1026_v53 }
 0x143   : > { %9236 = vmatprep.subr.mxu1 %v9716_v1  ;;  %9247 = vmatprep.subr.mxu0 %v9716_v1 }
 0x144   : > { %9237 = vmatpush3.msra.mxu1 %v1021_v54  ;;  %9238 = vmatprep.mubr.msk.f32.mxu1 %vm9717_vm0, %v9716_v1 }
 0x145   : > { %9248 = vmatpush3.msra.mxu0 %v1025_v55  ;;  %9249 = vmatprep.mubr.msk.f32.mxu0 %vm9717_vm0, %v9716_v1 }
 0x146   : > { %9239 = vmatmul.mubr.msk.f32.vlgmr.msra.gmra.mxu1 %vm1113_vm2, %v9954_v14  ;;  %9250 = vmatmul.mubr.msk.f32.vlgmr.msra.gmra.mxu0 %vm1113_vm2, %v9954_v14 }
 0x147   : > { %9252 = vmatprep.subr.mxu1 %v9716_v1  ;;  %9257 = vmatprep.subr.mxu0 %v9716_v1 }
 0x148   : > { %9254 = vmatprep.mubr.msk.f32.mxu1 %vm9717_vm0, %v9716_v1  ;;  %9259 = vmatprep.mubr.msk.f32.mxu0 %vm9717_vm0, %v9716_v1 }
 0x1d5   : > { %v1183_v56 = vpop.f32.mrf.mxu1  ;;  %v1253_v57 = vpop.f32.mrf.mxu0 }
 0x1d6   : > { %v1184_v11 = vadd.f32 %v8265_v5, %v1183_v56  ;;  %v1254_v12 = vadd.f32 %v8266_v6, %v1253_v57 }
 0x1d7   : > { %v9130_v58 = vpop.f32.mrf.mxu1  ;;  %v9141_v59 = vpop.f32.mrf.mxu0 }
 0x1de   : > { %v1323_v60 = vpop.f32.mrf.mxu1  ;;  %v1393_v61 = vpop.f32.mrf.mxu0 }
 0x1df   : > { %v1324_v24 = vadd.f32 %v8267_v18, %v1323_v60  ;;  %v1394_v25 = vadd.f32 %v8268_v19, %v1393_v61 }
 0x1e0   : > { %v9152_v62 = vpop.f32.mrf.mxu1  ;;  %v9163_v63 = vpop.f32.mrf.mxu0 }
 0x1e8   : > { %v1463_v3 = vpop.f32.mrf.mxu1  ;;  %v1533_v4 = vpop.f32.mrf.mxu0 }
 0x1e9   : > { %v1464_v7 = vadd.f32 %v8269_v0, %v1463_v3  ;;  %v1534_v8 = vadd.f32 %v8270_v2, %v1533_v4 }
 0x1ea   : > { %v9174_v9 = vpop.f32.mrf.mxu1  ;;  %v9185_v10 = vpop.f32.mrf.mxu0 }
 0x1eb   : > { %9253 = vmatpush3.xpose.msk.msra.mxu1 %vm1957_vm3, %v1464_v7  ;;  %9258 = vmatpush3.xpose.msk.msra.mxu0 %vm1957_vm3, %v1534_v8 }
 0x1ec   : > { %9262 = vmatprep.subr.mxu1 %v9716_v1  ;;  %9267 = vmatprep.subr.mxu0 %v9716_v1 }
 0x1ee   : > { %9255 = vmatmul.mubr.msk.f32.vlgmr.msra.gmra.mxu1 %vm1957_vm3, %v1184_v11  ;;  %9260 = vmatmul.mubr.msk.f32.vlgmr.msra.gmra.mxu0 %vm1957_vm3, %v1254_v12 }
 0x1ef   : > { %9264 = vmatprep.mubr.msk.f32.mxu1 %vm9717_vm0, %v9716_v1  ;;  %9269 = vmatprep.mubr.msk.f32.mxu0 %vm9717_vm0, %v9716_v1 }
 0x1f2   : > { %v1603_v16 = vpop.f32.mrf.mxu1  ;;  %v1673_v17 = vpop.f32.mrf.mxu0 }
 0x1f3   : > { %v1604_v20 = vadd.f32 %v8271_v13, %v1603_v16  ;;  %v1674_v21 = vadd.f32 %v8272_v15, %v1673_v17  ;;  %v8275_v15 = vld [vmem:[%s9747_s21 + $0xa] ss:$0 sm:$0xff] }
 0x1f4   : > { %v9196_v22 = vpop.f32.mrf.mxu1  ;;  %v9207_v23 = vpop.f32.mrf.mxu0 }
 0x1f5   : > { %9263 = vmatpush3.xpose.msk.msra.mxu1 %vm1957_vm3, %v1604_v20  ;;  %9268 = vmatpush3.xpose.msk.msra.mxu0 %vm1957_vm3, %v1674_v21  ;;  %v8276_v20 = vld [vmem:[%s9747_s21 + $0xb] ss:$0 sm:$0xff] }
 0x1f6   : > { %9272 = vmatprep.subr.mxu1 %v9716_v1  ;;  %9277 = vmatprep.subr.mxu0 %v9716_v1 }
 0x1f8   : > { %9265 = vmatmul.mubr.msk.f32.vlgmr.msra.gmra.mxu1 %vm1957_vm3, %v1324_v24  ;;  %9270 = vmatmul.mubr.msk.f32.vlgmr.msra.gmra.mxu0 %vm1957_vm3, %v1394_v25 }
 0x1f9   : > { %9274 = vmatprep.mubr.msk.f32.mxu1 %vm9717_vm0, %v9716_v1  ;;  %9279 = vmatprep.mubr.msk.f32.mxu0 %vm9717_vm0, %v9716_v1 }
 0x1fc   : > { %v1743_v28 = vpop.f32.mrf.mxu1  ;;  %v1813_v29 = vpop.f32.mrf.mxu0 }
 0x1fd   : > { %v1744_v30 = vadd.f32 %v8273_v26, %v1743_v28  ;;  %v1814_v31 = vadd.f32 %v8274_v27, %v1813_v29  ;;  %v2602_v28 = vld [vmem:[%s9752_s25] sm:$0xff]  ;;  %v2603_v29 = vld [vmem:[%s9752_s25 + $0x8] sm:$0xff] }
 0x1fe   : > { %v9218_v32 = vpop.f32.mrf.mxu1  ;;  %v9229_v33 = vpop.f32.mrf.mxu0 }
 0x1ff   : > { %9273 = vmatpush3.msra.mxu1 %v1744_v30  ;;  %9278 = vmatpush3.msra.mxu0 %v1814_v31  ;;  %v2604_v30 = vld [vmem:[%s9752_s25 + $0x10] sm:$0xff]  ;;  %v2605_v33 = vld [vmem:[%s9752_s25 + $0x18] sm:$0xff] }
 0x200   : > { %9282 = vmatprep.subr.mxu1 %v9716_v1  ;;  %9287 = vmatprep.subr.mxu0 %v9716_v1 }
 0x206   : > { %v10116_v34 = vpop.f32.mrf.mxu1  ;;  %v10118_v35 = vpop.f32.mrf.mxu0 }
 0x207   : > { %v1884_v19 = vadd.f32 %v8275_v15, %v10116_v34  ;;  %v1954_v23 = vadd.f32 %v8276_v20, %v10118_v35  ;;  %v2944_v15 = vld [vmem:[%s11327_s14] sm:$0xff] }
 0x208   : > { %v9240_v36 = vpop.f32.mrf.mxu1  ;;  %v9251_v37 = vpop.f32.mrf.mxu0 }
 0x2ae   : > { %v2030_v38 = vpop.f32.mrf.mxu1  ;;  %v2106_v39 = vpop.f32.mrf.mxu0 }
 0x2af   : > { %v2262_v40 = vmul.f32 0.35355338, %v2030_v38  ;;  %v2263_v43 = vmul.f32 0.35355338, %v2106_v39 }
 0x2b0   : > { %v9256_v41 = vpop.f32.mrf.mxu1  ;;  %v9261_v42 = vpop.f32.mrf.mxu0 }
 0x2b1   : > { %v2266_v44 = vsel %vm1957_vm3, %v2262_v40, -inf  ;;  %v2269_v45 = vsel %vm1957_vm3, %v2263_v43, -inf }
 0x2b2   : > { %2267 = vmax.xlane.f32.xlu0 %v2266_v44 }
 0x2b6   : > { %2270 = vmax.xlane.f32.xlu0 %v2269_v45 }
 0x2b8   : > { %v2182_v46 = vpop.f32.mrf.mxu1  ;;  %v2258_v47 = vpop.f32.mrf.mxu0 }
 0x2b9   : > { %v2264_v48 = vmul.f32 0.35355338, %v2182_v46  ;;  %v2265_v51 = vmul.f32 0.35355338, %v2258_v47 }
 0x2ba   : > { %v9266_v49 = vpop.f32.mrf.mxu1  ;;  %v9271_v50 = vpop.f32.mrf.mxu0 }
 0x2bb   : > { %v2272_v52 = vsel %vm1957_vm3, %v2264_v48, -inf  ;;  %v2275_v53 = vsel %vm1957_vm3, %v2265_v51, -inf }
 0x2bc   : > { %2273 = vmax.xlane.f32.xlu1 %v2272_v52 }
 0x2c0   : > { %2276 = vmax.xlane.f32.xlu1 %v2275_v53  ;;  %v8305_v53 = vld [vmem:[%s9757_s29] ss:$0 sm:$0xff] }
 0x33b   : > { %v2268_v54 = vpop.xlane.xlu0 %2267 }
 0x33c   : > { %v2278_v55 = vsub.f32 %v2262_v40, %v2268_v54 }
 0x33e   : > { %v2282_v56 = vmul.f32 1.442695, %v2278_v55 }
 0x33f   : > { %v2271_v57 = vpop.xlane.xlu0 %2270 }
 0x340   : > { %9585 = vpow2.f32 %v2282_v56  ;;  %v2279_v58 = vsub.f32 %v2263_v43, %v2271_v57 }
 0x342   : > { %v2284_v59 = vmul.f32 1.442695, %v2279_v58 }
 0x344   : > { %9587 = vpow2.f32 %v2284_v59 }
 0x345   : > { %v2274_v60 = vpop.xlane.xlu1 %2273 }
 0x346   : > { %v2280_v61 = vsub.f32 %v2264_v48, %v2274_v60 }
 0x348   : > { %v2286_v62 = vmul.f32 1.442695, %v2280_v61 }
 0x349   : > { %v2277_v63 = vpop.xlane.xlu1 %2276 }
 0x34a   : > { %9589 = vpow2.f32 %v2286_v62  ;;  %v2281_v0 = vsub.f32 %v2265_v51, %v2277_v63 }
 0x34c   : > { %v2288_v2 = vmul.f32 1.442695, %v2281_v0  ;;  %v2993_v0 = vld [vmem:[%s11327_s14 + $0x188] sm:$0xff] }
 0x34d   : > { %v9586_v3 = vpop.eup %9585 }
 0x34e   : > { %9591 = vpow2.f32 %v2288_v2  ;;  %v2290_v4 = vsel %vm1957_vm3, %v9586_v3, 0.0  ;;  %v2995_v2 = vld [vmem:[%s11327_s14 + $0x198] sm:$0xff] }
 0x34f   : > { %2291 = vadd.xlane.f32.xlu0 %v2290_v4  ;;  %v2977_v4 = vld [vmem:[%s11327_s14 + $0x108] sm:$0xff] }
 0x351   : > { %v9588_v5 = vpop.eup %9587 }
 0x352   : > { %v2293_v6 = vsel %vm1957_vm3, %v9588_v5, 0.0 }
 0x353   : > { %2294 = vadd.xlane.f32.xlu1 %v2293_v6  ;;  %v2976_v6 = vld [vmem:[%s11327_s14 + $0x100] sm:$0xff] }
 0x357   : > { %v9590_v7 = vpop.eup %9589 }
 0x358   : > { %v2296_v8 = vsel %vm1957_vm3, %v9590_v7, 0.0 }
 0x359   : > { %2297 = vadd.xlane.f32.xlu0 %v2296_v8  ;;  %v2961_v8 = vld [vmem:[%s11327_s14 + $0x88] sm:$0xff] }
 0x35b   : > { %v9592_v9 = vpop.eup %9591 }
 0x35c   : > { %v2299_v10 = vsel %vm1957_vm3, %v9592_v9, 0.0 }
 0x35d   : > { %2300 = vadd.xlane.f32.xlu1 %v2299_v10  ;;  %v2960_v10 = vld [vmem:[%s11327_s14 + $0x80] sm:$0xff] }
 0x3d8   : > { %v2292_v11 = vpop.xlane.xlu0 %2291 }
 0x3d9   : > { %9593 = vrcp.f32 %v2292_v11  ;;  %v2962_v11 = vld [vmem:[%s11327_s14 + $0x90] sm:$0xff] }
 0x3dc   : > { %v2295_v12 = vpop.xlane.xlu1 %2294 }
 0x3dd   : > { %9595 = vrcp.f32 %v2295_v12  ;;  %v2945_v12 = vld [vmem:[%s11327_s14 + $0x8] sm:$0xff] }
 0x3e2   : > { %v2298_v13 = vpop.xlane.xlu0 %2297 }
 0x3e3   : > { %9597 = vrcp.f32 %v2298_v13  ;;  %v2947_v13 = vld [vmem:[%s11327_s14 + $0x18] sm:$0xff] }
 0x3e6   : > { %v9594_v16 = vpop.eup %9593  ;;  %v2301_v17 = vpop.xlane.xlu1 %2300 }
 0x3e7   : > { %9599 = vrcp.f32 %v2301_v17  ;;  %v2303_v18 = vmul.f32 %v9594_v16, %v9586_v3  ;;  %v2994_v3 = vld [vmem:[%s11327_s14 + $0x190] sm:$0xff]  ;;  %v2997_v17 = vld [vmem:[%s11327_s14 + $0x1a8] sm:$0xff] }
 0x3e8   : > { %v2946_v16 = vld [vmem:[%s11327_s14 + $0x10] sm:$0xff] }
 0x3e9   : > { %9275 = vmatmul.mubr.msk.f32.vlgmr.msra.gmra.mxu1 %vm1957_vm3, %v2303_v18  ;;  %v2999_v18 = vld [vmem:[%s11327_s14 + $0x1b8] sm:$0xff] }
 0x3ea   : > { %v9596_v21 = vpop.eup %9595  ;;  %9283 = vmatpush3.msra.mxu1 %v1884_v19  ;;  %9284 = vmatprep.mubr.msk.f32.mxu1 %vm9717_vm0, %v9716_v1 }
 0x3eb   : > { %v2305_v22 = vmul.f32 %v9596_v21, %v9588_v5  ;;  %9292 = vmatprep.subr.mxu1 %v9716_v1  ;;  %v2979_v5 = vld [vmem:[%s11327_s14 + $0x118] sm:$0xff] }
 0x3ed   : > { %9280 = vmatmul.mubr.msk.f32.vlgmr.msra.gmra.mxu0 %vm1957_vm3, %v2305_v22 }
 0x3ee   : > { %9288 = vmatpush3.msra.mxu0 %v1954_v23  ;;  %9289 = vmatprep.mubr.msk.f32.mxu0 %vm9717_vm0, %v9716_v1  ;;  %v8306_v23 = vld [vmem:[%s11334_s3] ss:$0 sm:$0xff]  ;;  %s11343_s3 = sld [smem:[#allocation17_spill]] }
 0x3ef   : > { %9297 = vmatprep.subr.mxu0 %v9716_v1 }
 0x3f0   : > { %v9598_v24 = vpop.eup %9597 }
 0x3f1   : > { %v2307_v25 = vmul.f32 %v9598_v24, %v9590_v7  ;;  %v2978_v7 = vld [vmem:[%s11327_s14 + $0x110] sm:$0xff] }
 0x3f3   : > { %9285 = vmatmul.mubr.msk.f32.vlgmr.msra.gmra.mxu1 %vm1957_vm3, %v2307_v25  ;;  %v8307_v25 = vld [vmem:[%s11335_s8] ss:$0 sm:$0xff] }
 0x3f4   : > { %v9600_v26 = vpop.eup %9599  ;;  %9294 = vmatprep.mubr.msk.f32.mxu1 %vm9717_vm0, %v9716_v1  ;;  %9293 = vmatpush3.msra.mxu1 %v2602_v28  ;;  %v2996_v28 = vld [vmem:[%s11327_s14 + $0x1a0] sm:$0xff] }
 0x3f5   : > { %v2309_v27 = vmul.f32 %v9600_v26, %v9592_v9  ;;  %9302 = vmatprep.subr.mxu1 %v9716_v1  ;;  %v2963_v9 = vld [vmem:[%s11327_s14 + $0x98] sm:$0xff] }
 0x3f7   : > { %9290 = vmatmul.mubr.msk.f32.vlgmr.msra.gmra.mxu0 %vm1957_vm3, %v2309_v27 }
 0x3f8   : > { %9299 = vmatprep.mubr.msk.f32.mxu0 %vm9717_vm0, %v9716_v1  ;;  %9298 = vmatpush3.msra.mxu0 %v2603_v29  ;;  %v2998_v29 = vld [vmem:[%s11327_s14 + $0x1b0] sm:$0xff] }
 0x3f9   : > { %9307 = vmatprep.subr.mxu0 %v9716_v1 }
 0x4a9   : > { %v2379_v31 = vpop.f32.mrf.mxu1 }
 0x4aa   : > { %9295 = vmatmul.mubr.msk.f32.vlgmr.msra.gmra.mxu1 %vm1957_vm3, %v2379_v31  ;;  %v2983_v31 = vld [vmem:[%s11327_s14 + $0x138] sm:$0xff] }
 0x4ab   : > { %v9276_v32 = vpop.f32.mrf.mxu1  ;;  %9303 = vmatpush3.msra.mxu1 %v2604_v30  ;;  %9304 = vmatprep.mubr.msk.f32.mxu1 %vm9717_vm0, %v9716_v1  ;;  %v2981_v30 = vld [vmem:[%s11327_s14 + $0x128] sm:$0xff] }
 0x4ac   : > { %3119 = vmatprep.subr.mxu1 %v2993_v0  ;;  %v2980_v32 = vld [vmem:[%s11327_s14 + $0x120] sm:$0xff] }
 0x4ad   : > { %v2452_v34 = vpop.f32.mrf.mxu0  ;;  %v2988_v0 = vld [vmem:[%s11327_s14 + $0x160] sm:$0xff] }
 0x4ae   : > { %9300 = vmatmul.mubr.msk.f32.vlgmr.msra.gmra.mxu0 %vm1957_vm3, %v2452_v34  ;;  %v2965_v34 = vld [vmem:[%s11327_s14 + $0xa8] sm:$0xff] }
 0x4af   : > { %v9281_v35 = vpop.f32.mrf.mxu0  ;;  %9308 = vmatpush3.msra.mxu0 %v2605_v33  ;;  %9309 = vmatprep.mubr.msk.f32.mxu0 %vm9717_vm0, %v9716_v1  ;;  %v2982_v33 = vld [vmem:[%s11327_s14 + $0x130] sm:$0xff] }
 0x4b0   : > { %3190 = vmatprep.subr.mxu0 %v2995_v2  ;;  %v2967_v35 = vld [vmem:[%s11327_s14 + $0xb8] sm:$0xff]  ;;  %v2990_v2 = vld [vmem:[%s11327_s14 + $0x170] sm:$0xff] }
 0x4b3   : > { %v2525_v36 = vpop.f32.mrf.mxu1 }
 0x4b4   : > { %9305 = vmatmul.mubr.msk.f32.vlgmr.msra.gmra.mxu1 %vm1957_vm3, %v2525_v36  ;;  %v2964_v36 = vld [vmem:[%s11327_s14 + $0xa0] sm:$0xff] }
 0x4b5   : > { %v9286_v37 = vpop.f32.mrf.mxu1  ;;  %3159 = vmatprep.mubr.f32.mxu1 %v9716_v1 }
 0x4b6   : > { %v2966_v37 = vld [vmem:[%s11327_s14 + $0xb0] sm:$0xff] }
 0x4b7   : > { %v2598_v38 = vpop.f32.mrf.mxu0 }
 0x4b8   : > { %9310 = vmatmul.mubr.msk.f32.vlgmr.msra.gmra.mxu0 %vm1957_vm3, %v2598_v38  ;;  %v2949_v38 = vld [vmem:[%s11327_s14 + $0x28] sm:$0xff] }
 0x4b9   : > { %v9291_v39 = vpop.f32.mrf.mxu0  ;;  %3230 = vmatprep.mubr.f32.mxu0 %v9716_v1  ;;  %3191 = vmatpush1.msra.mxu0 %v2994_v3  ;;  %v2975_v3 = vld [vmem:[%s11327_s14 + $0xf8] sm:$0xff] }
 0x4ba   : > { %3192 = vmatprep.subr.mxu0 %v2979_v5  ;;  %v2951_v39 = vld [vmem:[%s11327_s14 + $0x38] sm:$0xff]  ;;  %v2974_v5 = vld [vmem:[%s11327_s14 + $0xf0] sm:$0xff] }
 0x4bb   : > { %3193 = vmatpush1.msra.mxu0 %v2978_v7  ;;  %v2959_v7 = vld [vmem:[%s11327_s14 + $0x78] sm:$0xff] }
 0x4bc   : > { %3194 = vmatprep.subr.mxu0 %v2963_v9  ;;  %v2958_v9 = vld [vmem:[%s11327_s14 + $0x70] sm:$0xff] }
 0x4bd   : > { %3195 = vmatpush1.msra.mxu0 %v2962_v11  ;;  %v3742_v11 = vld [vmem:[%s9782_s24 + $0x1f8] sm:$0xff] }
 0x4be   : > { %3196 = vmatprep.subr.mxu0 %v2947_v13  ;;  %v3726_v13 = vld [vmem:[%s9782_s24 + $0x178] sm:$0xff] }
 0x4bf   : > { %3197 = vmatpush1.msra.mxu0 %v2946_v16  ;;  %v3741_v16 = vld [vmem:[%s9782_s24 + $0x1f0] sm:$0xff] }
 0x4c0   : > { %3332 = vmatprep.subr.mxu0 %v2999_v18  ;;  %v3725_v18 = vld [vmem:[%s9782_s24 + $0x170] sm:$0xff] }
 0x56a   : > { %v2675_v40 = vpop.f32.mrf.mxu1 }
 0x56b   : > { %v2898_v46 = vsel %vm1113_vm2, %v2675_v40, 0.0  ;;  %v2948_v40 = vld [vmem:[%s11327_s14 + $0x20] sm:$0xff] }
 0x56c   : > { %v9296_v41 = vpop.f32.mrf.mxu1 }
 0x56d   : > { %v2950_v41 = vld [vmem:[%s11327_s14 + $0x30] sm:$0xff] }
 0x56e   : > { %v2748_v42 = vpop.f32.mrf.mxu0 }
 0x56f   : > { %v2899_v44 = vsel %vm1113_vm2, %v2748_v42, 0.0  ;;  %v3001_v42 = vld [vmem:[%s11327_s14 + $0x1c8] sm:$0xff] }
 0x570   : > { %v9301_v43 = vpop.f32.mrf.mxu0  ;;  %v2900_v48 = vadd.f32 %v2899_v44, %v2898_v46  ;;  %v3000_v44 = vld [vmem:[%s11327_s14 + $0x1c0] sm:$0xff]  ;;  %v2985_v46 = vld [vmem:[%s11327_s14 + $0x148] sm:$0xff] }
 0x571   : > { %v3003_v43 = vld [vmem:[%s11327_s14 + $0x1d8] sm:$0xff] }
 0x574   : > { %v2821_v45 = vpop.f32.mrf.mxu1 }
 0x575   : > { %v2901_v47 = vsel %vm1113_vm2, %v2821_v45, 0.0  ;;  %v3002_v45 = vld [vmem:[%s11327_s14 + $0x1d0] sm:$0xff] }
 0x576   : > { %v9306_v49 = vpop.f32.mrf.mxu1  ;;  %v2902_v50 = vadd.f32 %v2901_v47, %v2900_v48  ;;  %v2987_v47 = vld [vmem:[%s11327_s14 + $0x158] sm:$0xff]  ;;  %v2984_v48 = vld [vmem:[%s11327_s14 + $0x140] sm:$0xff] }
 0x577   : > { %v2986_v49 = vld [vmem:[%s11327_s14 + $0x150] sm:$0xff] }
 0x578   : > { %v2894_v51 = vpop.f32.mrf.mxu0 }
 0x579   : > { %v2903_v52 = vsel %vm1113_vm2, %v2894_v51, 0.0  ;;  %v2971_v51 = vld [vmem:[%s11327_s14 + $0xd8] sm:$0xff] }
 0x57a   : > { %v2904_v54 = vadd.f32 %v2903_v52, %v2902_v50  ;;  %v9311_v55 = vpop.f32.mrf.mxu0  ;;  %v2969_v50 = vld [vmem:[%s11327_s14 + $0xc8] sm:$0xff]  ;;  %v2968_v52 = vld [vmem:[%s11327_s14 + $0xc0] sm:$0xff] }
 0x57b   : > { %v2955_v55 = vld [vmem:[%s11327_s14 + $0x58] sm:$0xff] }
 0x57c   : > { %v2912_v56 = vadd.f32 %v8305_v53, %v2904_v54  ;;  %v2970_v53 = vld [vmem:[%s11327_s14 + $0xd0] sm:$0xff]  ;;  %v2953_v54 = vld [vmem:[%s11327_s14 + $0x48] sm:$0xff] }
 0x57e   : > { %v2913_v57 = vadd.f32 %v2912_v56, %v9954_v14  ;;  %v2992_v14 = vld [vmem:[%s11327_s14 + $0x180] sm:$0xff] }
 0x57f   : > { %3120 = vmatpush1.msra.mxu1 %v2992_v14  ;;  %v2952_v56 = vld [vmem:[%s11327_s14 + $0x40] sm:$0xff]  ;;  %v2973_v14 = vld [vmem:[%s11327_s14 + $0xe8] sm:$0xff] }
 0x580   : > { %v2916_v58 = vsel %vm1113_vm2, %v2913_v57, 0.0  ;;  %3121 = vmatprep.subr.mxu1 %v2977_v4  ;;  %v2972_v4 = vld [vmem:[%s11327_s14 + $0xe0] sm:$0xff] }
 0x581   : > { %2917 = vadd.xlane.f32.xlu0 %v2916_v58  ;;  %3122 = vmatpush1.msra.mxu1 %v2976_v6  ;;  %v3005_v58 = vld [vmem:[%s11327_s14 + $0x1e8] sm:$0xff] }
 0x582   : > { %3123 = vmatprep.subr.mxu1 %v2961_v8  ;;  %v2957_v6 = vld [vmem:[%s11327_s14 + $0x68] sm:$0xff]  ;;  %v2956_v8 = vld [vmem:[%s11327_s14 + $0x60] sm:$0xff] }
 0x583   : > { %3124 = vmatpush1.msra.mxu1 %v2960_v10  ;;  %v3710_v10 = vld [vmem:[%s9782_s24 + $0xf8] sm:$0xff] }
 0x584   : > { %3125 = vmatprep.subr.mxu1 %v2945_v12  ;;  %v3694_v12 = vld [vmem:[%s9782_s24 + $0x78] sm:$0xff] }
 0x585   : > { %3126 = vmatpush1.msra.mxu1 %v2944_v15  ;;  %v3709_v15 = vld [vmem:[%s9782_s24 + $0xf0] sm:$0xff] }
 0x586   : > { %3261 = vmatprep.subr.mxu1 %v2997_v17  ;;  %v3693_v17 = vld [vmem:[%s9782_s24 + $0x70] sm:$0xff] }
 0x60a   : > { %v2918_v59 = vpop.xlane.xlu0 %2917 }
 0x60b   : > { %v2920_v60 = vmul.f32 0.03125, %v2918_v59  ;;  %v3007_v59 = vld [vmem:[%s11327_s14 + $0x1f8] sm:$0xff] }
 0x60d   : > { %v2921_v61 = vsub.f32 %v2913_v57, %v2920_v60  ;;  %v2954_v57 = vld [vmem:[%s11327_s14 + $0x50] sm:$0xff]  ;;  %v3004_v60 = vld [vmem:[%s11327_s14 + $0x1e0] sm:$0xff] }
 0x60f   : > { %v2922_v62 = vmul.f32 %v2921_v61, %v2921_v61 }
 0x611   : > { %v2923_v63 = vsel %vm1113_vm2, %v2922_v62, 0.0  ;;  %v2989_v62 = vld [vmem:[%s11327_s14 + $0x168] sm:$0xff] }
 0x612   : > { %2924 = vadd.xlane.f32.xlu1 %v2923_v63  ;;  %v2991_v63 = vld [vmem:[%s11327_s14 + $0x178] sm:$0xff] }
 0x69b   : > { %v2925_v19 = vpop.xlane.xlu1 %2924 }
 0x69c   : > { %v2926_v20 = vmul.f32 0.03125, %v2925_v19  ;;  %v3708_v19 = vld [vmem:[%s9782_s24 + $0xe8] sm:$0xff] }
 0x69e   : > { %v2927_v21 = vadd.f32 1e-05, %v2926_v20  ;;  %v3740_v20 = vld [vmem:[%s9782_s24 + $0x1e8] sm:$0xff] }
 0x6a0   : > { %9601 = vrsqrt.f32 %v2927_v21  ;;  %v3692_v21 = vld [vmem:[%s9782_s24 + $0x68] sm:$0xff] }
 0x6ad   : > { %v9602_v22 = vpop.eup %9601 }
 0x6ae   : > { %v2929_v24 = vmul.f32 %v9602_v22, %v2921_v61  ;;  %v3006_v61 = vld [vmem:[%s11327_s14 + $0x1f0] sm:$0xff]  ;;  %v3724_v22 = vld [vmem:[%s9782_s24 + $0x168] sm:$0xff]  ;;  %s9629_s14 = sshll.u32 %s9718_s13, 4  ;;  %s9630_s14 = int_to_ptr.vmem [resolvable:$false] %s9629_s14 }
 0x6af   : > { %s9631_s0 = scalar_lea.vmem %s9630_s14, 32 }
 0x6b0   : > { %v2936_v26 = vmul.f32 %v8306_v23, %v2929_v24  ;;  %v3707_v23 = vld [vmem:[%s9782_s24 + $0xe0] sm:$0xff] }
 0x6b1   : > { %v3739_v24 = vld [vmem:[%s9782_s24 + $0x1e0] sm:$0xff] }
 0x6b2   : > { %v10190_v27 = vadd.f32 %v8307_v25, %v2936_v26  ;;  %v3691_v25 = vld [vmem:[%s9782_s24 + $0x60] sm:$0xff] }
 0x6b3   : > { %v3723_v26 = vld [vmem:[%s9782_s24 + $0x160] sm:$0xff] }
 0x6b4   : > { %8308 = vmatmul.mubr.msk.f32.vlgmr.msra.gmra.mxu1 %vm1113_vm2, %v10190_v27  ;;  %8309 = vmatmul.mubr.msk.f32.vlgmr.msra.gmra.mxu0 %vm1113_vm2, %v10190_v27 }
 0x6b5   : > { %3262 = vmatpush1.msra.mxu1 %v2996_v28  ;;  %3333 = vmatpush1.msra.mxu0 %v2998_v29  ;;  %v3706_v28 = vld [vmem:[%s9782_s24 + $0xd8] sm:$0xff] }
 0x6b6   : > { %3263 = vmatprep.subr.mxu1 %v2981_v30  ;;  %3334 = vmatprep.subr.mxu0 %v2983_v31  ;;  %v3738_v29 = vld [vmem:[%s9782_s24 + $0x1d8] sm:$0xff] }
 0x6b7   : > { %3264 = vmatpush1.msra.mxu1 %v2980_v32  ;;  %3335 = vmatpush1.msra.mxu0 %v2982_v33  ;;  %v3690_v30 = vld [vmem:[%s9782_s24 + $0x58] sm:$0xff]  ;;  %v3705_v32 = vld [vmem:[%s9782_s24 + $0xd0] sm:$0xff] }
 0x6b8   : > { %3265 = vmatprep.subr.mxu1 %v2965_v34  ;;  %3336 = vmatprep.subr.mxu0 %v2967_v35  ;;  %v3722_v31 = vld [vmem:[%s9782_s24 + $0x158] sm:$0xff]  ;;  %v3737_v33 = vld [vmem:[%s9782_s24 + $0x1d0] sm:$0xff] }
 0x6b9   : > { %3266 = vmatpush1.msra.mxu1 %v2964_v36  ;;  %3337 = vmatpush1.msra.mxu0 %v2966_v37  ;;  %v3689_v34 = vld [vmem:[%s9782_s24 + $0x50] sm:$0xff]  ;;  %v3704_v36 = vld [vmem:[%s9782_s24 + $0xc8] sm:$0xff] }
 0x6ba   : > { %3267 = vmatprep.subr.mxu1 %v2949_v38  ;;  %3338 = vmatprep.subr.mxu0 %v2951_v39  ;;  %v3721_v35 = vld [vmem:[%s9782_s24 + $0x150] sm:$0xff]  ;;  %v3736_v37 = vld [vmem:[%s9782_s24 + $0x1c8] sm:$0xff] }
 0x6bb   : > { %3268 = vmatpush1.msra.mxu1 %v2948_v40  ;;  %3301 = vmatprep.mubr.f32.mxu1 %v9716_v1  ;;  %v3688_v38 = vld [vmem:[%s9782_s24 + $0x48] sm:$0xff]  ;;  %v3703_v40 = vld [vmem:[%s9782_s24 + $0xc0] sm:$0xff] }
 0x6bc   : > { %3339 = vmatpush1.msra.mxu0 %v2950_v41  ;;  %3372 = vmatprep.mubr.f32.mxu0 %v9716_v1  ;;  %v3720_v39 = vld [vmem:[%s9782_s24 + $0x148] sm:$0xff]  ;;  %v3735_v41 = vld [vmem:[%s9782_s24 + $0x1c0] sm:$0xff] }
 0x6bd   : > { %8310 = vmatmul.mubr.msk.f32.vlgmr.msra.gmra.mxu1 %vm1113_vm2, %v10190_v27  ;;  %8311 = vmatmul.mubr.msk.f32.vlgmr.msra.gmra.mxu0 %vm1113_vm2, %v10190_v27 }
 0x6be   : > { %3403 = vmatprep.subr.mxu1 %v3001_v42  ;;  %3474 = vmatprep.subr.mxu0 %v3003_v43  ;;  %v3687_v42 = vld [vmem:[%s9782_s24 + $0x40] sm:$0xff] }
 0x6bf   : > { %3404 = vmatpush1.msra.mxu1 %v3000_v44  ;;  %3475 = vmatpush1.msra.mxu0 %v3002_v45  ;;  %v3719_v43 = vld [vmem:[%s9782_s24 + $0x140] sm:$0xff]  ;;  %v3702_v44 = vld [vmem:[%s9782_s24 + $0xb8] sm:$0xff] }
 0x6c0   : > { %3405 = vmatprep.subr.mxu1 %v2985_v46  ;;  %3476 = vmatprep.subr.mxu0 %v2987_v47  ;;  %v3734_v45 = vld [vmem:[%s9782_s24 + $0x1b8] sm:$0xff] }
 0x6c1   : > { %3406 = vmatpush1.msra.mxu1 %v2984_v48  ;;  %3477 = vmatpush1.msra.mxu0 %v2986_v49  ;;  %v3686_v46 = vld [vmem:[%s9782_s24 + $0x38] sm:$0xff]  ;;  %v3701_v48 = vld [vmem:[%s9782_s24 + $0xb0] sm:$0xff] }
 0x6c2   : > { %3407 = vmatprep.subr.mxu1 %v2969_v50  ;;  %3478 = vmatprep.subr.mxu0 %v2971_v51  ;;  %v3718_v47 = vld [vmem:[%s9782_s24 + $0x138] sm:$0xff]  ;;  %v3733_v49 = vld [vmem:[%s9782_s24 + $0x1b0] sm:$0xff] }
 0x6c3   : > { %3408 = vmatpush1.msra.mxu1 %v2968_v52  ;;  %3479 = vmatpush1.msra.mxu0 %v2970_v53  ;;  %v3685_v50 = vld [vmem:[%s9782_s24 + $0x30] sm:$0xff]  ;;  %v3700_v52 = vld [vmem:[%s9782_s24 + $0xa8] sm:$0xff] }
 0x6c4   : > { %3409 = vmatprep.subr.mxu1 %v2953_v54  ;;  %3480 = vmatprep.subr.mxu0 %v2955_v55  ;;  %v3717_v51 = vld [vmem:[%s9782_s24 + $0x130] sm:$0xff]  ;;  %v3732_v53 = vld [vmem:[%s9782_s24 + $0x1a8] sm:$0xff] }
 0x6c5   : > { %3410 = vmatpush1.msra.mxu1 %v2952_v56  ;;  %3443 = vmatprep.mubr.f32.mxu1 %v9716_v1  ;;  %v3684_v54 = vld [vmem:[%s9782_s24 + $0x28] sm:$0xff]  ;;  %v3699_v56 = vld [vmem:[%s9782_s24 + $0xa0] sm:$0xff] }
 0x6c6   : > { %3481 = vmatpush1.msra.mxu0 %v2954_v57  ;;  %3514 = vmatprep.mubr.f32.mxu0 %v9716_v1  ;;  %v3716_v55 = vld [vmem:[%s9782_s24 + $0x128] sm:$0xff]  ;;  %v3731_v57 = vld [vmem:[%s9782_s24 + $0x1a0] sm:$0xff] }
 0x6c7   : > { %8312 = vmatmul.mubr.msk.f32.vlgmr.msra.gmra.mxu1 %vm1113_vm2, %v10190_v27  ;;  %8313 = vmatmul.mubr.msk.f32.vlgmr.msra.gmra.mxu0 %vm1113_vm2, %v10190_v27 }
 0x6c8   : > { %3545 = vmatprep.subr.mxu1 %v3005_v58  ;;  %3616 = vmatprep.subr.mxu0 %v3007_v59  ;;  %v3683_v58 = vld [vmem:[%s9782_s24 + $0x20] sm:$0xff] }
 0x6c9   : > { %3546 = vmatpush1.msra.mxu1 %v3004_v60  ;;  %3617 = vmatpush1.msra.mxu0 %v3006_v61  ;;  %v3715_v59 = vld [vmem:[%s9782_s24 + $0x120] sm:$0xff]  ;;  %v3698_v60 = vld [vmem:[%s9782_s24 + $0x98] sm:$0xff] }
 0x6ca   : > { %3547 = vmatprep.subr.mxu1 %v2989_v62  ;;  %3618 = vmatprep.subr.mxu0 %v2991_v63  ;;  %v3730_v61 = vld [vmem:[%s9782_s24 + $0x198] sm:$0xff] }
 0x6cb   : > { %3548 = vmatpush1.msra.mxu1 %v2988_v0  ;;  %3619 = vmatpush1.msra.mxu0 %v2990_v2  ;;  %v3682_v62 = vld [vmem:[%s9782_s24 + $0x18] sm:$0xff]  ;;  %v3697_v0 = vld [vmem:[%s9782_s24 + $0x90] sm:$0xff] }
 0x6cc   : > { %3549 = vmatprep.subr.mxu1 %v2973_v14  ;;  %3620 = vmatprep.subr.mxu0 %v2975_v3  ;;  %v3714_v63 = vld [vmem:[%s9782_s24 + $0x118] sm:$0xff]  ;;  %v3729_v2 = vld [vmem:[%s9782_s24 + $0x190] sm:$0xff] }
 0x6cd   : > { %3550 = vmatpush1.msra.mxu1 %v2972_v4  ;;  %3621 = vmatpush1.msra.mxu0 %v2974_v5  ;;  %v3681_v14 = vld [vmem:[%s9782_s24 + $0x10] sm:$0xff]  ;;  %v3696_v4 = vld [vmem:[%s9782_s24 + $0x88] sm:$0xff] }
 0x6ce   : > { %3551 = vmatprep.subr.mxu1 %v2957_v6  ;;  %3622 = vmatprep.subr.mxu0 %v2959_v7  ;;  %v3713_v3 = vld [vmem:[%s9782_s24 + $0x110] sm:$0xff]  ;;  %v3728_v5 = vld [vmem:[%s9782_s24 + $0x188] sm:$0xff] }
 0x6cf   : > { %3552 = vmatpush1.msra.mxu1 %v2956_v8  ;;  %3585 = vmatprep.mubr.f32.mxu1 %v9716_v1  ;;  %v3680_v6 = vld [vmem:[%s9782_s24 + $0x8] sm:$0xff]  ;;  %v3695_v8 = vld [vmem:[%s9782_s24 + $0x80] sm:$0xff] }
 0x6d0   : > { %3623 = vmatpush1.msra.mxu0 %v2958_v9  ;;  %3656 = vmatprep.mubr.f32.mxu0 %v9716_v1  ;;  %v3712_v7 = vld [vmem:[%s9782_s24 + $0x108] sm:$0xff]  ;;  %v3727_v9 = vld [vmem:[%s9782_s24 + $0x180] sm:$0xff] }
 0x6d1   : > { %8314 = vmatmul.mubr.msk.f32.vlgmr.msra.gmra.mxu1 %vm1113_vm2, %v10190_v27  ;;  %8315 = vmatmul.mubr.msk.f32.vlgmr.msra.gmra.mxu0 %vm1113_vm2, %v10190_v27 }
 0x6d2   : > { %8464 = vmatprep.subr.mxu1 %v3710_v10  ;;  %8499 = vmatprep.subr.mxu0 %v3742_v11  ;;  %v3679_v10 = vld [vmem:[%s9782_s24] sm:$0xff] }
 0x6d3   : > { %8465 = vmatpush3.msra.mxu1 %v3694_v12  ;;  %8500 = vmatpush3.msra.mxu0 %v3726_v13  ;;  %v3711_v11 = vld [vmem:[%s9782_s24 + $0x100] sm:$0xff]  ;;  %v3774_v12 = vld [vmem:[%s9782_s24 + $0x2f8] sm:$0xff] }
 0x6d4   : > { %8466 = vmatprep.subr.mxu1 %v3709_v15  ;;  %8501 = vmatprep.subr.mxu0 %v3741_v16  ;;  %v3806_v13 = vld [vmem:[%s9782_s24 + $0x3f8] sm:$0xff]  ;;  %v3012_v15 = vlaneseq }
 0x6d5   : > { %8467 = vmatpush3.msra.mxu1 %v3693_v17  ;;  %8502 = vmatpush3.msra.mxu0 %v3725_v18 }
 0x6d6   : > { %8468 = vmatprep.subr.mxu1 %v3708_v19  ;;  %8503 = vmatprep.subr.mxu0 %v3740_v20  ;;  %v10326_v16 = vshrl.u32 %v3012_v15, 7  ;;  %v10335_v19 = vld [vmem:[%s9777_s19] sm:$0xff] }
 0x6d7   : > { %8469 = vmatpush3.msra.mxu1 %v3692_v21  ;;  %8504 = vmatpush3.msra.mxu0 %v3724_v22  ;;  %v3799_v15 = vld [vmem:[%s9782_s24 + $0x3c0] sm:$0xff] }
 0x6d8   : > { %8470 = vmatprep.subr.mxu1 %v3707_v23  ;;  %8505 = vmatprep.subr.mxu0 %v3739_v24  ;;  %v10329_v17 = vsub.s32 0, %v10326_v16  ;;  %v10332_v18 = vsub.s32 2, %v10326_v16  ;;  %v10338_v20 = vsub.s32 1, %v10326_v16  ;;  %v10341_v21 = vsub.s32 3, %v10326_v16 }
 0x6d9   : > { %8471 = vmatpush3.msra.mxu1 %v3691_v25  ;;  %8506 = vmatpush3.msra.mxu0 %v3723_v26 }
 0x6da   : > { %8472 = vmatprep.subr.mxu1 %v3706_v28  ;;  %8507 = vmatprep.subr.mxu0 %v3738_v29  ;;  %v3015_v22 = vrot.slane %v10335_v19, %v10329_v17  ;;  %v3023_v23 = vrot.slane %v10335_v19, %v10332_v18  ;;  %v3019_v24 = vrot.slane %v10335_v19, %v10338_v20 }
 0x6db   : > { %8473 = vmatpush3.msra.mxu1 %v3690_v30  ;;  %8508 = vmatpush3.msra.mxu0 %v3722_v31  ;;  %v3027_v25 = vrot.slane %v10335_v19, %v10341_v21 }
 0x6dc   : > { %8474 = vmatprep.subr.mxu1 %v3705_v32  ;;  %8509 = vmatprep.subr.mxu0 %v3737_v33 }
 0x6dd   : > { %8475 = vmatpush3.msra.mxu1 %v3689_v34  ;;  %8510 = vmatpush3.msra.mxu0 %v3721_v35  ;;  %v10352_v35 = vsub.s32 5, %v10326_v16 }
 0x6de   : > { %8476 = vmatprep.subr.mxu1 %v3704_v36  ;;  %8511 = vmatprep.subr.mxu0 %v3736_v37  ;;  %v10355_v36 = vsub.s32 7, %v10326_v16 }
 0x6df   : > { %8477 = vmatpush3.msra.mxu1 %v3688_v38  ;;  %8512 = vmatpush3.msra.mxu0 %v3720_v39 }
 0x6e0   : > { %8478 = vmatprep.subr.mxu1 %v3703_v40  ;;  %8513 = vmatprep.subr.mxu0 %v3735_v41  ;;  %v3758_v41 = vld [vmem:[%s9782_s24 + $0x278] sm:$0xff] }
 0x6e1   : > { %8479 = vmatpush3.msra.mxu1 %v3687_v42  ;;  %8514 = vmatpush3.msra.mxu0 %v3719_v43  ;;  %v3790_v42 = vld [vmem:[%s9782_s24 + $0x378] sm:$0xff]  ;;  %v3773_v43 = vld [vmem:[%s9782_s24 + $0x2f0] sm:$0xff] }
 0x6e2   : > { %8480 = vmatprep.subr.mxu1 %v3702_v44  ;;  %8515 = vmatprep.subr.mxu0 %v3734_v45  ;;  %v3805_v44 = vld [vmem:[%s9782_s24 + $0x3f0] sm:$0xff]  ;;  %v3035_v45 = vrot.slane %v10335_v19, %v10352_v35 }
 0x6e3   : > { %8481 = vmatpush3.msra.mxu1 %v3686_v46  ;;  %8516 = vmatpush3.msra.mxu0 %v3718_v47  ;;  %v3043_v46 = vrot.slane %v10335_v19, %v10355_v36  ;;  %v3757_v47 = vld [vmem:[%s9782_s24 + $0x270] sm:$0xff] }
 0x6e4   : > { %8482 = vmatprep.subr.mxu1 %v3701_v48  ;;  %8517 = vmatprep.subr.mxu0 %v3733_v49  ;;  %v3789_v48 = vld [vmem:[%s9782_s24 + $0x370] sm:$0xff] }
 0x6e5   : > { %8483 = vmatpush3.msra.mxu1 %v3685_v50  ;;  %8518 = vmatpush3.msra.mxu0 %v3717_v51  ;;  %v3772_v51 = vld [vmem:[%s9782_s24 + $0x2e8] sm:$0xff] }
 0x6e6   : > { %8484 = vmatprep.subr.mxu1 %v3700_v52  ;;  %8519 = vmatprep.subr.mxu0 %v3732_v53  ;;  %v3804_v52 = vld [vmem:[%s9782_s24 + $0x3e8] sm:$0xff] }
 0x6e7   : > { %8485 = vmatpush3.msra.mxu1 %v3684_v54  ;;  %8520 = vmatpush3.msra.mxu0 %v3716_v55  ;;  %v3756_v53 = vld [vmem:[%s9782_s24 + $0x268] sm:$0xff] }
 0x6e8   : > { %8486 = vmatprep.subr.mxu1 %v3699_v56  ;;  %8521 = vmatprep.subr.mxu0 %v3731_v57  ;;  %v3788_v54 = vld [vmem:[%s9782_s24 + $0x368] sm:$0xff]  ;;  %v3771_v57 = vld [vmem:[%s9782_s24 + $0x2e0] sm:$0xff] }
 0x6e9   : > { %8487 = vmatpush3.msra.mxu1 %v3683_v58  ;;  %8522 = vmatpush3.msra.mxu0 %v3715_v59  ;;  %v3803_v58 = vld [vmem:[%s9782_s24 + $0x3e0] sm:$0xff] }
 0x6ea   : > { %8488 = vmatprep.subr.mxu1 %v3698_v60  ;;  %8523 = vmatprep.subr.mxu0 %v3730_v61  ;;  %v3755_v61 = vld [vmem:[%s9782_s24 + $0x260] sm:$0xff] }
 0x6eb   : > { %8489 = vmatpush3.msra.mxu1 %v3682_v62  ;;  %8524 = vmatpush3.msra.mxu0 %v3714_v63  ;;  %v3787_v62 = vld [vmem:[%s9782_s24 + $0x360] sm:$0xff] }
 0x6ec   : > { %8490 = vmatprep.subr.mxu1 %v3697_v0  ;;  %8525 = vmatprep.subr.mxu0 %v3729_v2  ;;  %v3770_v2 = vld [vmem:[%s9782_s24 + $0x2d8] sm:$0xff] }
 0x6ed   : > { %8491 = vmatpush3.msra.mxu1 %v3681_v14  ;;  %8526 = vmatpush3.msra.mxu0 %v3713_v3  ;;  %v3802_v14 = vld [vmem:[%s9782_s24 + $0x3d8] sm:$0xff] }
 0x6ee   : > { %8492 = vmatprep.subr.mxu1 %v3696_v4  ;;  %8527 = vmatprep.subr.mxu0 %v3728_v5  ;;  %v3754_v3 = vld [vmem:[%s9782_s24 + $0x258] sm:$0xff]  ;;  %v3769_v5 = vld [vmem:[%s9782_s24 + $0x2d0] sm:$0xff] }
 0x6ef   : > { %8493 = vmatpush3.msra.mxu1 %v3680_v6  ;;  %8528 = vmatpush3.msra.mxu0 %v3712_v7  ;;  %v3786_v4 = vld [vmem:[%s9782_s24 + $0x358] sm:$0xff]  ;;  %v3801_v6 = vld [vmem:[%s9782_s24 + $0x3d0] sm:$0xff] }
 0x6f0   : > { %8494 = vmatprep.subr.mxu1 %v3695_v8  ;;  %8529 = vmatprep.subr.mxu0 %v3727_v9  ;;  %v3753_v7 = vld [vmem:[%s9782_s24 + $0x250] sm:$0xff]  ;;  %v3768_v9 = vld [vmem:[%s9782_s24 + $0x2c8] sm:$0xff] }
 0x6f1   : > { %8495 = vmatpush3.msra.mxu1 %v3679_v10  ;;  %8530 = vmatpush3.msra.mxu0 %v3711_v11  ;;  %v3785_v8 = vld [vmem:[%s9782_s24 + $0x350] sm:$0xff]  ;;  %v3800_v10 = vld [vmem:[%s9782_s24 + $0x3c8] sm:$0xff] }
 0x6f2   : > { %8534 = vmatprep.subr.mxu1 %v3774_v12  ;;  %8569 = vmatprep.subr.mxu0 %v3806_v13  ;;  %v3752_v11 = vld [vmem:[%s9782_s24 + $0x248] sm:$0xff]  ;;  %v3767_v13 = vld [vmem:[%s9782_s24 + $0x2c0] sm:$0xff] }
 0x6f3   : > { %v3784_v12 = vld [vmem:[%s9782_s24 + $0x348] sm:$0xff] }
 0x774   : > { %v3161_v26 = vpop.f32.mrf.mxu1  ;;  %v3232_v28 = vpop.f32.mrf.mxu0 }
 0x775   : > { %v3162_v29 = vadd.f32 %v3161_v26, %v3015_v22  ;;  %v3233_v30 = vadd.f32 %v3232_v28, %v3023_v23  ;;  %v3751_v22 = vld [vmem:[%s9782_s24 + $0x240] sm:$0xff]  ;;  %v3750_v26 = vld [vmem:[%s9782_s24 + $0x238] sm:$0xff] }
 0x776   : > { %v3163_v31 = vpop.f32.mrf.mxu1  ;;  %v3234_v32 = vpop.f32.mrf.mxu0  ;;  %v3783_v23 = vld [vmem:[%s9782_s24 + $0x340] sm:$0xff]  ;;  %v3782_v28 = vld [vmem:[%s9782_s24 + $0x338] sm:$0xff] }
 0x777   : > { %v3164_v33 = vadd.f32 %v3163_v31, %v3019_v24  ;;  %v3235_v34 = vadd.f32 %v3234_v32, %v3027_v25  ;;  %v3663_v39 = vmax.f32 %v3162_v29, 0.0  ;;  %v3665_v40 = vmax.f32 %v3233_v30, 0.0  ;;  %v3766_v24 = vld [vmem:[%s9782_s24 + $0x2b8] sm:$0xff]  ;;  %v3765_v29 = vld [vmem:[%s9782_s24 + $0x2b0] sm:$0xff] }
 0x778   : > { %v3798_v25 = vld [vmem:[%s9782_s24 + $0x3b8] sm:$0xff]  ;;  %v3797_v30 = vld [vmem:[%s9782_s24 + $0x3b0] sm:$0xff] }
 0x779   : > { %v3664_v37 = vmax.f32 %v3164_v33, 0.0  ;;  %v3666_v38 = vmax.f32 %v3235_v34, 0.0  ;;  %v3749_v31 = vld [vmem:[%s9782_s24 + $0x230] sm:$0xff]  ;;  %v3764_v33 = vld [vmem:[%s9782_s24 + $0x2a8] sm:$0xff] }
 0x77a   : > { %v3781_v32 = vld [vmem:[%s9782_s24 + $0x330] sm:$0xff]  ;;  %v3796_v34 = vld [vmem:[%s9782_s24 + $0x3a8] sm:$0xff] }
 0x77b   : > { %4006 = vmatprep.mubr.f32.mxu1 %v3664_v37  ;;  %4076 = vmatprep.mubr.f32.mxu0 %v3666_v38  ;;  %v10406_v37 = vsub.s32 4, %v10326_v16  ;;  %v10409_v38 = vsub.s32 6, %v10326_v16 }
 0x77c   : > { %4007 = vmatmul.mubr.f32.vlgmr.msra.gmra.mxu1 %v3663_v39  ;;  %4077 = vmatmul.mubr.f32.vlgmr.msra.gmra.mxu0 %v3665_v40  ;;  %v3748_v39 = vld [vmem:[%s9782_s24 + $0x228] sm:$0xff] }
 0x77d   : > { %v10367_v49 = vpop.f32.mrf.mxu1  ;;  %v10369_v50 = vpop.f32.mrf.mxu0  ;;  %8535 = vmatpush3.msra.mxu1 %v3758_v41  ;;  %8570 = vmatpush3.msra.mxu0 %v3790_v42  ;;  %v3780_v40 = vld [vmem:[%s9782_s24 + $0x328] sm:$0xff]  ;;  %v3763_v41 = vld [vmem:[%s9782_s24 + $0x2a0] sm:$0xff] }
 0x77e   : > { %8536 = vmatprep.subr.mxu1 %v3773_v43  ;;  %8571 = vmatprep.subr.mxu0 %v3805_v44  ;;  %v3795_v42 = vld [vmem:[%s9782_s24 + $0x3a0] sm:$0xff] }
 0x77f   : > { %v3305_v55 = vpop.f32.mrf.mxu1  ;;  %v3376_v56 = vpop.f32.mrf.mxu0  ;;  %8537 = vmatpush3.msra.mxu1 %v3757_v47  ;;  %8572 = vmatpush3.msra.mxu0 %v3789_v48  ;;  %v3747_v43 = vld [vmem:[%s9782_s24 + $0x220] sm:$0xff]  ;;  %v3031_v47 = vrot.slane %v10335_v19, %v10406_v37  ;;  %v3039_v48 = vrot.slane %v10335_v19, %v10409_v38  ;;  %v3745_v19 = vld [vmem:[%s9782_s24 + $0x210] sm:$0xff] }
 0x780   : > { %v3306_v59 = vadd.f32 %v3305_v55, %v3035_v45  ;;  %v3377_v60 = vadd.f32 %v3376_v56, %v3043_v46  ;;  %8538 = vmatprep.subr.mxu1 %v3772_v51  ;;  %8573 = vmatprep.subr.mxu0 %v3804_v52  ;;  %v3779_v44 = vld [vmem:[%s9782_s24 + $0x320] sm:$0xff]  ;;  %v3762_v45 = vld [vmem:[%s9782_s24 + $0x298] sm:$0xff]  ;;  %v3761_v55 = vld [vmem:[%s9782_s24 + $0x290] sm:$0xff] }
 0x781   : > { %8539 = vmatpush3.msra.mxu1 %v3756_v53  ;;  %8574 = vmatpush3.msra.mxu0 %v3788_v54  ;;  %v3794_v46 = vld [vmem:[%s9782_s24 + $0x398] sm:$0xff]  ;;  %v10430_v54 = vld [vmem:[%s9777_s19 + $0x8] sm:$0xff]  ;;  %v3793_v56 = vld [vmem:[%s9782_s24 + $0x390] sm:$0xff] }
 0x782   : > { %v3668_v63 = vmax.f32 %v3306_v59, 0.0  ;;  %v3670_v0 = vmax.f32 %v3377_v60, 0.0  ;;  %8540 = vmatprep.subr.mxu1 %v3771_v57  ;;  %8575 = vmatprep.subr.mxu0 %v3803_v58  ;;  %v3746_v52 = vld [vmem:[%s9782_s24 + $0x218] sm:$0xff]  ;;  %v3051_v57 = vrot.slane %v10430_v54, %v10338_v20  ;;  %v3777_v58 = vld [vmem:[%s9782_s24 + $0x310] sm:$0xff]  ;;  %v3059_v60 = vrot.slane %v10430_v54, %v10341_v21 }
 0x783   : > { %8541 = vmatpush3.msra.mxu1 %v3755_v61  ;;  %8576 = vmatpush3.msra.mxu0 %v3787_v62  ;;  %v3778_v53 = vld [vmem:[%s9782_s24 + $0x318] sm:$0xff]  ;;  %v3760_v61 = vld [vmem:[%s9782_s24 + $0x288] sm:$0xff] }
 0x784   : > { %4146 = vmatprep.mubr.f32.mxu1 %v3668_v63  ;;  %4216 = vmatprep.mubr.f32.mxu0 %v3670_v0  ;;  %v3792_v62 = vld [vmem:[%s9782_s24 + $0x388] sm:$0xff]  ;;  %v3304_v63 = vadd.f32 %v10367_v49, %v3031_v47  ;;  %v3375_v0 = vadd.f32 %v10369_v50, %v3039_v48  ;;  %v3849_v47 = vld [vmem:[%s9782_s24 + $0x550] sm:$0xff] }
 0x785   : > { %8542 = vmatprep.subr.mxu1 %v3770_v2  ;;  %8577 = vmatprep.subr.mxu0 %v3802_v14  ;;  %v3744_v14 = vld [vmem:[%s9782_s24 + $0x208] sm:$0xff] }
 0x786   : > { %8543 = vmatpush3.msra.mxu1 %v3754_v3  ;;  %8578 = vmatpush3.msra.mxu0 %v3786_v4  ;;  %v3776_v3 = vld [vmem:[%s9782_s24 + $0x308] sm:$0xff]  ;;  %v3759_v4 = vld [vmem:[%s9782_s24 + $0x280] sm:$0xff]  ;;  %v3667_v50 = vmax.f32 %v3304_v63, 0.0  ;;  %v3829_v63 = vld [vmem:[%s9782_s24 + $0x4b0] sm:$0xff] }
 0x787   : > { %8544 = vmatprep.subr.mxu1 %v3769_v5  ;;  %8579 = vmatprep.subr.mxu0 %v3801_v6  ;;  %v10417_v16 = vpop.f32.mrf.mxu1  ;;  %v10425_v51 = vpop.f32.mrf.mxu0  ;;  %v3791_v5 = vld [vmem:[%s9782_s24 + $0x380] sm:$0xff]  ;;  %v3832_v48 = vld [vmem:[%s9782_s24 + $0x4c8] sm:$0xff] }
 0x788   : > { %8545 = vmatpush3.msra.mxu1 %v3753_v7  ;;  %8580 = vmatpush3.msra.mxu0 %v3785_v8  ;;  %v3743_v7 = vld [vmem:[%s9782_s24 + $0x200] sm:$0xff] }
 0x789   : > { %8546 = vmatprep.subr.mxu1 %v3768_v9  ;;  %8581 = vmatprep.subr.mxu0 %v3800_v10  ;;  %v3447_v59 = vpop.f32.mrf.mxu1  ;;  %v3518_v2 = vpop.f32.mrf.mxu0  ;;  %v3775_v8 = vld [vmem:[%s9782_s24 + $0x300] sm:$0xff]  ;;  %v3669_v9 = vmax.f32 %v3375_v0, 0.0  ;;  %v3838_v10 = vld [vmem:[%s9782_s24 + $0x4f8] sm:$0xff]  ;;  %v3861_v0 = vld [vmem:[%s9782_s24 + $0x5b0] sm:$0xff] }
 0x78a   : > { %8547 = vmatpush3.msra.mxu1 %v3752_v11  ;;  %8582 = vmatpush3.msra.mxu0 %v3784_v12  ;;  %v3448_v6 = vadd.f32 %v3447_v59, %v3051_v57  ;;  %v3519_v49 = vadd.f32 %v3518_v2, %v3059_v60  ;;  %v3870_v11 = vld [vmem:[%s9782_s24 + $0x5f8] sm:$0xff]  ;;  %v3863_v57 = vld [vmem:[%s9782_s24 + $0x5c0] sm:$0xff]  ;;  %v3813_v2 = vld [vmem:[%s9782_s24 + $0x430] sm:$0xff] }
 0x78b   : > { %8548 = vmatprep.subr.mxu1 %v3767_v13  ;;  %8583 = vmatprep.subr.mxu0 %v3799_v15  ;;  %v3822_v12 = vld [vmem:[%s9782_s24 + $0x478] sm:$0xff] }
 0x78c   : > { %8549 = vmatpush3.msra.mxu1 %v3751_v22  ;;  %8584 = vmatpush3.msra.mxu0 %v3783_v23  ;;  %v3672_v13 = vmax.f32 %v3448_v6, 0.0  ;;  %v3854_v15 = vld [vmem:[%s9782_s24 + $0x578] sm:$0xff]  ;;  %v3674_v22 = vmax.f32 %v3519_v49, 0.0  ;;  %v3837_v23 = vld [vmem:[%s9782_s24 + $0x4f0] sm:$0xff]  ;;  %v3844_v6 = vld [vmem:[%s9782_s24 + $0x528] sm:$0xff] }
 0x78d   : > { %8550 = vmatprep.subr.mxu1 %v3766_v24  ;;  %8585 = vmatprep.subr.mxu0 %v3798_v25  ;;  %v3869_v24 = vld [vmem:[%s9782_s24 + $0x5f0] sm:$0xff]  ;;  %v3830_v59 = vld [vmem:[%s9782_s24 + $0x4b8] sm:$0xff]  ;;  %v3811_v49 = vld [vmem:[%s9782_s24 + $0x420] sm:$0xff] }
 0x78e   : > { %8551 = vmatpush3.msra.mxu1 %v3750_v26  ;;  %8586 = vmatpush3.msra.mxu0 %v3782_v28  ;;  %v3821_v25 = vld [vmem:[%s9782_s24 + $0x470] sm:$0xff]  ;;  %v3836_v28 = vld [vmem:[%s9782_s24 + $0x4e8] sm:$0xff]  ;;  %v3862_v60 = vld [vmem:[%s9782_s24 + $0x5b8] sm:$0xff] }
 0x78f   : > { %8552 = vmatprep.subr.mxu1 %v3765_v29  ;;  %8587 = vmatprep.subr.mxu0 %v3797_v30  ;;  %v3853_v26 = vld [vmem:[%s9782_s24 + $0x570] sm:$0xff]  ;;  %v3868_v29 = vld [vmem:[%s9782_s24 + $0x5e8] sm:$0xff] }
 0x790   : > { %8553 = vmatpush3.msra.mxu1 %v3749_v31  ;;  %8588 = vmatpush3.msra.mxu0 %v3781_v32  ;;  %v3820_v30 = vld [vmem:[%s9782_s24 + $0x468] sm:$0xff]  ;;  %v3835_v32 = vld [vmem:[%s9782_s24 + $0x4e0] sm:$0xff] }
 0x791   : > { %8554 = vmatprep.subr.mxu1 %v3764_v33  ;;  %8589 = vmatprep.subr.mxu0 %v3796_v34  ;;  %v3852_v31 = vld [vmem:[%s9782_s24 + $0x568] sm:$0xff]  ;;  %v3867_v33 = vld [vmem:[%s9782_s24 + $0x5e0] sm:$0xff] }
 0x792   : > { %8555 = vmatpush3.msra.mxu1 %v3748_v39  ;;  %8590 = vmatpush3.msra.mxu0 %v3780_v40  ;;  %v3819_v34 = vld [vmem:[%s9782_s24 + $0x460] sm:$0xff]  ;;  %v3834_v40 = vld [vmem:[%s9782_s24 + $0x4d8] sm:$0xff] }
 0x793   : > { %8556 = vmatprep.subr.mxu1 %v3763_v41  ;;  %8591 = vmatprep.subr.mxu0 %v3795_v42  ;;  %v3851_v39 = vld [vmem:[%s9782_s24 + $0x560] sm:$0xff]  ;;  %v3866_v41 = vld [vmem:[%s9782_s24 + $0x5d8] sm:$0xff] }
 0x794   : > { %8557 = vmatpush3.msra.mxu1 %v3747_v43  ;;  %8592 = vmatpush3.msra.mxu0 %v3779_v44  ;;  %v3818_v42 = vld [vmem:[%s9782_s24 + $0x458] sm:$0xff]  ;;  %v3833_v44 = vld [vmem:[%s9782_s24 + $0x4d0] sm:$0xff] }
 0x795   : > { %8558 = vmatprep.subr.mxu1 %v3762_v45  ;;  %8593 = vmatprep.subr.mxu0 %v3794_v46  ;;  %v3850_v43 = vld [vmem:[%s9782_s24 + $0x558] sm:$0xff]  ;;  %v3865_v45 = vld [vmem:[%s9782_s24 + $0x5d0] sm:$0xff] }
 0x796   : > { %8559 = vmatpush3.msra.mxu1 %v3746_v52  ;;  %8594 = vmatpush3.msra.mxu0 %v3778_v53  ;;  %v3817_v46 = vld [vmem:[%s9782_s24 + $0x450] sm:$0xff]  ;;  %v3864_v52 = vld [vmem:[%s9782_s24 + $0x5c8] sm:$0xff] }
 0x797   : > { %8560 = vmatprep.subr.mxu1 %v3761_v55  ;;  %8595 = vmatprep.subr.mxu0 %v3793_v56  ;;  %v3816_v53 = vld [vmem:[%s9782_s24 + $0x448] sm:$0xff]  ;;  %v3831_v56 = vld [vmem:[%s9782_s24 + $0x4c0] sm:$0xff] }
 0x798   : > { %8561 = vmatpush3.msra.mxu1 %v3745_v19  ;;  %8596 = vmatpush3.msra.mxu0 %v3777_v58  ;;  %v3848_v55 = vld [vmem:[%s9782_s24 + $0x548] sm:$0xff]  ;;  %v3815_v19 = vld [vmem:[%s9782_s24 + $0x440] sm:$0xff] }
 0x799   : > { %8562 = vmatprep.subr.mxu1 %v3760_v61  ;;  %8597 = vmatprep.subr.mxu0 %v3792_v62  ;;  %v3847_v58 = vld [vmem:[%s9782_s24 + $0x540] sm:$0xff]  ;;  %v3814_v61 = vld [vmem:[%s9782_s24 + $0x438] sm:$0xff] }
 0x79a   : > { %8563 = vmatpush3.msra.mxu1 %v3744_v14  ;;  %8598 = vmatpush3.msra.mxu0 %v3776_v3  ;;  %v3846_v62 = vld [vmem:[%s9782_s24 + $0x538] sm:$0xff]  ;;  %v3845_v14 = vld [vmem:[%s9782_s24 + $0x530] sm:$0xff]  ;;  %v3828_v3 = vld [vmem:[%s9782_s24 + $0x4a8] sm:$0xff] }
 0x79b   : > { %8564 = vmatprep.subr.mxu1 %v3759_v4  ;;  %8599 = vmatprep.subr.mxu0 %v3791_v5  ;;  %v3860_v4 = vld [vmem:[%s9782_s24 + $0x5a8] sm:$0xff] }
 0x79c   : > { %8565 = vmatpush3.msra.mxu1 %v3743_v7  ;;  %8600 = vmatpush3.msra.mxu0 %v3775_v8  ;;  %v3812_v5 = vld [vmem:[%s9782_s24 + $0x428] sm:$0xff]  ;;  %v3827_v7 = vld [vmem:[%s9782_s24 + $0x4a0] sm:$0xff] }
 0x79d   : > { %4147 = vmatmul.mubr.f32.vlgmr.msra.gmra.mxu1 %v3667_v50  ;;  %4217 = vmatmul.mubr.f32.vlgmr.msra.gmra.mxu0 %v3669_v9  ;;  %v3859_v8 = vld [vmem:[%s9782_s24 + $0x5a0] sm:$0xff]  ;;  %v10498_v9 = vpop.f32.mrf.mxu1 }
 0x79e   : > { %8604 = vmatprep.subr.mxu1 %v3838_v10  ;;  %8639 = vmatprep.subr.mxu0 %v3870_v11  ;;  %v3843_v50 = vld [vmem:[%s9782_s24 + $0x520] sm:$0xff]  ;;  %v3826_v10 = vld [vmem:[%s9782_s24 + $0x498] sm:$0xff] }
 0x79f   : > { %8605 = vmatpush3.msra.mxu1 %v3822_v12  ;;  %4286 = vmatprep.mubr.f32.mxu1 %v3672_v13  ;;  %v3858_v11 = vld [vmem:[%s9782_s24 + $0x598] sm:$0xff]  ;;  %v3047_v12 = vrot.slane %v10430_v54, %v10329_v17  ;;  %v3055_v13 = vrot.slane %v10430_v54, %v10332_v18 }
 0x7a0   : > { %8640 = vmatpush3.msra.mxu0 %v3854_v15  ;;  %4356 = vmatprep.mubr.f32.mxu0 %v3674_v22  ;;  %v10506_v15 = vpop.f32.mrf.mxu0  ;;  %v3810_v22 = vld [vmem:[%s9782_s24 + $0x418] sm:$0xff] }
 0x7a1   : > { %8606 = vmatprep.subr.mxu1 %v3837_v23  ;;  %8641 = vmatprep.subr.mxu0 %v3869_v24  ;;  %v3842_v23 = vld [vmem:[%s9782_s24 + $0x518] sm:$0xff]  ;;  %v3825_v24 = vld [vmem:[%s9782_s24 + $0x490] sm:$0xff] }
 0x7a2   : > { %8607 = vmatpush3.msra.mxu1 %v3821_v25  ;;  %8642 = vmatpush3.msra.mxu0 %v3853_v26  ;;  %v3857_v25 = vld [vmem:[%s9782_s24 + $0x590] sm:$0xff]  ;;  %v3067_v26 = vrot.slane %v10430_v54, %v10352_v35 }
 0x7a3   : > { %8608 = vmatprep.subr.mxu1 %v3836_v28  ;;  %8643 = vmatprep.subr.mxu0 %v3868_v29  ;;  %v3809_v28 = vld [vmem:[%s9782_s24 + $0x410] sm:$0xff] }
 0x7a4   : > { %8609 = vmatpush3.msra.mxu1 %v3820_v30  ;;  %8644 = vmatpush3.msra.mxu0 %v3852_v31  ;;  %v3841_v29 = vld [vmem:[%s9782_s24 + $0x510] sm:$0xff]  ;;  %v3589_v30 = vpop.f32.mrf.mxu1  ;;  %v3075_v31 = vrot.slane %v10430_v54, %v10355_v36 }
 0x7a5   : > { %8610 = vmatprep.subr.mxu1 %v3835_v32  ;;  %8645 = vmatprep.subr.mxu0 %v3867_v33  ;;  %v3824_v32 = vld [vmem:[%s9782_s24 + $0x488] sm:$0xff] }
 0x7a6   : > { %8611 = vmatpush3.msra.mxu1 %v3819_v34  ;;  %8646 = vmatpush3.msra.mxu0 %v3851_v39  ;;  %v3856_v33 = vld [vmem:[%s9782_s24 + $0x588] sm:$0xff]  ;;  %v3446_v34 = vadd.f32 %v10417_v16, %v3047_v12  ;;  %v3517_v39 = vadd.f32 %v10425_v51, %v3055_v13  ;;  %v3913_v12 = vld [vmem:[%s9782_s24 + $0x750] sm:$0xff] }
 0x7a7   : > { %8612 = vmatprep.subr.mxu1 %v3834_v40  ;;  %8647 = vmatprep.subr.mxu0 %v3866_v41  ;;  %v3660_v40 = vpop.f32.mrf.mxu0  ;;  %v3808_v41 = vld [vmem:[%s9782_s24 + $0x408] sm:$0xff] }
 0x7a8   : > { %8613 = vmatpush3.msra.mxu1 %v3818_v42  ;;  %8648 = vmatpush3.msra.mxu0 %v3850_v43  ;;  %v3840_v42 = vld [vmem:[%s9782_s24 + $0x508] sm:$0xff]  ;;  %v3823_v43 = vld [vmem:[%s9782_s24 + $0x480] sm:$0xff]  ;;  %v3661_v16 = vadd.f32 %v3660_v40, %v3075_v31  ;;  %v3671_v51 = vmax.f32 %v3446_v34, 0.0  ;;  %v3926_v31 = vld [vmem:[%s9782_s24 + $0x7b8] sm:$0xff] }
 0x7a9   : > { %8614 = vmatprep.subr.mxu1 %v3833_v44  ;;  %8649 = vmatprep.subr.mxu0 %v3865_v45  ;;  %v3855_v44 = vld [vmem:[%s9782_s24 + $0x580] sm:$0xff]  ;;  %v3590_v45 = vadd.f32 %v3589_v30, %v3067_v26  ;;  %v3896_v13 = vld [vmem:[%s9782_s24 + $0x6c8] sm:$0xff]  ;;  %v3894_v30 = vld [vmem:[%s9782_s24 + $0x6b8] sm:$0xff] }
 0x7aa   : > { %8615 = vmatpush3.msra.mxu1 %v3817_v46  ;;  %8650 = vmatpush3.msra.mxu0 %v3849_v47  ;;  %v3807_v46 = vld [vmem:[%s9782_s24 + $0x400] sm:$0xff]  ;;  %v3893_v34 = vld [vmem:[%s9782_s24 + $0x6b0] sm:$0xff] }
 0x7ab   : > { %8616 = vmatprep.subr.mxu1 %v3832_v48  ;;  %8651 = vmatprep.subr.mxu0 %v3864_v52  ;;  %v3839_v47 = vld [vmem:[%s9782_s24 + $0x500] sm:$0xff]  ;;  %v3673_v48 = vmax.f32 %v3517_v39, 0.0  ;;  %v3902_v52 = vld [vmem:[%s9782_s24 + $0x6f8] sm:$0xff]  ;;  %v3925_v39 = vld [vmem:[%s9782_s24 + $0x7b0] sm:$0xff] }
 0x7ac   : > { %8617 = vmatpush3.msra.mxu1 %v3816_v53  ;;  %8652 = vmatpush3.msra.mxu0 %v3848_v55  ;;  %v3934_v53 = vld [vmem:[%s9782_s24 + $0x7f8] sm:$0xff]  ;;  %v3927_v26 = vld [vmem:[%s9782_s24 + $0x7c0] sm:$0xff]  ;;  %v3877_v40 = vld [vmem:[%s9782_s24 + $0x630] sm:$0xff] }
 0x7ad   : > { %8618 = vmatprep.subr.mxu1 %v3831_v56  ;;  %8653 = vmatprep.subr.mxu0 %v3863_v57  ;;  %v3886_v55 = vld [vmem:[%s9782_s24 + $0x678] sm:$0xff]  ;;  %v3676_v56 = vmax.f32 %v3590_v45, 0.0  ;;  %v3908_v45 = vld [vmem:[%s9782_s24 + $0x728] sm:$0xff] }
 0x7ae   : > { %8619 = vmatpush3.msra.mxu1 %v3815_v19  ;;  %8654 = vmatpush3.msra.mxu0 %v3847_v58  ;;  %v3918_v57 = vld [vmem:[%s9782_s24 + $0x778] sm:$0xff]  ;;  %v3678_v19 = vmax.f32 %v3661_v16, 0.0  ;;  %v3901_v58 = vld [vmem:[%s9782_s24 + $0x6f0] sm:$0xff]  ;;  %v3875_v16 = vld [vmem:[%s9782_s24 + $0x620] sm:$0xff] }
 0x7af   : > { %8620 = vmatprep.subr.mxu1 %v3830_v59  ;;  %8655 = vmatprep.subr.mxu0 %v3862_v60  ;;  %v3933_v59 = vld [vmem:[%s9782_s24 + $0x7f0] sm:$0xff] }
 0x7b0   : > { %8621 = vmatpush3.msra.mxu1 %v3814_v61  ;;  %8656 = vmatpush3.msra.mxu0 %v3846_v62  ;;  %v3885_v60 = vld [vmem:[%s9782_s24 + $0x670] sm:$0xff]  ;;  %v3900_v62 = vld [vmem:[%s9782_s24 + $0x6e8] sm:$0xff] }
 0x7b1   : > { %8622 = vmatprep.subr.mxu1 %v3829_v63  ;;  %8657 = vmatprep.subr.mxu0 %v3861_v0  ;;  %v3917_v61 = vld [vmem:[%s9782_s24 + $0x770] sm:$0xff]  ;;  %v3932_v63 = vld [vmem:[%s9782_s24 + $0x7e8] sm:$0xff] }
 0x7b2   : > { %8623 = vmatpush3.msra.mxu1 %v3813_v2  ;;  %8658 = vmatpush3.msra.mxu0 %v3845_v14  ;;  %v3884_v0 = vld [vmem:[%s9782_s24 + $0x668] sm:$0xff]  ;;  %v3899_v14 = vld [vmem:[%s9782_s24 + $0x6e0] sm:$0xff] }
 0x7b3   : > { %8624 = vmatprep.subr.mxu1 %v3828_v3  ;;  %8659 = vmatprep.subr.mxu0 %v3860_v4  ;;  %v3916_v2 = vld [vmem:[%s9782_s24 + $0x768] sm:$0xff]  ;;  %v3931_v3 = vld [vmem:[%s9782_s24 + $0x7e0] sm:$0xff] }
 0x7b4   : > { %8625 = vmatpush3.msra.mxu1 %v3812_v5  ;;  %8660 = vmatpush3.msra.mxu0 %v3844_v6  ;;  %v3883_v4 = vld [vmem:[%s9782_s24 + $0x660] sm:$0xff]  ;;  %v3898_v6 = vld [vmem:[%s9782_s24 + $0x6d8] sm:$0xff] }
 0x7b5   : > { %8626 = vmatprep.subr.mxu1 %v3827_v7  ;;  %8661 = vmatprep.subr.mxu0 %v3859_v8  ;;  %v3915_v5 = vld [vmem:[%s9782_s24 + $0x760] sm:$0xff]  ;;  %v3930_v7 = vld [vmem:[%s9782_s24 + $0x7d8] sm:$0xff] }
 0x7b6   : > { %8627 = vmatpush3.msra.mxu1 %v3811_v49  ;;  %8662 = vmatpush3.msra.mxu0 %v3843_v50  ;;  %v3882_v8 = vld [vmem:[%s9782_s24 + $0x658] sm:$0xff]  ;;  %v3897_v50 = vld [vmem:[%s9782_s24 + $0x6d0] sm:$0xff] }
 0x7b7   : > { %8628 = vmatprep.subr.mxu1 %v3826_v10  ;;  %8663 = vmatprep.subr.mxu0 %v3858_v11  ;;  %v3914_v49 = vld [vmem:[%s9782_s24 + $0x758] sm:$0xff]  ;;  %v3929_v10 = vld [vmem:[%s9782_s24 + $0x7d0] sm:$0xff] }
 0x7b8   : > { %8629 = vmatpush3.msra.mxu1 %v3810_v22  ;;  %8664 = vmatpush3.msra.mxu0 %v3842_v23  ;;  %v3881_v11 = vld [vmem:[%s9782_s24 + $0x650] sm:$0xff]  ;;  %v3928_v22 = vld [vmem:[%s9782_s24 + $0x7c8] sm:$0xff] }
 0x7b9   : > { %8630 = vmatprep.subr.mxu1 %v3825_v24  ;;  %8665 = vmatprep.subr.mxu0 %v3857_v25  ;;  %v3880_v23 = vld [vmem:[%s9782_s24 + $0x648] sm:$0xff]  ;;  %v3895_v25 = vld [vmem:[%s9782_s24 + $0x6c0] sm:$0xff] }
 0x7ba   : > { %8631 = vmatpush3.msra.mxu1 %v3809_v28  ;;  %8666 = vmatpush3.msra.mxu0 %v3841_v29  ;;  %v3912_v24 = vld [vmem:[%s9782_s24 + $0x748] sm:$0xff]  ;;  %v3879_v28 = vld [vmem:[%s9782_s24 + $0x640] sm:$0xff] }
 0x7bb   : > { %8632 = vmatprep.subr.mxu1 %v3824_v32  ;;  %8667 = vmatprep.subr.mxu0 %v3856_v33  ;;  %v3911_v29 = vld [vmem:[%s9782_s24 + $0x740] sm:$0xff]  ;;  %v3878_v32 = vld [vmem:[%s9782_s24 + $0x638] sm:$0xff] }
 0x7bc   : > { %8633 = vmatpush3.msra.mxu1 %v3808_v41  ;;  %8668 = vmatpush3.msra.mxu0 %v3840_v42  ;;  %v3910_v33 = vld [vmem:[%s9782_s24 + $0x738] sm:$0xff]  ;;  %v3909_v41 = vld [vmem:[%s9782_s24 + $0x730] sm:$0xff]  ;;  %v3892_v42 = vld [vmem:[%s9782_s24 + $0x6a8] sm:$0xff] }
 0x7bd   : > { %8634 = vmatprep.subr.mxu1 %v3823_v43  ;;  %8669 = vmatprep.subr.mxu0 %v3855_v44  ;;  %v3924_v43 = vld [vmem:[%s9782_s24 + $0x7a8] sm:$0xff] }
 0x7be   : > { %8635 = vmatpush3.msra.mxu1 %v3807_v46  ;;  %8670 = vmatpush3.msra.mxu0 %v3839_v47  ;;  %v3876_v44 = vld [vmem:[%s9782_s24 + $0x628] sm:$0xff]  ;;  %v3891_v46 = vld [vmem:[%s9782_s24 + $0x6a0] sm:$0xff] }
 0x7bf   : > { %4287 = vmatmul.mubr.f32.vlgmr.msra.gmra.mxu1 %v3671_v51  ;;  %4357 = vmatmul.mubr.f32.vlgmr.msra.gmra.mxu0 %v3673_v48  ;;  %v3923_v47 = vld [vmem:[%s9782_s24 + $0x7a0] sm:$0xff]  ;;  %v3890_v48 = vld [vmem:[%s9782_s24 + $0x698] sm:$0xff] }
 0x7c0   : > { %8674 = vmatprep.subr.mxu1 %v3902_v52  ;;  %8709 = vmatprep.subr.mxu0 %v3934_v53  ;;  %v3907_v51 = vld [vmem:[%s9782_s24 + $0x720] sm:$0xff]  ;;  %v3922_v52 = vld [vmem:[%s9782_s24 + $0x798] sm:$0xff]  ;;  %v3063_v53 = vrot.slane %v10430_v54, %v10406_v37 }
 0x7c1   : > { %8675 = vmatpush3.msra.mxu1 %v3886_v55  ;;  %4426 = vmatprep.mubr.f32.mxu1 %v3676_v56  ;;  %v3071_v55 = vrot.slane %v10430_v54, %v10409_v38  ;;  %v3874_v56 = vld [vmem:[%s9782_s24 + $0x618] sm:$0xff]  ;;  %v3888_v54 = vld [vmem:[%s9782_s24 + $0x688] sm:$0xff] }
 0x7c2   : > { %8710 = vmatpush3.msra.mxu0 %v3918_v57  ;;  %4496 = vmatprep.mubr.f32.mxu0 %v3678_v19  ;;  %v3906_v57 = vld [vmem:[%s9782_s24 + $0x718] sm:$0xff]  ;;  %v3889_v19 = vld [vmem:[%s9782_s24 + $0x690] sm:$0xff] }
 0x7c3   : > { %8676 = vmatprep.subr.mxu1 %v3901_v58  ;;  %8711 = vmatprep.subr.mxu0 %v3933_v59  ;;  %v3921_v58 = vld [vmem:[%s9782_s24 + $0x790] sm:$0xff] }
 0x7c4   : > { %8677 = vmatpush3.msra.mxu1 %v3885_v60  ;;  %8712 = vmatpush3.msra.mxu0 %v3917_v61  ;;  %v3873_v59 = vld [vmem:[%s9782_s24 + $0x610] sm:$0xff]  ;;  %v3920_v61 = vld [vmem:[%s9782_s24 + $0x788] sm:$0xff] }
 0x7c5   : > { %8678 = vmatprep.subr.mxu1 %v3900_v62  ;;  %8713 = vmatprep.subr.mxu0 %v3932_v63  ;;  %v3905_v60 = vld [vmem:[%s9782_s24 + $0x710] sm:$0xff]  ;;  %v3588_v62 = vadd.f32 %v10498_v9, %v3063_v53  ;;  %v3659_v63 = vadd.f32 %v10506_v15, %v3071_v55 }
 0x7c6   : > { %8679 = vmatpush3.msra.mxu1 %v3884_v0  ;;  %8714 = vmatpush3.msra.mxu0 %v3916_v2  ;;  %v3872_v0 = vld [vmem:[%s9782_s24 + $0x608] sm:$0xff] }
 0x7c7   : > { %8680 = vmatprep.subr.mxu1 %v3899_v14  ;;  %8715 = vmatprep.subr.mxu0 %v3931_v3  ;;  %v3904_v2 = vld [vmem:[%s9782_s24 + $0x708] sm:$0xff]  ;;  %v3887_v14 = vld [vmem:[%s9782_s24 + $0x680] sm:$0xff] }
 0x7c8   : > { %8681 = vmatpush3.msra.mxu1 %v3883_v4  ;;  %8716 = vmatpush3.msra.mxu0 %v3915_v5  ;;  %v3919_v3 = vld [vmem:[%s9782_s24 + $0x780] sm:$0xff] }
 0x7c9   : > { %8682 = vmatprep.subr.mxu1 %v3898_v6  ;;  %8717 = vmatprep.subr.mxu0 %v3930_v7  ;;  %v3871_v4 = vld [vmem:[%s9782_s24 + $0x600] sm:$0xff]  ;;  %v3675_v6 = vmax.f32 %v3588_v62, 0.0  ;;  %v3677_v7 = vmax.f32 %v3659_v63, 0.0  ;;  %v4537_v62 = vld [vmem:[%s9802_s20 + $0x28] sm:$0xff] }
 0x7ca   : > { %8683 = vmatpush3.msra.mxu1 %v3882_v8  ;;  %8718 = vmatpush3.msra.mxu0 %v3914_v49  ;;  %v3903_v5 = vld [vmem:[%s9782_s24 + $0x700] sm:$0xff] }
 0x7cb   : > { %8684 = vmatprep.subr.mxu1 %v3897_v50  ;;  %8719 = vmatprep.subr.mxu0 %v3929_v10  ;;  %v8316_v10 = vld [vmem:[%s9787_s30] ss:$0 sm:$0xff] }
 0x7cc   : > { %8685 = vmatpush3.msra.mxu1 %v3881_v11  ;;  %8720 = vmatpush3.msra.mxu0 %v3913_v12  ;;  %v4532_v63 = vld [vmem:[%s9802_s20] sm:$0xff] }
 0x7cd   : > { %8686 = vmatprep.subr.mxu1 %v3896_v13  ;;  %8721 = vmatprep.subr.mxu0 %v3928_v22 }
 0x7ce   : > { %8687 = vmatpush3.msra.mxu1 %v3880_v23  ;;  %8722 = vmatpush3.msra.mxu0 %v3912_v24 }
 0x7cf   : > { %8688 = vmatprep.subr.mxu1 %v3895_v25  ;;  %8723 = vmatprep.subr.mxu0 %v3927_v26 }
 0x7d0   : > { %8689 = vmatpush3.msra.mxu1 %v3879_v28  ;;  %8724 = vmatpush3.msra.mxu0 %v3911_v29 }
 0x7d1   : > { %8690 = vmatprep.subr.mxu1 %v3894_v30  ;;  %8725 = vmatprep.subr.mxu0 %v3926_v31 }
 0x7d2   : > { %8691 = vmatpush3.msra.mxu1 %v3878_v32  ;;  %8726 = vmatpush3.msra.mxu0 %v3910_v33 }
 0x7d3   : > { %8692 = vmatprep.subr.mxu1 %v3893_v34  ;;  %8727 = vmatprep.subr.mxu0 %v3925_v39 }
 0x7d4   : > { %8693 = vmatpush3.msra.mxu1 %v3877_v40  ;;  %8728 = vmatpush3.msra.mxu0 %v3909_v41 }
 0x7d5   : > { %8694 = vmatprep.subr.mxu1 %v3892_v42  ;;  %8729 = vmatprep.subr.mxu0 %v3924_v43 }
 0x7d6   : > { %8695 = vmatpush3.msra.mxu1 %v3876_v44  ;;  %8730 = vmatpush3.msra.mxu0 %v3908_v45 }
 0x7d7   : > { %8696 = vmatprep.subr.mxu1 %v3891_v46  ;;  %8731 = vmatprep.subr.mxu0 %v3923_v47 }
 0x7d8   : > { %8697 = vmatpush3.msra.mxu1 %v3875_v16  ;;  %8732 = vmatpush3.msra.mxu0 %v3907_v51 }
 0x7d9   : > { %8698 = vmatprep.subr.mxu1 %v3890_v48  ;;  %8733 = vmatprep.subr.mxu0 %v3922_v52 }
 0x7da   : > { %8699 = vmatpush3.msra.mxu1 %v3874_v56  ;;  %8734 = vmatpush3.msra.mxu0 %v3906_v57 }
 0x7db   : > { %8700 = vmatprep.subr.mxu1 %v3889_v19  ;;  %8735 = vmatprep.subr.mxu0 %v3921_v58 }
 0x7dc   : > { %8701 = vmatpush3.msra.mxu1 %v3873_v59  ;;  %8736 = vmatpush3.msra.mxu0 %v3905_v60  ;;  %v4535_v59 = vld [vmem:[%s9802_s20 + $0x18] sm:$0xff] }
 0x7dd   : > { %8702 = vmatprep.subr.mxu1 %v3888_v54  ;;  %8737 = vmatprep.subr.mxu0 %v3920_v61  ;;  %v4539_v60 = vld [vmem:[%s9802_s20 + $0x38] sm:$0xff]  ;;  %v4538_v54 = vld [vmem:[%s9802_s20 + $0x30] sm:$0xff]  ;;  %v4533_v61 = vld [vmem:[%s9802_s20 + $0x8] sm:$0xff] }
 0x7de   : > { %8703 = vmatpush3.msra.mxu1 %v3872_v0  ;;  %8738 = vmatpush3.msra.mxu0 %v3904_v2  ;;  %v4536_v0 = vld [vmem:[%s9802_s20 + $0x20] sm:$0xff] }
 0x7df   : > { %8704 = vmatprep.subr.mxu1 %v3887_v14  ;;  %8739 = vmatprep.subr.mxu0 %v3919_v3 }
 0x7e0   : > { %8705 = vmatpush3.msra.mxu1 %v3871_v4  ;;  %8740 = vmatpush3.msra.mxu0 %v3903_v5  ;;  %v8317_v5 = vld [vmem:[%s11336_s23] ss:$0 sm:$0xff]  ;;  %s11340_s23 = sld [smem:[#allocation15_spill]] }
 0x7e1   : > { %4427 = vmatmul.mubr.f32.vlgmr.msra.gmra.mxu1 %v3675_v6  ;;  %4497 = vmatmul.mubr.f32.vlgmr.msra.gmra.mxu0 %v3677_v7  ;;  %v8318_v7 = vld [vmem:[%s11337_s2] ss:$0 sm:$0xff]  ;;  %s11341_s2 = sld [smem:[#allocation18_spill]] }
 0x7e2   : > { %9312 = vmatprep.subr.mxu1 %v9716_v1  ;;  %9323 = vmatprep.subr.mxu0 %v9716_v1 }
 0x7e3   : > { %9320 = vmatprep.mubr.msk.f32.mxu1 %vm9717_vm0, %v9716_v1  ;;  %9331 = vmatprep.mubr.msk.f32.mxu0 %vm9717_vm0, %v9716_v1 }
 0x7e4   : > { %9313 = vmatpush3.msra.mxu1 %v4535_v59  ;;  %9324 = vmatpush3.msra.mxu0 %v4539_v60  ;;  %v4572_v59 = vld [vmem:[%s9802_s20 + $0x140] sm:$0xff] }
 0x7e5   : > { %9314 = vmatprep.subr.mxu1 %v9716_v1  ;;  %9325 = vmatprep.subr.mxu0 %v9716_v1  ;;  %v4576_v60 = vld [vmem:[%s9802_s20 + $0x160] sm:$0xff] }
 0x7e6   : > { %9326 = vmatpush3.msra.mxu0 %v4538_v54 }
 0x7e7   : > { %9327 = vmatprep.subr.mxu0 %v9716_v1 }
 0x7e8   : > { %9328 = vmatpush3.msra.mxu0 %v4537_v62 }
 0x7e9   : > { %9329 = vmatprep.subr.mxu0 %v9716_v1 }
 0x7ea   : > { %9330 = vmatpush3.msra.mxu0 %v4536_v0 }
 0x7eb   : > { %9345 = vmatprep.subr.mxu0 %v9716_v1 }
 0x83c   : > { %v8496_v9 = vpop.f32.mrf.mxu1  ;;  %v8531_v8 = vpop.f32.mrf.mxu0 }
 0x83e   : > { %v8497_v15 = vpop.f32.mrf.mxu1  ;;  %v8532_v11 = vpop.f32.mrf.mxu0 }
 0x83f   : > { %v8498_v50 = vadd.f32 %v8497_v15, %v8496_v9  ;;  %v8533_v24 = vadd.f32 %v8532_v11, %v8531_v8  ;;  %v4543_v8 = vld [vmem:[%s9802_s20 + $0x58] sm:$0xff]  ;;  %v4541_v11 = vld [vmem:[%s9802_s20 + $0x48] sm:$0xff] }
 0x841   : > { %v4009_v13 = vadd.f32 %v8498_v50, %v8316_v10  ;;  %v4542_v50 = vld [vmem:[%s9802_s20 + $0x50] sm:$0xff] }
 0x842   : > { %v4546_v10 = vld [vmem:[%s9802_s20 + $0x70] sm:$0xff] }
 0x843   : > { %v4079_v26 = vadd.f32 %v8533_v24, %v4009_v13  ;;  %v4540_v13 = vld [vmem:[%s9802_s20 + $0x40] sm:$0xff]  ;;  %v4555_v24 = vld [vmem:[%s9802_s20 + $0xb8] sm:$0xff] }
 0x85d   : > { %v8566_v49 = vpop.f32.mrf.mxu1  ;;  %v8601_v22 = vpop.f32.mrf.mxu0 }
 0x85f   : > { %v8567_v12 = vpop.f32.mrf.mxu1  ;;  %v8602_v28 = vpop.f32.mrf.mxu0 }
 0x860   : > { %v8568_v25 = vadd.f32 %v8567_v12, %v8566_v49  ;;  %v8603_v32 = vadd.f32 %v8602_v28, %v8601_v22  ;;  %v4547_v49 = vld [vmem:[%s9802_s20 + $0x78] sm:$0xff]  ;;  %v4545_v12 = vld [vmem:[%s9802_s20 + $0x68] sm:$0xff]  ;;  %v4544_v22 = vld [vmem:[%s9802_s20 + $0x60] sm:$0xff] }
 0x861   : > { %v4549_v28 = vld [vmem:[%s9802_s20 + $0x88] sm:$0xff] }
 0x862   : > { %v4149_v30 = vadd.f32 %v8568_v25, %v4079_v26  ;;  %v4550_v25 = vld [vmem:[%s9802_s20 + $0x90] sm:$0xff] }
 0x863   : > { %v4554_v26 = vld [vmem:[%s9802_s20 + $0xb0] sm:$0xff] }
 0x864   : > { %v4219_v34 = vadd.f32 %v8603_v32, %v4149_v30  ;;  %v4548_v30 = vld [vmem:[%s9802_s20 + $0x80] sm:$0xff]  ;;  %v4559_v32 = vld [vmem:[%s9802_s20 + $0xd8] sm:$0xff] }
 0x87f   : > { %v8636_v23 = vpop.f32.mrf.mxu1  ;;  %v8671_v31 = vpop.f32.mrf.mxu0 }
 0x881   : > { %v8637_v29 = vpop.f32.mrf.mxu1  ;;  %v8672_v39 = vpop.f32.mrf.mxu0 }
 0x882   : > { %v8638_v33 = vadd.f32 %v8637_v29, %v8636_v23  ;;  %v8673_v43 = vadd.f32 %v8672_v39, %v8671_v31  ;;  %v4551_v23 = vld [vmem:[%s9802_s20 + $0x98] sm:$0xff]  ;;  %v4553_v29 = vld [vmem:[%s9802_s20 + $0xa8] sm:$0xff]  ;;  %v4552_v31 = vld [vmem:[%s9802_s20 + $0xa0] sm:$0xff] }
 0x883   : > { %v4562_v39 = vld [vmem:[%s9802_s20 + $0xf0] sm:$0xff] }
 0x884   : > { %v4289_v40 = vadd.f32 %v8638_v33, %v4219_v34  ;;  %v4563_v33 = vld [vmem:[%s9802_s20 + $0xf8] sm:$0xff]  ;;  %v4558_v34 = vld [vmem:[%s9802_s20 + $0xd0] sm:$0xff] }
 0x886   : > { %v4359_v46 = vadd.f32 %v8673_v43, %v4289_v40  ;;  %v4557_v40 = vld [vmem:[%s9802_s20 + $0xc8] sm:$0xff]  ;;  %v4560_v43 = vld [vmem:[%s9802_s20 + $0xe0] sm:$0xff] }
 0x8a1   : > { %v8706_v41 = vpop.f32.mrf.mxu1  ;;  %v8741_v42 = vpop.f32.mrf.mxu0 }
 0x8a3   : > { %v8707_v44 = vpop.f32.mrf.mxu1  ;;  %v8742_v45 = vpop.f32.mrf.mxu0 }
 0x8a4   : > { %v8708_v47 = vadd.f32 %v8707_v44, %v8706_v41  ;;  %v8743_v51 = vadd.f32 %v8742_v45, %v8741_v42  ;;  %v4561_v41 = vld [vmem:[%s9802_s20 + $0xe8] sm:$0xff]  ;;  %v4556_v42 = vld [vmem:[%s9802_s20 + $0xc0] sm:$0xff]  ;;  %v4567_v44 = vld [vmem:[%s9802_s20 + $0x118] sm:$0xff] }
 0x8a5   : > { %v4571_v45 = vld [vmem:[%s9802_s20 + $0x138] sm:$0xff] }
 0x8a6   : > { %v4429_v16 = vadd.f32 %v8708_v47, %v4359_v46  ;;  %v4566_v46 = vld [vmem:[%s9802_s20 + $0x110] sm:$0xff] }
 0x8a7   : > { %v4570_v47 = vld [vmem:[%s9802_s20 + $0x130] sm:$0xff] }
 0x8a8   : > { %v4499_v48 = vadd.f32 %v8743_v51, %v4429_v16  ;;  %v4565_v16 = vld [vmem:[%s9802_s20 + $0x108] sm:$0xff] }
 0x8a9   : > { %v4569_v51 = vld [vmem:[%s9802_s20 + $0x128] sm:$0xff] }
 0x8aa   : > { %v4502_v52 = vadd.f32 %v4499_v48, %v10190_v27  ;;  %v4534_v27 = vld [vmem:[%s9802_s20 + $0x10] sm:$0xff]  ;;  %v4564_v48 = vld [vmem:[%s9802_s20 + $0x100] sm:$0xff] }
 0x8ab   : > { %9315 = vmatpush3.msra.mxu1 %v4534_v27 }
 0x8ac   : > { %v4505_v53 = vsel %vm1113_vm2, %v4502_v52, 0.0  ;;  %9316 = vmatprep.subr.mxu1 %v9716_v1 }
 0x8ad   : > { %4506 = vadd.xlane.f32.xlu0 %v4505_v53  ;;  %9317 = vmatpush3.msra.mxu1 %v4533_v61  ;;  %v4575_v53 = vld [vmem:[%s9802_s20 + $0x158] sm:$0xff] }
 0x8ae   : > { %9318 = vmatprep.subr.mxu1 %v9716_v1 }
 0x8af   : > { %9319 = vmatpush3.msra.mxu1 %v4532_v63 }
 0x8b0   : > { %9334 = vmatprep.subr.mxu1 %v9716_v1 }
 0x936   : > { %v4507_v55 = vpop.xlane.xlu0 %4506 }
 0x937   : > { %v4508_v56 = vmul.f32 0.03125, %v4507_v55  ;;  %v4579_v55 = vld [vmem:[%s9802_s20 + $0x178] sm:$0xff] }
 0x939   : > { %v4509_v57 = vsub.f32 %v4502_v52, %v4508_v56  ;;  %v4568_v52 = vld [vmem:[%s9802_s20 + $0x120] sm:$0xff]  ;;  %v4574_v56 = vld [vmem:[%s9802_s20 + $0x150] sm:$0xff] }
 0x93b   : > { %v4510_v19 = vmul.f32 %v4509_v57, %v4509_v57 }
 0x93d   : > { %v4511_v58 = vsel %vm1113_vm2, %v4510_v19, 0.0  ;;  %v4573_v19 = vld [vmem:[%s9802_s20 + $0x148] sm:$0xff] }
 0x93e   : > { %4512 = vadd.xlane.f32.xlu1 %v4511_v58  ;;  %v4577_v58 = vld [vmem:[%s9802_s20 + $0x168] sm:$0xff] }
 0x9c7   : > { %v4513_v2 = vpop.xlane.xlu1 %4512 }
 0x9c8   : > { %v4514_v14 = vmul.f32 0.03125, %v4513_v2 }
 0x9ca   : > { %v4515_v3 = vadd.f32 1e-05, %v4514_v14 }
 0x9cc   : > { %9603 = vrsqrt.f32 %v4515_v3  ;;  %v8323_v3 = vld [vmem:[%s11338_s16 + $0x4] ss:$0 sm:$0xff] }
 0x9d9   : > { %v9604_v4 = vpop.eup %9603 }
 0x9da   : > { %v4517_v6 = vmul.f32 %v9604_v4, %v4509_v57  ;;  %v4578_v57 = vld [vmem:[%s9802_s20 + $0x170] sm:$0xff]  ;;  %v8324_v4 = vld [vmem:[%s11338_s16 + $0x5] ss:$0 sm:$0xff] }
 0x9dc   : > { %v4524_v9 = vmul.f32 %v8317_v5, %v4517_v6 }
 0x9de   : > { %v10626_v15 = vadd.f32 %v8318_v7, %v4524_v9  ;;  %v8319_v7 = vld [vmem:[%s11338_s16] ss:$0 sm:$0xff]  ;;  %v8320_v9 = vld [vmem:[%s11338_s16 + $0x1] ss:$0 sm:$0xff] }
 0x9e0   : > { %9321 = vmatmul.mubr.msk.f32.vlgmr.msra.gmra.mxu1 %vm1113_vm2, %v10626_v15  ;;  %9332 = vmatmul.mubr.msk.f32.vlgmr.msra.gmra.mxu0 %vm1113_vm2, %v10626_v15 }
 0x9e1   : > { %9335 = vmatpush3.msra.mxu1 %v4543_v8  ;;  %9346 = vmatpush3.msra.mxu0 %v4547_v49 }
 0x9e2   : > { %9336 = vmatprep.subr.mxu1 %v9716_v1  ;;  %9347 = vmatprep.subr.mxu0 %v9716_v1 }
 0x9e3   : > { %9337 = vmatpush3.msra.mxu1 %v4542_v50  ;;  %9348 = vmatpush3.msra.mxu0 %v4546_v10 }
 0x9e4   : > { %9338 = vmatprep.subr.mxu1 %v9716_v1  ;;  %9349 = vmatprep.subr.mxu0 %v9716_v1 }
 0x9e5   : > { %9339 = vmatpush3.msra.mxu1 %v4541_v11  ;;  %9350 = vmatpush3.msra.mxu0 %v4545_v12 }
 0x9e6   : > { %9340 = vmatprep.subr.mxu1 %v9716_v1  ;;  %9351 = vmatprep.subr.mxu0 %v9716_v1 }
 0x9e7   : > { %9341 = vmatpush3.msra.mxu1 %v4540_v13  ;;  %9342 = vmatprep.mubr.msk.f32.mxu1 %vm9717_vm0, %v9716_v1  ;;  %v8325_v13 = vld [vmem:[%s11338_s16 + $0x6] ss:$0 sm:$0xff] }
 0x9e8   : > { %9352 = vmatpush3.msra.mxu0 %v4544_v22  ;;  %9353 = vmatprep.mubr.msk.f32.mxu0 %vm9717_vm0, %v9716_v1  ;;  %v8326_v22 = vld [vmem:[%s11338_s16 + $0x7] ss:$0 sm:$0xff] }
 0x9e9   : > { %9343 = vmatmul.mubr.msk.f32.vlgmr.msra.gmra.mxu1 %vm1113_vm2, %v10626_v15  ;;  %9354 = vmatmul.mubr.msk.f32.vlgmr.msra.gmra.mxu0 %vm1113_vm2, %v10626_v15 }
 0x9ea   : > { %9356 = vmatprep.subr.mxu1 %v9716_v1  ;;  %9367 = vmatprep.subr.mxu0 %v9716_v1 }
 0x9eb   : > { %9357 = vmatpush3.msra.mxu1 %v4551_v23  ;;  %9368 = vmatpush3.msra.mxu0 %v4555_v24 }
 0x9ec   : > { %9358 = vmatprep.subr.mxu1 %v9716_v1  ;;  %9369 = vmatprep.subr.mxu0 %v9716_v1 }
 0x9ed   : > { %9359 = vmatpush3.msra.mxu1 %v4550_v25  ;;  %9370 = vmatpush3.msra.mxu0 %v4554_v26  ;;  %v8321_v25 = vld [vmem:[%s11338_s16 + $0x2] ss:$0 sm:$0xff]  ;;  %v8322_v26 = vld [vmem:[%s11338_s16 + $0x3] ss:$0 sm:$0xff] }
 0x9ee   : > { %9360 = vmatprep.subr.mxu1 %v9716_v1  ;;  %9371 = vmatprep.subr.mxu0 %v9716_v1 }
 0x9ef   : > { %9361 = vmatpush3.msra.mxu1 %v4549_v28  ;;  %9372 = vmatpush3.msra.mxu0 %v4553_v29 }
 0x9f0   : > { %9362 = vmatprep.subr.mxu1 %v9716_v1  ;;  %9373 = vmatprep.subr.mxu0 %v9716_v1 }
 0x9f1   : > { %9363 = vmatpush3.msra.mxu1 %v4548_v30  ;;  %9364 = vmatprep.mubr.msk.f32.mxu1 %vm9717_vm0, %v9716_v1 }
 0x9f2   : > { %9374 = vmatpush3.msra.mxu0 %v4552_v31  ;;  %9375 = vmatprep.mubr.msk.f32.mxu0 %vm9717_vm0, %v9716_v1 }
 0x9f3   : > { %9365 = vmatmul.mubr.msk.f32.vlgmr.msra.gmra.mxu1 %vm1113_vm2, %v10626_v15  ;;  %9376 = vmatmul.mubr.msk.f32.vlgmr.msra.gmra.mxu0 %vm1113_vm2, %v10626_v15 }
 0x9f4   : > { %9378 = vmatprep.subr.mxu1 %v9716_v1  ;;  %9389 = vmatprep.subr.mxu0 %v9716_v1 }
 0x9f5   : > { %9379 = vmatpush3.msra.mxu1 %v4559_v32  ;;  %9390 = vmatpush3.msra.mxu0 %v4563_v33 }
 0x9f6   : > { %9380 = vmatprep.subr.mxu1 %v9716_v1  ;;  %9391 = vmatprep.subr.mxu0 %v9716_v1 }
 0x9f7   : > { %9381 = vmatpush3.msra.mxu1 %v4558_v34  ;;  %9392 = vmatpush3.msra.mxu0 %v4562_v39  ;;  %v8327_v34 = vld [vmem:[%s11338_s16 + $0x8] ss:$0 sm:$0xff]  ;;  %v8328_v39 = vld [vmem:[%s11338_s16 + $0x9] ss:$0 sm:$0xff] }
 0x9f8   : > { %9382 = vmatprep.subr.mxu1 %v9716_v1  ;;  %9393 = vmatprep.subr.mxu0 %v9716_v1 }
 0x9f9   : > { %9383 = vmatpush3.msra.mxu1 %v4557_v40  ;;  %9394 = vmatpush3.msra.mxu0 %v4561_v41 }
 0x9fa   : > { %9384 = vmatprep.subr.mxu1 %v9716_v1  ;;  %9395 = vmatprep.subr.mxu0 %v9716_v1 }
 0x9fb   : > { %9385 = vmatpush3.msra.mxu1 %v4556_v42  ;;  %9386 = vmatprep.mubr.msk.f32.mxu1 %vm9717_vm0, %v9716_v1 }
 0x9fc   : > { %9396 = vmatpush3.msra.mxu0 %v4560_v43  ;;  %9397 = vmatprep.mubr.msk.f32.mxu0 %vm9717_vm0, %v9716_v1 }
 0x9fd   : > { %9387 = vmatmul.mubr.msk.f32.vlgmr.msra.gmra.mxu1 %vm1113_vm2, %v10626_v15  ;;  %9398 = vmatmul.mubr.msk.f32.vlgmr.msra.gmra.mxu0 %vm1113_vm2, %v10626_v15 }
 0x9fe   : > { %9400 = vmatprep.subr.mxu1 %v9716_v1  ;;  %9411 = vmatprep.subr.mxu0 %v9716_v1 }
 0x9ff   : > { %9401 = vmatpush3.msra.mxu1 %v4567_v44  ;;  %9412 = vmatpush3.msra.mxu0 %v4571_v45 }
 0xa00   : > { %9402 = vmatprep.subr.mxu1 %v9716_v1  ;;  %9413 = vmatprep.subr.mxu0 %v9716_v1 }
 0xa01   : > { %9403 = vmatpush3.msra.mxu1 %v4566_v46  ;;  %9414 = vmatpush3.msra.mxu0 %v4570_v47 }
 0xa02   : > { %9404 = vmatprep.subr.mxu1 %v9716_v1  ;;  %9415 = vmatprep.subr.mxu0 %v9716_v1 }
 0xa03   : > { %9405 = vmatpush3.msra.mxu1 %v4565_v16  ;;  %9416 = vmatpush3.msra.mxu0 %v4569_v51 }
 0xa04   : > { %9406 = vmatprep.subr.mxu1 %v9716_v1  ;;  %9417 = vmatprep.subr.mxu0 %v9716_v1 }
 0xa05   : > { %9407 = vmatpush3.msra.mxu1 %v4564_v48  ;;  %9408 = vmatprep.mubr.msk.f32.mxu1 %vm9717_vm0, %v9716_v1 }
 0xa06   : > { %9418 = vmatpush3.msra.mxu0 %v4568_v52  ;;  %9419 = vmatprep.mubr.msk.f32.mxu0 %vm9717_vm0, %v9716_v1 }
 0xa07   : > { %9409 = vmatmul.mubr.msk.f32.vlgmr.msra.gmra.mxu1 %vm1113_vm2, %v10626_v15  ;;  %9420 = vmatmul.mubr.msk.f32.vlgmr.msra.gmra.mxu0 %vm1113_vm2, %v10626_v15 }
 0xa08   : > { %9422 = vmatprep.subr.mxu1 %v9716_v1  ;;  %9433 = vmatprep.subr.mxu0 %v9716_v1 }
 0xa09   : > { %9423 = vmatpush3.msra.mxu1 %v4575_v53  ;;  %9434 = vmatpush3.msra.mxu0 %v4579_v55 }
 0xa0a   : > { %9424 = vmatprep.subr.mxu1 %v9716_v1  ;;  %9435 = vmatprep.subr.mxu0 %v9716_v1 }
 0xa0b   : > { %9425 = vmatpush3.msra.mxu1 %v4574_v56  ;;  %9436 = vmatpush3.msra.mxu0 %v4578_v57 }
 0xa0c   : > { %9426 = vmatprep.subr.mxu1 %v9716_v1  ;;  %9437 = vmatprep.subr.mxu0 %v9716_v1 }
 0xa0d   : > { %9427 = vmatpush3.msra.mxu1 %v4573_v19  ;;  %9438 = vmatpush3.msra.mxu0 %v4577_v58 }
 0xa0e   : > { %9428 = vmatprep.subr.mxu1 %v9716_v1  ;;  %9439 = vmatprep.subr.mxu0 %v9716_v1 }
 0xa0f   : > { %9429 = vmatpush3.msra.mxu1 %v4572_v59  ;;  %9430 = vmatprep.mubr.msk.f32.mxu1 %vm9717_vm0, %v9716_v1 }
 0xa10   : > { %9440 = vmatpush3.msra.mxu0 %v4576_v60  ;;  %9441 = vmatprep.mubr.msk.f32.mxu0 %vm9717_vm0, %v9716_v1 }
 0xa11   : > { %9431 = vmatmul.mubr.msk.f32.vlgmr.msra.gmra.mxu1 %vm1113_vm2, %v10626_v15  ;;  %9442 = vmatmul.mubr.msk.f32.vlgmr.msra.gmra.mxu0 %vm1113_vm2, %v10626_v15 }
 0xa12   : > { %9444 = vmatprep.subr.mxu1 %v9716_v1  ;;  %9449 = vmatprep.subr.mxu0 %v9716_v1 }
 0xa13   : > { %9446 = vmatprep.mubr.msk.f32.mxu1 %vm9717_vm0, %v9716_v1  ;;  %9451 = vmatprep.mubr.msk.f32.mxu0 %vm9717_vm0, %v9716_v1 }
 0xaa0   : > { %v4733_v27 = vpop.f32.mrf.mxu1  ;;  %v4803_v54 = vpop.f32.mrf.mxu0 }
 0xaa1   : > { %v4734_v11 = vadd.f32 %v8319_v7, %v4733_v27  ;;  %v4804_v12 = vadd.f32 %v8320_v9, %v4803_v54 }
 0xaa2   : > { %v9322_v61 = vpop.f32.mrf.mxu1  ;;  %v9333_v62 = vpop.f32.mrf.mxu0 }
 0xaa9   : > { %v4873_v63 = vpop.f32.mrf.mxu1  ;;  %v4943_v0 = vpop.f32.mrf.mxu0 }
 0xaaa   : > { %v4874_v32 = vadd.f32 %v8321_v25, %v4873_v63  ;;  %v4944_v33 = vadd.f32 %v8322_v26, %v4943_v0 }
 0xaab   : > { %v9344_v2 = vpop.f32.mrf.mxu1  ;;  %v9355_v14 = vpop.f32.mrf.mxu0 }
 0xab3   : > { %v5013_v5 = vpop.f32.mrf.mxu1  ;;  %v5083_v6 = vpop.f32.mrf.mxu0 }
 0xab4   : > { %v5014_v8 = vadd.f32 %v8323_v3, %v5013_v5  ;;  %v5084_v49 = vadd.f32 %v8324_v4, %v5083_v6 }
 0xab5   : > { %v9366_v50 = vpop.f32.mrf.mxu1  ;;  %v9377_v10 = vpop.f32.mrf.mxu0 }
 0xab6   : > { %9445 = vmatpush3.xpose.msk.msra.mxu1 %vm1957_vm3, %v5014_v8  ;;  %9450 = vmatpush3.xpose.msk.msra.mxu0 %vm1957_vm3, %v5084_v49 }
 0xab7   : > { %9454 = vmatprep.subr.mxu1 %v9716_v1  ;;  %9459 = vmatprep.subr.mxu0 %v9716_v1 }
 0xab9   : > { %9447 = vmatmul.mubr.msk.f32.vlgmr.msra.gmra.mxu1 %vm1957_vm3, %v4734_v11  ;;  %9452 = vmatmul.mubr.msk.f32.vlgmr.msra.gmra.mxu0 %vm1957_vm3, %v4804_v12 }
 0xaba   : > { %9456 = vmatprep.mubr.msk.f32.mxu1 %vm9717_vm0, %v9716_v1  ;;  %9461 = vmatprep.mubr.msk.f32.mxu0 %vm9717_vm0, %v9716_v1 }
 0xabd   : > { %v5153_v23 = vpop.f32.mrf.mxu1  ;;  %v5223_v24 = vpop.f32.mrf.mxu0 }
 0xabe   : > { %v5154_v28 = vadd.f32 %v8325_v13, %v5153_v23  ;;  %v5224_v29 = vadd.f32 %v8326_v22, %v5223_v24 }
 0xabf   : > { %v9388_v30 = vpop.f32.mrf.mxu1  ;;  %v9399_v31 = vpop.f32.mrf.mxu0 }
 0xac0   : > { %9455 = vmatpush3.xpose.msk.msra.mxu1 %vm1957_vm3, %v5154_v28  ;;  %9460 = vmatpush3.xpose.msk.msra.mxu0 %vm1957_vm3, %v5224_v29 }
 0xac1   : > { %9464 = vmatprep.subr.mxu1 %v9716_v1  ;;  %9469 = vmatprep.subr.mxu0 %v9716_v1 }
 0xac3   : > { %9457 = vmatmul.mubr.msk.f32.vlgmr.msra.gmra.mxu1 %vm1957_vm3, %v4874_v32  ;;  %9462 = vmatmul.mubr.msk.f32.vlgmr.msra.gmra.mxu0 %vm1957_vm3, %v4944_v33  ;;  %v8330_v32 = vld [vmem:[%s11338_s16 + $0xb] ss:$0 sm:$0xff] }
 0xac4   : > { %9466 = vmatprep.mubr.msk.f32.mxu1 %vm9717_vm0, %v9716_v1  ;;  %9471 = vmatprep.mubr.msk.f32.mxu0 %vm9717_vm0, %v9716_v1 }
 0xac7   : > { %v5293_v40 = vpop.f32.mrf.mxu1  ;;  %v5363_v41 = vpop.f32.mrf.mxu0 }
 0xac8   : > { %v5294_v42 = vadd.f32 %v8327_v34, %v5293_v40  ;;  %v5364_v43 = vadd.f32 %v8328_v39, %v5363_v41  ;;  %v8329_v34 = vld [vmem:[%s11338_s16 + $0xa] ss:$0 sm:$0xff] }
 0xac9   : > { %v9410_v44 = vpop.f32.mrf.mxu1  ;;  %v9421_v45 = vpop.f32.mrf.mxu0 }
 0xaca   : > { %9465 = vmatpush3.msra.mxu1 %v5294_v42  ;;  %9470 = vmatpush3.msra.mxu0 %v5364_v43 }
 0xacb   : > { %9474 = vmatprep.subr.mxu1 %v9716_v1  ;;  %9479 = vmatprep.subr.mxu0 %v9716_v1 }
 0xad1   : > { %v10788_v46 = vpop.f32.mrf.mxu1  ;;  %v10790_v47 = vpop.f32.mrf.mxu0 }
 0xad2   : > { %v5504_v41 = vadd.f32 %v8330_v32, %v10790_v47  ;;  %v5434_v43 = vadd.f32 %v8329_v34, %v10788_v46  ;;  %v6526_v32 = vld [vmem:[%s11341_s2 + $0x110] sm:$0xff]  ;;  %v6511_v34 = vld [vmem:[%s11341_s2 + $0x98] sm:$0xff] }
 0xad3   : > { %v9432_v16 = vpop.f32.mrf.mxu1  ;;  %v9443_v51 = vpop.f32.mrf.mxu0 }
 0xad4   : > { %v6151_v16 = vld [vmem:[%s11339_s22] sm:$0xff]  ;;  %v6152_v51 = vld [vmem:[%s11339_s22 + $0x8] sm:$0xff] }
 0xb79   : > { %v5579_v48 = vpop.f32.mrf.mxu1  ;;  %v5655_v52 = vpop.f32.mrf.mxu0 }
 0xb7a   : > { %v5811_v53 = vmul.f32 0.35355338, %v5579_v48  ;;  %v5812_v55 = vmul.f32 0.35355338, %v5655_v52  ;;  %v6154_v48 = vld [vmem:[%s11339_s22 + $0x18] sm:$0xff] }
 0xb7b   : > { %v9448_v56 = vpop.f32.mrf.mxu1  ;;  %v9453_v57 = vpop.f32.mrf.mxu0 }
 0xb7c   : > { %v5818_v19 = vsel %vm1957_vm3, %v5812_v55, -inf  ;;  %v5815_v58 = vsel %vm1957_vm3, %v5811_v53, -inf }
 0xb7d   : > { %5819 = vmax.xlane.f32.xlu1 %v5818_v19  ;;  %5816 = vmax.xlane.f32.xlu0 %v5815_v58 }
 0xb83   : > { %v5731_v59 = vpop.f32.mrf.mxu1  ;;  %v5807_v60 = vpop.f32.mrf.mxu0 }
 0xb84   : > { %v5813_v27 = vmul.f32 0.35355338, %v5731_v59  ;;  %v5814_v54 = vmul.f32 0.35355338, %v5807_v60 }
 0xb85   : > { %v9458_v61 = vpop.f32.mrf.mxu1  ;;  %v9463_v62 = vpop.f32.mrf.mxu0 }
 0xb86   : > { %v5824_v63 = vsel %vm1957_vm3, %v5814_v54, -inf  ;;  %v5821_v0 = vsel %vm1957_vm3, %v5813_v27, -inf }
 0xb87   : > { %5825 = vmax.xlane.f32.xlu1 %v5824_v63  ;;  %5822 = vmax.xlane.f32.xlu0 %v5821_v0 }
 0xc06   : > { %v5820_v2 = vpop.xlane.xlu1 %5819  ;;  %v5817_v14 = vpop.xlane.xlu0 %5816 }
 0xc07   : > { %v5828_v3 = vsub.f32 %v5812_v55, %v5820_v2  ;;  %v5827_v4 = vsub.f32 %v5811_v53, %v5817_v14  ;;  %v6153_v53 = vld [vmem:[%s11339_s22 + $0x10] sm:$0xff] }
 0xc09   : > { %v5833_v5 = vmul.f32 1.442695, %v5828_v3  ;;  %v5831_v6 = vmul.f32 1.442695, %v5827_v4 }
 0xc0b   : > { %9605 = vpow2.f32 %v5833_v5 }
 0xc0c   : > { %9607 = vpow2.f32 %v5831_v6 }
 0xc10   : > { %v5826_v7 = vpop.xlane.xlu1 %5825  ;;  %v5823_v9 = vpop.xlane.xlu0 %5822 }
 0xc11   : > { %v5830_v8 = vsub.f32 %v5814_v54, %v5826_v7  ;;  %v5829_v49 = vsub.f32 %v5813_v27, %v5823_v9 }
 0xc13   : > { %v5837_v50 = vmul.f32 1.442695, %v5830_v8  ;;  %v5835_v10 = vmul.f32 1.442695, %v5829_v49  ;;  %v8359_v8 = vld [vmem:[%s11340_s23] ss:$0 sm:$0xff] }
 0xc14   : > { %s11342_s23 = sld [smem:[#allocation16_spill]] }
 0xc15   : > { %9609 = vpow2.f32 %v5837_v50 }
 0xc16   : > { %9611 = vpow2.f32 %v5835_v10 }
 0xc18   : > { %v9606_v11 = vpop.eup %9605 }
 0xc19   : > { %v9608_v12 = vpop.eup %9607  ;;  %v5842_v13 = vsel %vm1957_vm3, %v9606_v11, 0.0 }
 0xc1a   : > { %5843 = vadd.xlane.f32.xlu1 %v5842_v13  ;;  %v5839_v22 = vsel %vm1957_vm3, %v9608_v12, 0.0 }
 0xc1b   : > { %5840 = vadd.xlane.f32.xlu0 %v5839_v22 }
 0xc22   : > { %v9610_v23 = vpop.eup %9609 }
 0xc23   : > { %v9612_v24 = vpop.eup %9611  ;;  %v5848_v25 = vsel %vm1957_vm3, %v9610_v23, 0.0 }
 0xc24   : > { %5849 = vadd.xlane.f32.xlu1 %v5848_v25  ;;  %v5845_v26 = vsel %vm1957_vm3, %v9612_v24, 0.0  ;;  %v6541_v25 = vld [vmem:[%s11341_s2 + $0x188] sm:$0xff] }
 0xc25   : > { %5846 = vadd.xlane.f32.xlu0 %v5845_v26  ;;  %v6543_v26 = vld [vmem:[%s11341_s2 + $0x198] sm:$0xff] }
 0xca3   : > { %v5844_v28 = vpop.xlane.xlu1 %5843 }
 0xca4   : > { %9613 = vrcp.f32 %v5844_v28  ;;  %v5841_v29 = vpop.xlane.xlu0 %5840  ;;  %v6542_v28 = vld [vmem:[%s11341_s2 + $0x190] sm:$0xff] }
 0xca5   : > { %9615 = vrcp.f32 %v5841_v29  ;;  %v6525_v29 = vld [vmem:[%s11341_s2 + $0x108] sm:$0xff] }
 0xcad   : > { %v5850_v30 = vpop.xlane.xlu1 %5849 }
 0xcae   : > { %9617 = vrcp.f32 %v5850_v30  ;;  %v5847_v31 = vpop.xlane.xlu0 %5846  ;;  %v6527_v30 = vld [vmem:[%s11341_s2 + $0x118] sm:$0xff] }
 0xcaf   : > { %9619 = vrcp.f32 %v5847_v31  ;;  %v6524_v31 = vld [vmem:[%s11341_s2 + $0x100] sm:$0xff] }
 0xcb1   : > { %v9614_v33 = vpop.eup %9613 }
 0xcb2   : > { %v9616_v39 = vpop.eup %9615  ;;  %v5854_v40 = vmul.f32 %v9614_v33, %v9606_v11  ;;  %v6509_v33 = vld [vmem:[%s11341_s2 + $0x88] sm:$0xff] }
 0xcb3   : > { %v5852_v42 = vmul.f32 %v9616_v39, %v9608_v12  ;;  %v6508_v39 = vld [vmem:[%s11341_s2 + $0x80] sm:$0xff] }
 0xcb4   : > { %9472 = vmatmul.mubr.msk.f32.vlgmr.msra.gmra.mxu0 %vm1957_vm3, %v5854_v40  ;;  %v6510_v40 = vld [vmem:[%s11341_s2 + $0x90] sm:$0xff] }
 0xcb5   : > { %9467 = vmatmul.mubr.msk.f32.vlgmr.msra.gmra.mxu1 %vm1957_vm3, %v5852_v42  ;;  %9480 = vmatpush3.msra.mxu0 %v5504_v41  ;;  %v6493_v41 = vld [vmem:[%s11341_s2 + $0x8] sm:$0xff]  ;;  %v6495_v42 = vld [vmem:[%s11341_s2 + $0x18] sm:$0xff] }
 0xcb6   : > { %9475 = vmatpush3.msra.mxu1 %v5434_v43  ;;  %9476 = vmatprep.mubr.msk.f32.mxu1 %vm9717_vm0, %v9716_v1  ;;  %v6492_v43 = vld [vmem:[%s11341_s2] sm:$0xff] }
 0xcb7   : > { %9481 = vmatprep.mubr.msk.f32.mxu0 %vm9717_vm0, %v9716_v1  ;;  %9484 = vmatprep.subr.mxu1 %v9716_v1 }
 0xcb8   : > { %9489 = vmatprep.subr.mxu0 %v9716_v1 }
 0xcbb   : > { %v9618_v44 = vpop.eup %9617 }
 0xcbc   : > { %v9620_v45 = vpop.eup %9619  ;;  %v5858_v46 = vmul.f32 %v9618_v44, %v9610_v23  ;;  %v6494_v44 = vld [vmem:[%s11341_s2 + $0x10] sm:$0xff] }
 0xcbd   : > { %v5856_v47 = vmul.f32 %v9620_v45, %v9612_v24  ;;  %v6545_v45 = vld [vmem:[%s11341_s2 + $0x1a8] sm:$0xff] }
 0xcbe   : > { %9482 = vmatmul.mubr.msk.f32.vlgmr.msra.gmra.mxu0 %vm1957_vm3, %v5858_v46  ;;  %v6547_v46 = vld [vmem:[%s11341_s2 + $0x1b8] sm:$0xff] }
 0xcbf   : > { %9477 = vmatmul.mubr.msk.f32.vlgmr.msra.gmra.mxu1 %vm1957_vm3, %v5856_v47  ;;  %9491 = vmatprep.mubr.msk.f32.mxu0 %vm9717_vm0, %v9716_v1 }
 0xcc0   : > { %9486 = vmatprep.mubr.msk.f32.mxu1 %vm9717_vm0, %v9716_v1  ;;  %9485 = vmatpush3.msra.mxu1 %v6151_v16 }
 0xcc1   : > { %9490 = vmatpush3.msra.mxu0 %v6152_v51  ;;  %9494 = vmatprep.subr.mxu1 %v9716_v1 }
 0xcc2   : > { %9499 = vmatprep.subr.mxu0 %v9716_v1 }
 0xd74   : > { %v6001_v52 = vpop.f32.mrf.mxu0 }
 0xd75   : > { %v5928_v55 = vpop.f32.mrf.mxu1  ;;  %9492 = vmatmul.mubr.msk.f32.vlgmr.msra.gmra.mxu0 %vm1957_vm3, %v6001_v52  ;;  %v8360_v52 = vld [vmem:[%s11342_s23] ss:$0 sm:$0xff]  ;;  %s11345_s23 = sld [smem:[#allocation19_spill]] }
 0xd76   : > { %9487 = vmatmul.mubr.msk.f32.vlgmr.msra.gmra.mxu1 %vm1957_vm3, %v5928_v55  ;;  %v9473_v56 = vpop.f32.mrf.mxu0  ;;  %9500 = vmatpush3.msra.mxu0 %v6154_v48  ;;  %v8361_v55 = vld [vmem:[%s11343_s3] ss:$0 sm:$0xff]  ;;  %s11344_s3 = sld [smem:[#allocation20_spill]] }
 0xd77   : > { %v9468_v57 = vpop.f32.mrf.mxu1  ;;  %9495 = vmatpush3.msra.mxu1 %v6153_v53  ;;  %9496 = vmatprep.mubr.msk.f32.mxu1 %vm9717_vm0, %v9716_v1 }
 0xd78   : > { %9501 = vmatprep.mubr.msk.f32.mxu0 %vm9717_vm0, %v9716_v1  ;;  %6667 = vmatprep.subr.mxu1 %v6541_v25  ;;  %v6500_v25 = vld [vmem:[%s11341_s2 + $0x40] sm:$0xff] }
 0xd79   : > { %6738 = vmatprep.subr.mxu0 %v6543_v26  ;;  %v6502_v26 = vld [vmem:[%s11341_s2 + $0x50] sm:$0xff] }
 0xd7e   : > { %v6147_v19 = vpop.f32.mrf.mxu0 }
 0xd7f   : > { %v6074_v58 = vpop.f32.mrf.mxu1  ;;  %9502 = vmatmul.mubr.msk.f32.vlgmr.msra.gmra.mxu0 %vm1957_vm3, %v6147_v19  ;;  %v6544_v19 = vld [vmem:[%s11341_s2 + $0x1a0] sm:$0xff] }
 0xd80   : > { %9497 = vmatmul.mubr.msk.f32.vlgmr.msra.gmra.mxu1 %vm1957_vm3, %v6074_v58  ;;  %v9483_v59 = vpop.f32.mrf.mxu0  ;;  %6778 = vmatprep.mubr.f32.mxu0 %v9716_v1  ;;  %v6546_v58 = vld [vmem:[%s11341_s2 + $0x1b0] sm:$0xff] }
 0xd81   : > { %v9478_v60 = vpop.f32.mrf.mxu1  ;;  %6707 = vmatprep.mubr.f32.mxu1 %v9716_v1  ;;  %6739 = vmatpush1.msra.mxu0 %v6542_v28  ;;  %v6529_v59 = vld [vmem:[%s11341_s2 + $0x128] sm:$0xff]  ;;  %v6555_v28 = vld [vmem:[%s11341_s2 + $0x1f8] sm:$0xff] }
 0xd82   : > { %6740 = vmatprep.subr.mxu0 %v6527_v30  ;;  %v6531_v60 = vld [vmem:[%s11341_s2 + $0x138] sm:$0xff]  ;;  %v6554_v30 = vld [vmem:[%s11341_s2 + $0x1f0] sm:$0xff] }
 0xd83   : > { %6741 = vmatpush1.msra.mxu0 %v6526_v32  ;;  %v6539_v32 = vld [vmem:[%s11341_s2 + $0x178] sm:$0xff] }
 0xd84   : > { %6742 = vmatprep.subr.mxu0 %v6511_v34  ;;  %v6538_v34 = vld [vmem:[%s11341_s2 + $0x170] sm:$0xff] }
 0xd85   : > { %6743 = vmatpush1.msra.mxu0 %v6510_v40  ;;  %v6523_v40 = vld [vmem:[%s11341_s2 + $0xf8] sm:$0xff] }
 0xd86   : > { %6744 = vmatprep.subr.mxu0 %v6495_v42  ;;  %v6522_v42 = vld [vmem:[%s11341_s2 + $0xf0] sm:$0xff] }
 0xd87   : > { %6745 = vmatpush1.msra.mxu0 %v6494_v44  ;;  %v6507_v44 = vld [vmem:[%s11341_s2 + $0x78] sm:$0xff] }
 0xd88   : > { %6880 = vmatprep.subr.mxu0 %v6547_v46  ;;  %v6506_v46 = vld [vmem:[%s11341_s2 + $0x70] sm:$0xff] }
 0xe35   : > { %v6297_v27 = vpop.f32.mrf.mxu0 }
 0xe36   : > { %v6224_v54 = vpop.f32.mrf.mxu1  ;;  %v6448_v0 = vsel %vm1113_vm2, %v6297_v27, 0.0  ;;  %v6528_v27 = vld [vmem:[%s11341_s2 + $0x120] sm:$0xff] }
 0xe37   : > { %v9493_v61 = vpop.f32.mrf.mxu0  ;;  %v6447_v63 = vsel %vm1113_vm2, %v6224_v54, 0.0  ;;  %v6530_v54 = vld [vmem:[%s11341_s2 + $0x130] sm:$0xff] }
 0xe38   : > { %v9488_v62 = vpop.f32.mrf.mxu1  ;;  %v6449_v14 = vadd.f32 %v6448_v0, %v6447_v63  ;;  %v6513_v61 = vld [vmem:[%s11341_s2 + $0xa8] sm:$0xff]  ;;  %v6512_v63 = vld [vmem:[%s11341_s2 + $0xa0] sm:$0xff]  ;;  %v6514_v0 = vld [vmem:[%s11341_s2 + $0xb0] sm:$0xff] }
 0xe39   : > { %v6515_v62 = vld [vmem:[%s11341_s2 + $0xb8] sm:$0xff] }
 0xe3f   : > { %v6443_v2 = vpop.f32.mrf.mxu0 }
 0xe40   : > { %v6370_v3 = vpop.f32.mrf.mxu1  ;;  %v6452_v9 = vsel %vm1113_vm2, %v6443_v2, 0.0  ;;  %v6497_v2 = vld [vmem:[%s11341_s2 + $0x28] sm:$0xff] }
 0xe41   : > { %v6450_v4 = vsel %vm1113_vm2, %v6370_v3, 0.0  ;;  %v9503_v5 = vpop.f32.mrf.mxu0  ;;  %v6496_v3 = vld [vmem:[%s11341_s2 + $0x20] sm:$0xff] }
 0xe42   : > { %v6451_v6 = vadd.f32 %v6450_v4, %v6449_v14  ;;  %v9498_v7 = vpop.f32.mrf.mxu1  ;;  %v6499_v14 = vld [vmem:[%s11341_s2 + $0x38] sm:$0xff]  ;;  %v6498_v4 = vld [vmem:[%s11341_s2 + $0x30] sm:$0xff]  ;;  %v6549_v5 = vld [vmem:[%s11341_s2 + $0x1c8] sm:$0xff] }
 0xe43   : > { %v6548_v7 = vld [vmem:[%s11341_s2 + $0x1c0] sm:$0xff] }
 0xe44   : > { %v6453_v49 = vadd.f32 %v6452_v9, %v6451_v6  ;;  %v6551_v6 = vld [vmem:[%s11341_s2 + $0x1d8] sm:$0xff]  ;;  %v6550_v9 = vld [vmem:[%s11341_s2 + $0x1d0] sm:$0xff] }
 0xe46   : > { %v6461_v50 = vadd.f32 %v8359_v8, %v6453_v49  ;;  %v6533_v8 = vld [vmem:[%s11341_s2 + $0x148] sm:$0xff]  ;;  %v6535_v49 = vld [vmem:[%s11341_s2 + $0x158] sm:$0xff] }
 0xe48   : > { %v6462_v10 = vadd.f32 %v6461_v50, %v10626_v15  ;;  %v6540_v15 = vld [vmem:[%s11341_s2 + $0x180] sm:$0xff] }
 0xe49   : > { %6668 = vmatpush1.msra.mxu1 %v6540_v15  ;;  %v6532_v50 = vld [vmem:[%s11341_s2 + $0x140] sm:$0xff]  ;;  %v6553_v15 = vld [vmem:[%s11341_s2 + $0x1e8] sm:$0xff] }
 0xe4a   : > { %v6465_v11 = vsel %vm1113_vm2, %v6462_v10, 0.0  ;;  %6669 = vmatprep.subr.mxu1 %v6525_v29  ;;  %v6552_v29 = vld [vmem:[%s11341_s2 + $0x1e0] sm:$0xff] }
 0xe4b   : > { %6466 = vadd.xlane.f32.xlu0 %v6465_v11  ;;  %6670 = vmatpush1.msra.mxu1 %v6524_v31  ;;  %v6517_v11 = vld [vmem:[%s11341_s2 + $0xc8] sm:$0xff] }
 0xe4c   : > { %6671 = vmatprep.subr.mxu1 %v6509_v33  ;;  %v6537_v31 = vld [vmem:[%s11341_s2 + $0x168] sm:$0xff]  ;;  %v6536_v33 = vld [vmem:[%s11341_s2 + $0x160] sm:$0xff] }
 0xe4d   : > { %6672 = vmatpush1.msra.mxu1 %v6508_v39  ;;  %v6521_v39 = vld [vmem:[%s11341_s2 + $0xe8] sm:$0xff] }
 0xe4e   : > { %6673 = vmatprep.subr.mxu1 %v6493_v41  ;;  %v6520_v41 = vld [vmem:[%s11341_s2 + $0xe0] sm:$0xff] }
 0xe4f   : > { %6674 = vmatpush1.msra.mxu1 %v6492_v43  ;;  %v6505_v43 = vld [vmem:[%s11341_s2 + $0x68] sm:$0xff] }
 0xe50   : > { %6809 = vmatprep.subr.mxu1 %v6545_v45  ;;  %v6504_v45 = vld [vmem:[%s11341_s2 + $0x60] sm:$0xff] }
 0xed4   : > { %v6467_v12 = vpop.xlane.xlu0 %6466 }
 0xed5   : > { %v6468_v13 = vmul.f32 0.03125, %v6467_v12  ;;  %v6519_v12 = vld [vmem:[%s11341_s2 + $0xd8] sm:$0xff] }
 0xed7   : > { %v6469_v22 = vsub.f32 %v6462_v10, %v6468_v13  ;;  %v6534_v10 = vld [vmem:[%s11341_s2 + $0x150] sm:$0xff]  ;;  %v6516_v13 = vld [vmem:[%s11341_s2 + $0xc0] sm:$0xff] }
 0xed9   : > { %v6470_v23 = vmul.f32 %v6469_v22, %v6469_v22 }
 0xedb   : > { %v6471_v24 = vsel %vm1113_vm2, %v6470_v23, 0.0  ;;  %v6501_v23 = vld [vmem:[%s11341_s2 + $0x48] sm:$0xff] }
 0xedc   : > { %6472 = vadd.xlane.f32.xlu1 %v6471_v24  ;;  %v6503_v24 = vld [vmem:[%s11341_s2 + $0x58] sm:$0xff] }
 0xf65   : > { %v6473_v47 = vpop.xlane.xlu1 %6472 }
 0xf66   : > { %v6474_v16 = vmul.f32 0.03125, %v6473_v47  ;;  %v7258_v47 = vld [vmem:[%s11344_s3 + $0xf8] sm:$0xff] }
 0xf68   : > { %v6475_v51 = vadd.f32 1e-05, %v6474_v16  ;;  %v7290_v16 = vld [vmem:[%s11344_s3 + $0x1f8] sm:$0xff] }
 0xf6a   : > { %9621 = vrsqrt.f32 %v6475_v51  ;;  %v7242_v51 = vld [vmem:[%s11344_s3 + $0x78] sm:$0xff] }
 0xf77   : > { %v9622_v48 = vpop.eup %9621 }
 0xf78   : > { %v6477_v53 = vmul.f32 %v9622_v48, %v6469_v22  ;;  %v6518_v22 = vld [vmem:[%s11341_s2 + $0xd0] sm:$0xff]  ;;  %v7274_v48 = vld [vmem:[%s11344_s3 + $0x178] sm:$0xff]  ;;  %s11346_s2 = sld [smem:[#allocation21_spill]] }
 0xf7a   : > { %v6484_v56 = vmul.f32 %v8360_v52, %v6477_v53  ;;  %v7257_v52 = vld [vmem:[%s11344_s3 + $0xf0] sm:$0xff] }
 0xf7b   : > { %v7289_v53 = vld [vmem:[%s11344_s3 + $0x1f0] sm:$0xff] }
 0xf7c   : > { %v10862_v57 = vadd.f32 %v8361_v55, %v6484_v56  ;;  %v7241_v55 = vld [vmem:[%s11344_s3 + $0x70] sm:$0xff] }
 0xf7d   : > { %v7273_v56 = vld [vmem:[%s11344_s3 + $0x170] sm:$0xff] }
 0xf7e   : > { %8362 = vmatmul.mubr.msk.f32.vlgmr.msra.gmra.mxu1 %vm1113_vm2, %v10862_v57  ;;  %8363 = vmatmul.mubr.msk.f32.vlgmr.msra.gmra.mxu0 %vm1113_vm2, %v10862_v57 }
 0xf7f   : > { %6810 = vmatpush1.msra.mxu1 %v6544_v19  ;;  %6881 = vmatpush1.msra.mxu0 %v6546_v58  ;;  %v7256_v19 = vld [vmem:[%s11344_s3 + $0xe8] sm:$0xff] }
 0xf80   : > { %6811 = vmatprep.subr.mxu1 %v6529_v59  ;;  %6882 = vmatprep.subr.mxu0 %v6531_v60  ;;  %v7288_v58 = vld [vmem:[%s11344_s3 + $0x1e8] sm:$0xff] }
 0xf81   : > { %6812 = vmatpush1.msra.mxu1 %v6528_v27  ;;  %6883 = vmatpush1.msra.mxu0 %v6530_v54  ;;  %v7240_v59 = vld [vmem:[%s11344_s3 + $0x68] sm:$0xff]  ;;  %v7255_v27 = vld [vmem:[%s11344_s3 + $0xe0] sm:$0xff] }
 0xf82   : > { %6813 = vmatprep.subr.mxu1 %v6513_v61  ;;  %6884 = vmatprep.subr.mxu0 %v6515_v62  ;;  %v7272_v60 = vld [vmem:[%s11344_s3 + $0x168] sm:$0xff]  ;;  %v7287_v54 = vld [vmem:[%s11344_s3 + $0x1e0] sm:$0xff] }
 0xf83   : > { %6814 = vmatpush1.msra.mxu1 %v6512_v63  ;;  %6885 = vmatpush1.msra.mxu0 %v6514_v0  ;;  %v7239_v61 = vld [vmem:[%s11344_s3 + $0x60] sm:$0xff]  ;;  %v7254_v63 = vld [vmem:[%s11344_s3 + $0xd8] sm:$0xff] }
 0xf84   : > { %6815 = vmatprep.subr.mxu1 %v6497_v2  ;;  %6886 = vmatprep.subr.mxu0 %v6499_v14  ;;  %v7271_v62 = vld [vmem:[%s11344_s3 + $0x160] sm:$0xff]  ;;  %v7286_v0 = vld [vmem:[%s11344_s3 + $0x1d8] sm:$0xff] }
 0xf85   : > { %6816 = vmatpush1.msra.mxu1 %v6496_v3  ;;  %6849 = vmatprep.mubr.f32.mxu1 %v9716_v1  ;;  %v7238_v2 = vld [vmem:[%s11344_s3 + $0x58] sm:$0xff]  ;;  %v7253_v3 = vld [vmem:[%s11344_s3 + $0xd0] sm:$0xff] }
 0xf86   : > { %6887 = vmatpush1.msra.mxu0 %v6498_v4  ;;  %6920 = vmatprep.mubr.f32.mxu0 %v9716_v1  ;;  %v7270_v14 = vld [vmem:[%s11344_s3 + $0x158] sm:$0xff]  ;;  %v7285_v4 = vld [vmem:[%s11344_s3 + $0x1d0] sm:$0xff] }
 0xf87   : > { %8364 = vmatmul.mubr.msk.f32.vlgmr.msra.gmra.mxu1 %vm1113_vm2, %v10862_v57  ;;  %8365 = vmatmul.mubr.msk.f32.vlgmr.msra.gmra.mxu0 %vm1113_vm2, %v10862_v57 }
 0xf88   : > { %6951 = vmatprep.subr.mxu1 %v6549_v5  ;;  %7022 = vmatprep.subr.mxu0 %v6551_v6  ;;  %v7237_v5 = vld [vmem:[%s11344_s3 + $0x50] sm:$0xff] }
 0xf89   : > { %6952 = vmatpush1.msra.mxu1 %v6548_v7  ;;  %7023 = vmatpush1.msra.mxu0 %v6550_v9  ;;  %v7269_v6 = vld [vmem:[%s11344_s3 + $0x150] sm:$0xff]  ;;  %v7252_v7 = vld [vmem:[%s11344_s3 + $0xc8] sm:$0xff] }
 0xf8a   : > { %6953 = vmatprep.subr.mxu1 %v6533_v8  ;;  %7024 = vmatprep.subr.mxu0 %v6535_v49  ;;  %v7284_v9 = vld [vmem:[%s11344_s3 + $0x1c8] sm:$0xff] }
 0xf8b   : > { %6954 = vmatpush1.msra.mxu1 %v6532_v50  ;;  %7025 = vmatpush1.msra.mxu0 %v6534_v10  ;;  %v7236_v8 = vld [vmem:[%s11344_s3 + $0x48] sm:$0xff]  ;;  %v7251_v50 = vld [vmem:[%s11344_s3 + $0xc0] sm:$0xff] }
 0xf8c   : > { %6955 = vmatprep.subr.mxu1 %v6517_v11  ;;  %7026 = vmatprep.subr.mxu0 %v6519_v12  ;;  %v7268_v49 = vld [vmem:[%s11344_s3 + $0x148] sm:$0xff]  ;;  %v7283_v10 = vld [vmem:[%s11344_s3 + $0x1c0] sm:$0xff] }
 0xf8d   : > { %6956 = vmatpush1.msra.mxu1 %v6516_v13  ;;  %7027 = vmatpush1.msra.mxu0 %v6518_v22  ;;  %v7235_v11 = vld [vmem:[%s11344_s3 + $0x40] sm:$0xff]  ;;  %v7250_v13 = vld [vmem:[%s11344_s3 + $0xb8] sm:$0xff] }
 0xf8e   : > { %6957 = vmatprep.subr.mxu1 %v6501_v23  ;;  %7028 = vmatprep.subr.mxu0 %v6503_v24  ;;  %v7267_v12 = vld [vmem:[%s11344_s3 + $0x140] sm:$0xff]  ;;  %v7282_v22 = vld [vmem:[%s11344_s3 + $0x1b8] sm:$0xff] }
 0xf8f   : > { %6958 = vmatpush1.msra.mxu1 %v6500_v25  ;;  %6991 = vmatprep.mubr.f32.mxu1 %v9716_v1  ;;  %v7234_v23 = vld [vmem:[%s11344_s3 + $0x38] sm:$0xff]  ;;  %v7249_v25 = vld [vmem:[%s11344_s3 + $0xb0] sm:$0xff] }
 0xf90   : > { %7029 = vmatpush1.msra.mxu0 %v6502_v26  ;;  %7062 = vmatprep.mubr.f32.mxu0 %v9716_v1  ;;  %v7266_v24 = vld [vmem:[%s11344_s3 + $0x138] sm:$0xff]  ;;  %v7281_v26 = vld [vmem:[%s11344_s3 + $0x1b0] sm:$0xff] }
 0xf91   : > { %8366 = vmatmul.mubr.msk.f32.vlgmr.msra.gmra.mxu1 %vm1113_vm2, %v10862_v57  ;;  %8367 = vmatmul.mubr.msk.f32.vlgmr.msra.gmra.mxu0 %vm1113_vm2, %v10862_v57 }
 0xf92   : > { %7093 = vmatprep.subr.mxu1 %v6553_v15  ;;  %7164 = vmatprep.subr.mxu0 %v6555_v28  ;;  %v7233_v15 = vld [vmem:[%s11344_s3 + $0x30] sm:$0xff] }
 0xf93   : > { %7094 = vmatpush1.msra.mxu1 %v6552_v29  ;;  %7165 = vmatpush1.msra.mxu0 %v6554_v30  ;;  %v7265_v28 = vld [vmem:[%s11344_s3 + $0x130] sm:$0xff]  ;;  %v7248_v29 = vld [vmem:[%s11344_s3 + $0xa8] sm:$0xff] }
 0xf94   : > { %7095 = vmatprep.subr.mxu1 %v6537_v31  ;;  %7166 = vmatprep.subr.mxu0 %v6539_v32  ;;  %v7280_v30 = vld [vmem:[%s11344_s3 + $0x1a8] sm:$0xff] }
 0xf95   : > { %7096 = vmatpush1.msra.mxu1 %v6536_v33  ;;  %7167 = vmatpush1.msra.mxu0 %v6538_v34  ;;  %v7232_v31 = vld [vmem:[%s11344_s3 + $0x28] sm:$0xff]  ;;  %v7247_v33 = vld [vmem:[%s11344_s3 + $0xa0] sm:$0xff] }
 0xf96   : > { %7097 = vmatprep.subr.mxu1 %v6521_v39  ;;  %7168 = vmatprep.subr.mxu0 %v6523_v40  ;;  %v7264_v32 = vld [vmem:[%s11344_s3 + $0x128] sm:$0xff]  ;;  %v7279_v34 = vld [vmem:[%s11344_s3 + $0x1a0] sm:$0xff] }
 0xf97   : > { %7098 = vmatpush1.msra.mxu1 %v6520_v41  ;;  %7169 = vmatpush1.msra.mxu0 %v6522_v42  ;;  %v7231_v39 = vld [vmem:[%s11344_s3 + $0x20] sm:$0xff]  ;;  %v7246_v41 = vld [vmem:[%s11344_s3 + $0x98] sm:$0xff] }
 0xf98   : > { %7099 = vmatprep.subr.mxu1 %v6505_v43  ;;  %7170 = vmatprep.subr.mxu0 %v6507_v44  ;;  %v7263_v40 = vld [vmem:[%s11344_s3 + $0x120] sm:$0xff]  ;;  %v7278_v42 = vld [vmem:[%s11344_s3 + $0x198] sm:$0xff] }
 0xf99   : > { %7100 = vmatpush1.msra.mxu1 %v6504_v45  ;;  %7133 = vmatprep.mubr.f32.mxu1 %v9716_v1  ;;  %v7230_v43 = vld [vmem:[%s11344_s3 + $0x18] sm:$0xff]  ;;  %v7245_v45 = vld [vmem:[%s11344_s3 + $0x90] sm:$0xff] }
 0xf9a   : > { %7171 = vmatpush1.msra.mxu0 %v6506_v46  ;;  %7204 = vmatprep.mubr.f32.mxu0 %v9716_v1  ;;  %v7262_v44 = vld [vmem:[%s11344_s3 + $0x118] sm:$0xff]  ;;  %v7277_v46 = vld [vmem:[%s11344_s3 + $0x190] sm:$0xff] }
 0xf9b   : > { %8368 = vmatmul.mubr.msk.f32.vlgmr.msra.gmra.mxu1 %vm1113_vm2, %v10862_v57  ;;  %8369 = vmatmul.mubr.msk.f32.vlgmr.msra.gmra.mxu0 %vm1113_vm2, %v10862_v57 }
 0xf9c   : > { %8828 = vmatprep.subr.mxu1 %v7258_v47  ;;  %8863 = vmatprep.subr.mxu0 %v7290_v16  ;;  %v7229_v47 = vld [vmem:[%s11344_s3 + $0x10] sm:$0xff] }
 0xf9d   : > { %8829 = vmatpush3.msra.mxu1 %v7242_v51  ;;  %8864 = vmatpush3.msra.mxu0 %v7274_v48  ;;  %v7261_v16 = vld [vmem:[%s11344_s3 + $0x110] sm:$0xff]  ;;  %v7244_v51 = vld [vmem:[%s11344_s3 + $0x88] sm:$0xff] }
 0xf9e   : > { %8830 = vmatprep.subr.mxu1 %v7257_v52  ;;  %8865 = vmatprep.subr.mxu0 %v7289_v53  ;;  %v7276_v48 = vld [vmem:[%s11344_s3 + $0x188] sm:$0xff] }
 0xf9f   : > { %8831 = vmatpush3.msra.mxu1 %v7241_v55  ;;  %8866 = vmatpush3.msra.mxu0 %v7273_v56  ;;  %v7228_v52 = vld [vmem:[%s11344_s3 + $0x8] sm:$0xff]  ;;  %v7243_v55 = vld [vmem:[%s11344_s3 + $0x80] sm:$0xff] }
 0xfa0   : > { %8832 = vmatprep.subr.mxu1 %v7256_v19  ;;  %8867 = vmatprep.subr.mxu0 %v7288_v58  ;;  %v7260_v53 = vld [vmem:[%s11344_s3 + $0x108] sm:$0xff]  ;;  %v7275_v56 = vld [vmem:[%s11344_s3 + $0x180] sm:$0xff] }
 0xfa1   : > { %8833 = vmatpush3.msra.mxu1 %v7240_v59  ;;  %8868 = vmatpush3.msra.mxu0 %v7272_v60  ;;  %v7227_v19 = vld [vmem:[%s11344_s3] sm:$0xff]  ;;  %v7322_v59 = vld [vmem:[%s11344_s3 + $0x2f8] sm:$0xff] }
 0xfa2   : > { %8834 = vmatprep.subr.mxu1 %v7255_v27  ;;  %8869 = vmatprep.subr.mxu0 %v7287_v54  ;;  %v7259_v58 = vld [vmem:[%s11344_s3 + $0x100] sm:$0xff]  ;;  %v7354_v60 = vld [vmem:[%s11344_s3 + $0x3f8] sm:$0xff] }
 0xfa3   : > { %8835 = vmatpush3.msra.mxu1 %v7239_v61  ;;  %8870 = vmatpush3.msra.mxu0 %v7271_v62  ;;  %v10999_v27 = vld [vmem:[%s11345_s23] sm:$0xff] }
 0xfa4   : > { %8836 = vmatprep.subr.mxu1 %v7254_v63  ;;  %8871 = vmatprep.subr.mxu0 %v7286_v0  ;;  %v6563_v54 = vrot.slane %v10999_v27, %v10329_v17  ;;  %v6571_v61 = vrot.slane %v10999_v27, %v10332_v18  ;;  %v6567_v62 = vrot.slane %v10999_v27, %v10338_v20 }
 0xfa5   : > { %8837 = vmatpush3.msra.mxu1 %v7238_v2  ;;  %8872 = vmatpush3.msra.mxu0 %v7270_v14  ;;  %v6575_v63 = vrot.slane %v10999_v27, %v10341_v21 }
 0xfa6   : > { %8838 = vmatprep.subr.mxu1 %v7253_v3  ;;  %8873 = vmatprep.subr.mxu0 %v7285_v4 }
 0xfa7   : > { %8839 = vmatpush3.msra.mxu1 %v7237_v5  ;;  %8874 = vmatpush3.msra.mxu0 %v7269_v6 }
 0xfa8   : > { %8840 = vmatprep.subr.mxu1 %v7252_v7  ;;  %8875 = vmatprep.subr.mxu0 %v7284_v9 }
 0xfa9   : > { %8841 = vmatpush3.msra.mxu1 %v7236_v8  ;;  %8876 = vmatpush3.msra.mxu0 %v7268_v49 }
 0xfaa   : > { %8842 = vmatprep.subr.mxu1 %v7251_v50  ;;  %8877 = vmatprep.subr.mxu0 %v7283_v10  ;;  %v7306_v10 = vld [vmem:[%s11344_s3 + $0x278] sm:$0xff] }
 0xfab   : > { %8843 = vmatpush3.msra.mxu1 %v7235_v11  ;;  %8878 = vmatpush3.msra.mxu0 %v7267_v12  ;;  %v7338_v11 = vld [vmem:[%s11344_s3 + $0x378] sm:$0xff]  ;;  %v7321_v12 = vld [vmem:[%s11344_s3 + $0x2f0] sm:$0xff] }
 0xfac   : > { %8844 = vmatprep.subr.mxu1 %v7250_v13  ;;  %8879 = vmatprep.subr.mxu0 %v7282_v22  ;;  %v7353_v13 = vld [vmem:[%s11344_s3 + $0x3f0] sm:$0xff]  ;;  %v6583_v22 = vrot.slane %v10999_v27, %v10352_v35 }
 0xfad   : > { %8845 = vmatpush3.msra.mxu1 %v7234_v23  ;;  %8880 = vmatpush3.msra.mxu0 %v7266_v24  ;;  %v6591_v23 = vrot.slane %v10999_v27, %v10355_v36  ;;  %v7305_v24 = vld [vmem:[%s11344_s3 + $0x270] sm:$0xff] }
 0xfae   : > { %8846 = vmatprep.subr.mxu1 %v7249_v25  ;;  %8881 = vmatprep.subr.mxu0 %v7281_v26  ;;  %v7337_v25 = vld [vmem:[%s11344_s3 + $0x370] sm:$0xff] }
 0xfaf   : > { %8847 = vmatpush3.msra.mxu1 %v7233_v15  ;;  %8882 = vmatpush3.msra.mxu0 %v7265_v28  ;;  %v7320_v28 = vld [vmem:[%s11344_s3 + $0x2e8] sm:$0xff] }
 0xfb0   : > { %8848 = vmatprep.subr.mxu1 %v7248_v29  ;;  %8883 = vmatprep.subr.mxu0 %v7280_v30  ;;  %v7352_v29 = vld [vmem:[%s11344_s3 + $0x3e8] sm:$0xff] }
 0xfb1   : > { %8849 = vmatpush3.msra.mxu1 %v7232_v31  ;;  %8884 = vmatpush3.msra.mxu0 %v7264_v32  ;;  %v7304_v30 = vld [vmem:[%s11344_s3 + $0x268] sm:$0xff] }
 0xfb2   : > { %8850 = vmatprep.subr.mxu1 %v7247_v33  ;;  %8885 = vmatprep.subr.mxu0 %v7279_v34  ;;  %v7336_v31 = vld [vmem:[%s11344_s3 + $0x368] sm:$0xff]  ;;  %v7319_v34 = vld [vmem:[%s11344_s3 + $0x2e0] sm:$0xff] }
 0xfb3   : > { %8851 = vmatpush3.msra.mxu1 %v7231_v39  ;;  %8886 = vmatpush3.msra.mxu0 %v7263_v40  ;;  %v7351_v39 = vld [vmem:[%s11344_s3 + $0x3e0] sm:$0xff] }
 0xfb4   : > { %8852 = vmatprep.subr.mxu1 %v7246_v41  ;;  %8887 = vmatprep.subr.mxu0 %v7278_v42  ;;  %v7303_v42 = vld [vmem:[%s11344_s3 + $0x260] sm:$0xff] }
 0xfb5   : > { %8853 = vmatpush3.msra.mxu1 %v7230_v43  ;;  %8888 = vmatpush3.msra.mxu0 %v7262_v44  ;;  %v7335_v43 = vld [vmem:[%s11344_s3 + $0x360] sm:$0xff] }
 0xfb6   : > { %8854 = vmatprep.subr.mxu1 %v7245_v45  ;;  %8889 = vmatprep.subr.mxu0 %v7277_v46  ;;  %v7318_v46 = vld [vmem:[%s11344_s3 + $0x2d8] sm:$0xff] }
 0xfb7   : > { %8855 = vmatpush3.msra.mxu1 %v7229_v47  ;;  %8890 = vmatpush3.msra.mxu0 %v7261_v16  ;;  %v7350_v47 = vld [vmem:[%s11344_s3 + $0x3d8] sm:$0xff] }
 0xfb8   : > { %8856 = vmatprep.subr.mxu1 %v7244_v51  ;;  %8891 = vmatprep.subr.mxu0 %v7276_v48  ;;  %v7302_v16 = vld [vmem:[%s11344_s3 + $0x258] sm:$0xff]  ;;  %v7317_v48 = vld [vmem:[%s11344_s3 + $0x2d0] sm:$0xff] }
 0xfb9   : > { %8857 = vmatpush3.msra.mxu1 %v7228_v52  ;;  %8892 = vmatpush3.msra.mxu0 %v7260_v53  ;;  %v7334_v51 = vld [vmem:[%s11344_s3 + $0x358] sm:$0xff]  ;;  %v7349_v52 = vld [vmem:[%s11344_s3 + $0x3d0] sm:$0xff] }
 0xfba   : > { %8858 = vmatprep.subr.mxu1 %v7243_v55  ;;  %8893 = vmatprep.subr.mxu0 %v7275_v56  ;;  %v7301_v53 = vld [vmem:[%s11344_s3 + $0x250] sm:$0xff]  ;;  %v7316_v56 = vld [vmem:[%s11344_s3 + $0x2c8] sm:$0xff] }
 0xfbb   : > { %8859 = vmatpush3.msra.mxu1 %v7227_v19  ;;  %8894 = vmatpush3.msra.mxu0 %v7259_v58  ;;  %v7333_v55 = vld [vmem:[%s11344_s3 + $0x350] sm:$0xff]  ;;  %v7348_v19 = vld [vmem:[%s11344_s3 + $0x3c8] sm:$0xff] }
 0xfbc   : > { %8898 = vmatprep.subr.mxu1 %v7322_v59  ;;  %8933 = vmatprep.subr.mxu0 %v7354_v60  ;;  %v7300_v58 = vld [vmem:[%s11344_s3 + $0x248] sm:$0xff]  ;;  %v7315_v60 = vld [vmem:[%s11344_s3 + $0x2c0] sm:$0xff] }
 0xfbd   : > { %v7332_v59 = vld [vmem:[%s11344_s3 + $0x348] sm:$0xff] }
0x103e   : > { %v6709_v0 = vpop.f32.mrf.mxu1  ;;  %v6780_v2 = vpop.f32.mrf.mxu0 }
0x103f   : > { %v6710_v14 = vadd.f32 %v6709_v0, %v6563_v54  ;;  %v6781_v3 = vadd.f32 %v6780_v2, %v6571_v61  ;;  %v7347_v54 = vld [vmem:[%s11344_s3 + $0x3c0] sm:$0xff]  ;;  %v7346_v0 = vld [vmem:[%s11344_s3 + $0x3b8] sm:$0xff] }
0x1040   : > { %v6711_v4 = vpop.f32.mrf.mxu1  ;;  %v6782_v5 = vpop.f32.mrf.mxu0  ;;  %v7299_v61 = vld [vmem:[%s11344_s3 + $0x240] sm:$0xff]  ;;  %v7298_v2 = vld [vmem:[%s11344_s3 + $0x238] sm:$0xff] }
0x1041   : > { %v6712_v6 = vadd.f32 %v6711_v4, %v6567_v62  ;;  %v6783_v7 = vadd.f32 %v6782_v5, %v6575_v63  ;;  %v7211_v49 = vmax.f32 %v6710_v14, 0.0  ;;  %v7213_v50 = vmax.f32 %v6781_v3, 0.0  ;;  %v7331_v62 = vld [vmem:[%s11344_s3 + $0x340] sm:$0xff]  ;;  %v7314_v63 = vld [vmem:[%s11344_s3 + $0x2b8] sm:$0xff]  ;;  %v7313_v3 = vld [vmem:[%s11344_s3 + $0x2b0] sm:$0xff] }
0x1042   : > { %v7330_v14 = vld [vmem:[%s11344_s3 + $0x338] sm:$0xff]  ;;  %v7345_v4 = vld [vmem:[%s11344_s3 + $0x3b0] sm:$0xff] }
0x1043   : > { %v7212_v9 = vmax.f32 %v6712_v6, 0.0  ;;  %v7214_v8 = vmax.f32 %v6783_v7, 0.0  ;;  %v7297_v5 = vld [vmem:[%s11344_s3 + $0x230] sm:$0xff]  ;;  %v7312_v7 = vld [vmem:[%s11344_s3 + $0x2a8] sm:$0xff] }
0x1044   : > { %v7329_v6 = vld [vmem:[%s11344_s3 + $0x330] sm:$0xff] }
0x1045   : > { %7554 = vmatprep.mubr.f32.mxu1 %v7212_v9  ;;  %7624 = vmatprep.mubr.f32.mxu0 %v7214_v8  ;;  %v7344_v9 = vld [vmem:[%s11344_s3 + $0x3a8] sm:$0xff] }
0x1046   : > { %7555 = vmatmul.mubr.f32.vlgmr.msra.gmra.mxu1 %v7211_v49  ;;  %7625 = vmatmul.mubr.f32.vlgmr.msra.gmra.mxu0 %v7213_v50  ;;  %v7296_v8 = vld [vmem:[%s11344_s3 + $0x228] sm:$0xff]  ;;  %v7311_v50 = vld [vmem:[%s11344_s3 + $0x2a0] sm:$0xff] }
0x1047   : > { %v11019_v26 = vpop.f32.mrf.mxu1  ;;  %v11021_v15 = vpop.f32.mrf.mxu0  ;;  %8899 = vmatpush3.msra.mxu1 %v7306_v10  ;;  %8934 = vmatpush3.msra.mxu0 %v7338_v11  ;;  %v7328_v49 = vld [vmem:[%s11344_s3 + $0x328] sm:$0xff]  ;;  %v7343_v10 = vld [vmem:[%s11344_s3 + $0x3a0] sm:$0xff] }
0x1048   : > { %8900 = vmatprep.subr.mxu1 %v7321_v12  ;;  %8935 = vmatprep.subr.mxu0 %v7353_v13  ;;  %v7295_v11 = vld [vmem:[%s11344_s3 + $0x220] sm:$0xff] }
0x1049   : > { %v6853_v32 = vpop.f32.mrf.mxu1  ;;  %v6924_v33 = vpop.f32.mrf.mxu0  ;;  %8901 = vmatpush3.msra.mxu1 %v7305_v24  ;;  %8936 = vmatpush3.msra.mxu0 %v7337_v25  ;;  %v7327_v12 = vld [vmem:[%s11344_s3 + $0x320] sm:$0xff]  ;;  %v6579_v24 = vrot.slane %v10999_v27, %v10406_v37  ;;  %v6587_v25 = vrot.slane %v10999_v27, %v10409_v38  ;;  %v7293_v27 = vld [vmem:[%s11344_s3 + $0x210] sm:$0xff] }
0x104a   : > { %v6854_v40 = vadd.f32 %v6853_v32, %v6583_v22  ;;  %v6925_v41 = vadd.f32 %v6924_v33, %v6591_v23  ;;  %8902 = vmatprep.subr.mxu1 %v7320_v28  ;;  %8937 = vmatprep.subr.mxu0 %v7352_v29  ;;  %v7310_v22 = vld [vmem:[%s11344_s3 + $0x298] sm:$0xff]  ;;  %v7309_v32 = vld [vmem:[%s11344_s3 + $0x290] sm:$0xff] }
0x104b   : > { %8903 = vmatpush3.msra.mxu1 %v7304_v30  ;;  %8938 = vmatpush3.msra.mxu0 %v7336_v31  ;;  %v7342_v23 = vld [vmem:[%s11344_s3 + $0x398] sm:$0xff]  ;;  %v11076_v31 = vld [vmem:[%s11345_s23 + $0x8] sm:$0xff]  ;;  %v7341_v33 = vld [vmem:[%s11344_s3 + $0x390] sm:$0xff] }
0x104c   : > { %v7216_v44 = vmax.f32 %v6854_v40, 0.0  ;;  %v7218_v45 = vmax.f32 %v6925_v41, 0.0  ;;  %8904 = vmatprep.subr.mxu1 %v7319_v34  ;;  %8939 = vmatprep.subr.mxu0 %v7351_v39  ;;  %v7294_v29 = vld [vmem:[%s11344_s3 + $0x218] sm:$0xff]  ;;  %v6599_v34 = vrot.slane %v11076_v31, %v10338_v20  ;;  %v7325_v39 = vld [vmem:[%s11344_s3 + $0x310] sm:$0xff]  ;;  %v6607_v41 = vrot.slane %v11076_v31, %v10341_v21  ;;  %v7307_v21 = vld [vmem:[%s11344_s3 + $0x280] sm:$0xff] }
0x104d   : > { %8905 = vmatpush3.msra.mxu1 %v7303_v42  ;;  %8940 = vmatpush3.msra.mxu0 %v7335_v43  ;;  %v7326_v30 = vld [vmem:[%s11344_s3 + $0x318] sm:$0xff]  ;;  %v7308_v42 = vld [vmem:[%s11344_s3 + $0x288] sm:$0xff]  ;;  %v6852_v20 = vadd.f32 %v11019_v26, %v6579_v24 }
0x104e   : > { %7694 = vmatprep.mubr.f32.mxu1 %v7216_v44  ;;  %7764 = vmatprep.mubr.f32.mxu0 %v7218_v45  ;;  %v7340_v43 = vld [vmem:[%s11344_s3 + $0x388] sm:$0xff]  ;;  %v6923_v44 = vadd.f32 %v11021_v15, %v6587_v25 }
0x104f   : > { %8906 = vmatprep.subr.mxu1 %v7318_v46  ;;  %8941 = vmatprep.subr.mxu0 %v7350_v47  ;;  %v7292_v46 = vld [vmem:[%s11344_s3 + $0x208] sm:$0xff]  ;;  %v7215_v15 = vmax.f32 %v6852_v20, 0.0  ;;  %v7361_v20 = vld [vmem:[%s11344_s3 + $0x430] sm:$0xff] }
0x1050   : > { %8907 = vmatpush3.msra.mxu1 %v7302_v16  ;;  %8942 = vmatpush3.msra.mxu0 %v7334_v51  ;;  %v7324_v47 = vld [vmem:[%s11344_s3 + $0x308] sm:$0xff]  ;;  %v7339_v16 = vld [vmem:[%s11344_s3 + $0x380] sm:$0xff] }
0x1051   : > { %8908 = vmatprep.subr.mxu1 %v7317_v48  ;;  %8943 = vmatprep.subr.mxu0 %v7349_v52  ;;  %v11063_v13 = vpop.f32.mrf.mxu1  ;;  %v11071_v28 = vpop.f32.mrf.mxu0  ;;  %v7291_v48 = vld [vmem:[%s11344_s3 + $0x200] sm:$0xff]  ;;  %v7412_v24 = vld [vmem:[%s11344_s3 + $0x5c8] sm:$0xff] }
0x1052   : > { %8909 = vmatpush3.msra.mxu1 %v7301_v53  ;;  %8944 = vmatpush3.msra.mxu0 %v7333_v55  ;;  %v7323_v52 = vld [vmem:[%s11344_s3 + $0x300] sm:$0xff]  ;;  %v7217_v53 = vmax.f32 %v6923_v44, 0.0  ;;  %v7386_v55 = vld [vmem:[%s11344_s3 + $0x4f8] sm:$0xff]  ;;  %v7364_v25 = vld [vmem:[%s11344_s3 + $0x448] sm:$0xff] }
0x1053   : > { %8910 = vmatprep.subr.mxu1 %v7316_v56  ;;  %8945 = vmatprep.subr.mxu0 %v7348_v19  ;;  %v6995_v40 = vpop.f32.mrf.mxu1  ;;  %v7066_v45 = vpop.f32.mrf.mxu0  ;;  %v7418_v56 = vld [vmem:[%s11344_s3 + $0x5f8] sm:$0xff]  ;;  %v7393_v44 = vld [vmem:[%s11344_s3 + $0x530] sm:$0xff] }
0x1054   : > { %8911 = vmatpush3.msra.mxu1 %v7300_v58  ;;  %8946 = vmatpush3.msra.mxu0 %v7332_v59  ;;  %v6996_v51 = vadd.f32 %v6995_v40, %v6599_v34  ;;  %v7067_v26 = vadd.f32 %v7066_v45, %v6607_v41  ;;  %v7370_v19 = vld [vmem:[%s11344_s3 + $0x478] sm:$0xff]  ;;  %v7395_v34 = vld [vmem:[%s11344_s3 + $0x540] sm:$0xff]  ;;  %v7376_v45 = vld [vmem:[%s11344_s3 + $0x4a8] sm:$0xff] }
0x1055   : > { %8912 = vmatprep.subr.mxu1 %v7315_v60  ;;  %8947 = vmatprep.subr.mxu0 %v7347_v54  ;;  %v7402_v59 = vld [vmem:[%s11344_s3 + $0x578] sm:$0xff]  ;;  %v7385_v54 = vld [vmem:[%s11344_s3 + $0x4f0] sm:$0xff] }
0x1056   : > { %8913 = vmatpush3.msra.mxu1 %v7299_v61  ;;  %8948 = vmatpush3.msra.mxu0 %v7331_v62  ;;  %v7220_v58 = vmax.f32 %v6996_v51, 0.0  ;;  %v7222_v60 = vmax.f32 %v7067_v26, 0.0  ;;  %v7417_v61 = vld [vmem:[%s11344_s3 + $0x5f0] sm:$0xff]  ;;  %v7362_v40 = vld [vmem:[%s11344_s3 + $0x438] sm:$0xff]  ;;  %v7407_v51 = vld [vmem:[%s11344_s3 + $0x5a0] sm:$0xff] }
0x1057   : > { %8914 = vmatprep.subr.mxu1 %v7314_v63  ;;  %8949 = vmatprep.subr.mxu0 %v7346_v0  ;;  %v7369_v62 = vld [vmem:[%s11344_s3 + $0x470] sm:$0xff]  ;;  %v7384_v0 = vld [vmem:[%s11344_s3 + $0x4e8] sm:$0xff]  ;;  %v7394_v41 = vld [vmem:[%s11344_s3 + $0x538] sm:$0xff] }
0x1058   : > { %8915 = vmatpush3.msra.mxu1 %v7298_v2  ;;  %8950 = vmatpush3.msra.mxu0 %v7330_v14  ;;  %v7401_v63 = vld [vmem:[%s11344_s3 + $0x570] sm:$0xff]  ;;  %v7416_v2 = vld [vmem:[%s11344_s3 + $0x5e8] sm:$0xff] }
0x1059   : > { %8916 = vmatprep.subr.mxu1 %v7313_v3  ;;  %8951 = vmatprep.subr.mxu0 %v7345_v4  ;;  %v7368_v14 = vld [vmem:[%s11344_s3 + $0x468] sm:$0xff]  ;;  %v7383_v4 = vld [vmem:[%s11344_s3 + $0x4e0] sm:$0xff] }
0x105a   : > { %8917 = vmatpush3.msra.mxu1 %v7297_v5  ;;  %8952 = vmatpush3.msra.mxu0 %v7329_v6  ;;  %v7400_v3 = vld [vmem:[%s11344_s3 + $0x568] sm:$0xff]  ;;  %v7415_v5 = vld [vmem:[%s11344_s3 + $0x5e0] sm:$0xff] }
0x105b   : > { %8918 = vmatprep.subr.mxu1 %v7312_v7  ;;  %8953 = vmatprep.subr.mxu0 %v7344_v9  ;;  %v7367_v6 = vld [vmem:[%s11344_s3 + $0x460] sm:$0xff]  ;;  %v7382_v9 = vld [vmem:[%s11344_s3 + $0x4d8] sm:$0xff]  ;;  %v11144_v26 = vpop.f32.mrf.mxu1 }
0x105c   : > { %8919 = vmatpush3.msra.mxu1 %v7296_v8  ;;  %8954 = vmatpush3.msra.mxu0 %v7328_v49  ;;  %v7399_v7 = vld [vmem:[%s11344_s3 + $0x560] sm:$0xff]  ;;  %v7414_v8 = vld [vmem:[%s11344_s3 + $0x5d8] sm:$0xff] }
0x105d   : > { %8920 = vmatprep.subr.mxu1 %v7311_v50  ;;  %8955 = vmatprep.subr.mxu0 %v7343_v10  ;;  %v7366_v49 = vld [vmem:[%s11344_s3 + $0x458] sm:$0xff]  ;;  %v7381_v10 = vld [vmem:[%s11344_s3 + $0x4d0] sm:$0xff] }
0x105e   : > { %8921 = vmatpush3.msra.mxu1 %v7295_v11  ;;  %8956 = vmatpush3.msra.mxu0 %v7327_v12  ;;  %v7398_v50 = vld [vmem:[%s11344_s3 + $0x558] sm:$0xff]  ;;  %v7413_v11 = vld [vmem:[%s11344_s3 + $0x5d0] sm:$0xff] }
0x105f   : > { %8922 = vmatprep.subr.mxu1 %v7310_v22  ;;  %8957 = vmatprep.subr.mxu0 %v7342_v23  ;;  %v7365_v12 = vld [vmem:[%s11344_s3 + $0x450] sm:$0xff]  ;;  %v7380_v23 = vld [vmem:[%s11344_s3 + $0x4c8] sm:$0xff] }
0x1060   : > { %8923 = vmatpush3.msra.mxu1 %v7294_v29  ;;  %8958 = vmatpush3.msra.mxu0 %v7326_v30  ;;  %v7397_v22 = vld [vmem:[%s11344_s3 + $0x550] sm:$0xff]  ;;  %v7396_v29 = vld [vmem:[%s11344_s3 + $0x548] sm:$0xff]  ;;  %v7379_v30 = vld [vmem:[%s11344_s3 + $0x4c0] sm:$0xff] }
0x1061   : > { %8924 = vmatprep.subr.mxu1 %v7309_v32  ;;  %8959 = vmatprep.subr.mxu0 %v7341_v33  ;;  %v7411_v32 = vld [vmem:[%s11344_s3 + $0x5c0] sm:$0xff] }
0x1062   : > { %8925 = vmatpush3.msra.mxu1 %v7293_v27  ;;  %8960 = vmatpush3.msra.mxu0 %v7325_v39  ;;  %v7363_v33 = vld [vmem:[%s11344_s3 + $0x440] sm:$0xff]  ;;  %v7378_v27 = vld [vmem:[%s11344_s3 + $0x4b8] sm:$0xff] }
0x1063   : > { %8926 = vmatprep.subr.mxu1 %v7308_v42  ;;  %8961 = vmatprep.subr.mxu0 %v7340_v43  ;;  %v7410_v39 = vld [vmem:[%s11344_s3 + $0x5b8] sm:$0xff]  ;;  %v7377_v42 = vld [vmem:[%s11344_s3 + $0x4b0] sm:$0xff] }
0x1064   : > { %8927 = vmatpush3.msra.mxu1 %v7292_v46  ;;  %8962 = vmatpush3.msra.mxu0 %v7324_v47  ;;  %v7409_v43 = vld [vmem:[%s11344_s3 + $0x5b0] sm:$0xff]  ;;  %v7408_v46 = vld [vmem:[%s11344_s3 + $0x5a8] sm:$0xff] }
0x1065   : > { %8928 = vmatprep.subr.mxu1 %v7307_v21  ;;  %8963 = vmatprep.subr.mxu0 %v7339_v16  ;;  %v7360_v47 = vld [vmem:[%s11344_s3 + $0x428] sm:$0xff]  ;;  %v7375_v16 = vld [vmem:[%s11344_s3 + $0x4a0] sm:$0xff] }
0x1066   : > { %8929 = vmatpush3.msra.mxu1 %v7291_v48  ;;  %8964 = vmatpush3.msra.mxu0 %v7323_v52  ;;  %v7392_v21 = vld [vmem:[%s11344_s3 + $0x528] sm:$0xff]  ;;  %v7359_v48 = vld [vmem:[%s11344_s3 + $0x420] sm:$0xff] }
0x1067   : > { %7695 = vmatmul.mubr.f32.vlgmr.msra.gmra.mxu1 %v7215_v15  ;;  %7765 = vmatmul.mubr.f32.vlgmr.msra.gmra.mxu0 %v7217_v53  ;;  %v7391_v52 = vld [vmem:[%s11344_s3 + $0x520] sm:$0xff]  ;;  %v7374_v15 = vld [vmem:[%s11344_s3 + $0x498] sm:$0xff] }
0x1068   : > { %8968 = vmatprep.subr.mxu1 %v7386_v55  ;;  %9003 = vmatprep.subr.mxu0 %v7418_v56  ;;  %v7406_v53 = vld [vmem:[%s11344_s3 + $0x598] sm:$0xff]  ;;  %v6595_v55 = vrot.slane %v11076_v31, %v10329_v17  ;;  %v6603_v56 = vrot.slane %v11076_v31, %v10332_v18  ;;  %v7357_v17 = vld [vmem:[%s11344_s3 + $0x410] sm:$0xff] }
0x1069   : > { %8969 = vmatpush3.msra.mxu1 %v7370_v19  ;;  %7834 = vmatprep.mubr.f32.mxu1 %v7220_v58  ;;  %v11152_v19 = vpop.f32.mrf.mxu0  ;;  %v7358_v58 = vld [vmem:[%s11344_s3 + $0x418] sm:$0xff]  ;;  %v7389_v18 = vld [vmem:[%s11344_s3 + $0x510] sm:$0xff] }
0x106a   : > { %9004 = vmatpush3.msra.mxu0 %v7402_v59  ;;  %7904 = vmatprep.mubr.f32.mxu0 %v7222_v60  ;;  %v7390_v59 = vld [vmem:[%s11344_s3 + $0x518] sm:$0xff]  ;;  %v7373_v60 = vld [vmem:[%s11344_s3 + $0x490] sm:$0xff] }
0x106b   : > { %8970 = vmatprep.subr.mxu1 %v7385_v54  ;;  %9005 = vmatprep.subr.mxu0 %v7417_v61  ;;  %v7405_v54 = vld [vmem:[%s11344_s3 + $0x590] sm:$0xff]  ;;  %v6615_v61 = vrot.slane %v11076_v31, %v10352_v35  ;;  %v6994_v35 = vadd.f32 %v11063_v13, %v6595_v55  ;;  %v7475_v55 = vld [vmem:[%s11344_s3 + $0x7c0] sm:$0xff] }
0x106c   : > { %8971 = vmatpush3.msra.mxu1 %v7369_v62  ;;  %9006 = vmatpush3.msra.mxu0 %v7401_v63  ;;  %v7137_v62 = vpop.f32.mrf.mxu1  ;;  %v6623_v63 = vrot.slane %v11076_v31, %v10355_v36  ;;  %v7371_v36 = vld [vmem:[%s11344_s3 + $0x480] sm:$0xff] }
0x106d   : > { %8972 = vmatprep.subr.mxu1 %v7384_v0  ;;  %9007 = vmatprep.subr.mxu0 %v7416_v2  ;;  %v7372_v0 = vld [vmem:[%s11344_s3 + $0x488] sm:$0xff] }
0x106e   : > { %8973 = vmatpush3.msra.mxu1 %v7368_v14  ;;  %9008 = vmatpush3.msra.mxu0 %v7400_v3  ;;  %v7404_v2 = vld [vmem:[%s11344_s3 + $0x588] sm:$0xff]  ;;  %v7065_v14 = vadd.f32 %v11071_v28, %v6603_v56  ;;  %v7208_v3 = vpop.f32.mrf.mxu0  ;;  %v7219_v28 = vmax.f32 %v6994_v35, 0.0  ;;  %v7427_v56 = vld [vmem:[%s11344_s3 + $0x640] sm:$0xff] }
0x106f   : > { %8974 = vmatprep.subr.mxu1 %v7383_v4  ;;  %9009 = vmatprep.subr.mxu0 %v7415_v5  ;;  %v7356_v4 = vld [vmem:[%s11344_s3 + $0x408] sm:$0xff]  ;;  %v7209_v13 = vadd.f32 %v7208_v3, %v6623_v63  ;;  %v7457_v63 = vld [vmem:[%s11344_s3 + $0x730] sm:$0xff]  ;;  %v7439_v3 = vld [vmem:[%s11344_s3 + $0x6a0] sm:$0xff] }
0x1070   : > { %8975 = vmatpush3.msra.mxu1 %v7367_v6  ;;  %9010 = vmatpush3.msra.mxu0 %v7399_v7  ;;  %v7388_v5 = vld [vmem:[%s11344_s3 + $0x508] sm:$0xff]  ;;  %v7403_v6 = vld [vmem:[%s11344_s3 + $0x580] sm:$0xff]  ;;  %v7138_v7 = vadd.f32 %v7137_v62, %v6615_v61  ;;  %v7458_v61 = vld [vmem:[%s11344_s3 + $0x738] sm:$0xff] }
0x1071   : > { %8976 = vmatprep.subr.mxu1 %v7382_v9  ;;  %9011 = vmatprep.subr.mxu0 %v7414_v8  ;;  %v7355_v9 = vld [vmem:[%s11344_s3 + $0x400] sm:$0xff]  ;;  %v7425_v62 = vld [vmem:[%s11344_s3 + $0x630] sm:$0xff]  ;;  %v7424_v35 = vld [vmem:[%s11344_s3 + $0x628] sm:$0xff] }
0x1072   : > { %8977 = vmatpush3.msra.mxu1 %v7366_v49  ;;  %9012 = vmatpush3.msra.mxu0 %v7398_v50  ;;  %v7387_v8 = vld [vmem:[%s11344_s3 + $0x500] sm:$0xff]  ;;  %v7221_v49 = vmax.f32 %v7065_v14, 0.0  ;;  %v7450_v50 = vld [vmem:[%s11344_s3 + $0x6f8] sm:$0xff]  ;;  %v7456_v14 = vld [vmem:[%s11344_s3 + $0x728] sm:$0xff] }
0x1073   : > { %8978 = vmatprep.subr.mxu1 %v7381_v10  ;;  %9013 = vmatprep.subr.mxu0 %v7413_v11  ;;  %v7482_v10 = vld [vmem:[%s11344_s3 + $0x7f8] sm:$0xff] }
0x1074   : > { %8979 = vmatpush3.msra.mxu1 %v7365_v12  ;;  %9014 = vmatpush3.msra.mxu0 %v7397_v22  ;;  %v7434_v11 = vld [vmem:[%s11344_s3 + $0x678] sm:$0xff]  ;;  %v7224_v12 = vmax.f32 %v7138_v7, 0.0 }
0x1075   : > { %8980 = vmatprep.subr.mxu1 %v7380_v23  ;;  %9015 = vmatprep.subr.mxu0 %v7412_v24  ;;  %v7466_v22 = vld [vmem:[%s11344_s3 + $0x778] sm:$0xff]  ;;  %v7226_v23 = vmax.f32 %v7209_v13, 0.0  ;;  %v7449_v24 = vld [vmem:[%s11344_s3 + $0x6f0] sm:$0xff] }
0x1076   : > { %8981 = vmatpush3.msra.mxu1 %v7364_v25  ;;  %9016 = vmatpush3.msra.mxu0 %v7396_v29  ;;  %v7481_v25 = vld [vmem:[%s11344_s3 + $0x7f0] sm:$0xff]  ;;  %v7470_v7 = vld [vmem:[%s11344_s3 + $0x798] sm:$0xff] }
0x1077   : > { %8982 = vmatprep.subr.mxu1 %v7379_v30  ;;  %9017 = vmatprep.subr.mxu0 %v7411_v32  ;;  %v7433_v29 = vld [vmem:[%s11344_s3 + $0x670] sm:$0xff]  ;;  %v7448_v32 = vld [vmem:[%s11344_s3 + $0x6e8] sm:$0xff]  ;;  %v7422_v13 = vld [vmem:[%s11344_s3 + $0x618] sm:$0xff] }
0x1078   : > { %8983 = vmatpush3.msra.mxu1 %v7363_v33  ;;  %9018 = vmatpush3.msra.mxu0 %v7395_v34  ;;  %v7465_v30 = vld [vmem:[%s11344_s3 + $0x770] sm:$0xff]  ;;  %v7480_v33 = vld [vmem:[%s11344_s3 + $0x7e8] sm:$0xff] }
0x1079   : > { %8984 = vmatprep.subr.mxu1 %v7378_v27  ;;  %9019 = vmatprep.subr.mxu0 %v7410_v39  ;;  %v7432_v34 = vld [vmem:[%s11344_s3 + $0x668] sm:$0xff]  ;;  %v7447_v39 = vld [vmem:[%s11344_s3 + $0x6e0] sm:$0xff] }
0x107a   : > { %8985 = vmatpush3.msra.mxu1 %v7362_v40  ;;  %9020 = vmatpush3.msra.mxu0 %v7394_v41  ;;  %v7464_v27 = vld [vmem:[%s11344_s3 + $0x768] sm:$0xff]  ;;  %v7479_v40 = vld [vmem:[%s11344_s3 + $0x7e0] sm:$0xff] }
0x107b   : > { %8986 = vmatprep.subr.mxu1 %v7377_v42  ;;  %9021 = vmatprep.subr.mxu0 %v7409_v43  ;;  %v7431_v41 = vld [vmem:[%s11344_s3 + $0x660] sm:$0xff]  ;;  %v7446_v43 = vld [vmem:[%s11344_s3 + $0x6d8] sm:$0xff] }
0x107c   : > { %8987 = vmatpush3.msra.mxu1 %v7361_v20  ;;  %9022 = vmatpush3.msra.mxu0 %v7393_v44  ;;  %v7463_v42 = vld [vmem:[%s11344_s3 + $0x760] sm:$0xff]  ;;  %v7478_v20 = vld [vmem:[%s11344_s3 + $0x7d8] sm:$0xff] }
0x107d   : > { %8988 = vmatprep.subr.mxu1 %v7376_v45  ;;  %9023 = vmatprep.subr.mxu0 %v7408_v46  ;;  %v7430_v44 = vld [vmem:[%s11344_s3 + $0x658] sm:$0xff]  ;;  %v7445_v46 = vld [vmem:[%s11344_s3 + $0x6d0] sm:$0xff] }
0x107e   : > { %8989 = vmatpush3.msra.mxu1 %v7360_v47  ;;  %9024 = vmatpush3.msra.mxu0 %v7392_v21  ;;  %v7462_v45 = vld [vmem:[%s11344_s3 + $0x758] sm:$0xff]  ;;  %v7477_v47 = vld [vmem:[%s11344_s3 + $0x7d0] sm:$0xff] }
0x107f   : > { %8990 = vmatprep.subr.mxu1 %v7375_v16  ;;  %9025 = vmatprep.subr.mxu0 %v7407_v51  ;;  %v7429_v21 = vld [vmem:[%s11344_s3 + $0x650] sm:$0xff]  ;;  %v7444_v51 = vld [vmem:[%s11344_s3 + $0x6c8] sm:$0xff] }
0x1080   : > { %8991 = vmatpush3.msra.mxu1 %v7359_v48  ;;  %9026 = vmatpush3.msra.mxu0 %v7391_v52  ;;  %v7461_v16 = vld [vmem:[%s11344_s3 + $0x750] sm:$0xff]  ;;  %v7476_v48 = vld [vmem:[%s11344_s3 + $0x7c8] sm:$0xff] }
0x1081   : > { %8992 = vmatprep.subr.mxu1 %v7374_v15  ;;  %9027 = vmatprep.subr.mxu0 %v7406_v53  ;;  %v7428_v52 = vld [vmem:[%s11344_s3 + $0x648] sm:$0xff]  ;;  %v7443_v53 = vld [vmem:[%s11344_s3 + $0x6c0] sm:$0xff] }
0x1082   : > { %8993 = vmatpush3.msra.mxu1 %v7358_v58  ;;  %9028 = vmatpush3.msra.mxu0 %v7390_v59  ;;  %v7460_v15 = vld [vmem:[%s11344_s3 + $0x748] sm:$0xff]  ;;  %v7459_v58 = vld [vmem:[%s11344_s3 + $0x740] sm:$0xff]  ;;  %v7442_v59 = vld [vmem:[%s11344_s3 + $0x6b8] sm:$0xff] }
0x1083   : > { %8994 = vmatprep.subr.mxu1 %v7373_v60  ;;  %9029 = vmatprep.subr.mxu0 %v7405_v54  ;;  %v7474_v60 = vld [vmem:[%s11344_s3 + $0x7b8] sm:$0xff] }
0x1084   : > { %8995 = vmatpush3.msra.mxu1 %v7357_v17  ;;  %9030 = vmatpush3.msra.mxu0 %v7389_v18  ;;  %v7426_v54 = vld [vmem:[%s11344_s3 + $0x638] sm:$0xff]  ;;  %v7441_v17 = vld [vmem:[%s11344_s3 + $0x6b0] sm:$0xff] }
0x1085   : > { %8996 = vmatprep.subr.mxu1 %v7372_v0  ;;  %9031 = vmatprep.subr.mxu0 %v7404_v2  ;;  %v7473_v18 = vld [vmem:[%s11344_s3 + $0x7b0] sm:$0xff]  ;;  %v7440_v0 = vld [vmem:[%s11344_s3 + $0x6a8] sm:$0xff] }
0x1086   : > { %8997 = vmatpush3.msra.mxu1 %v7356_v4  ;;  %9032 = vmatpush3.msra.mxu0 %v7388_v5  ;;  %v7472_v2 = vld [vmem:[%s11344_s3 + $0x7a8] sm:$0xff]  ;;  %v7471_v4 = vld [vmem:[%s11344_s3 + $0x7a0] sm:$0xff] }
0x1087   : > { %8998 = vmatprep.subr.mxu1 %v7371_v36  ;;  %9033 = vmatprep.subr.mxu0 %v7403_v6  ;;  %v7423_v5 = vld [vmem:[%s11344_s3 + $0x620] sm:$0xff]  ;;  %v7438_v6 = vld [vmem:[%s11344_s3 + $0x698] sm:$0xff] }
0x1088   : > { %8999 = vmatpush3.msra.mxu1 %v7355_v9  ;;  %9034 = vmatpush3.msra.mxu0 %v7387_v8  ;;  %v7455_v36 = vld [vmem:[%s11344_s3 + $0x720] sm:$0xff]  ;;  %v6611_v9 = vrot.slane %v11076_v31, %v10406_v37  ;;  %v6619_v8 = vrot.slane %v11076_v31, %v10409_v38  ;;  %v7421_v37 = vld [vmem:[%s11344_s3 + $0x610] sm:$0xff]  ;;  %v7436_v38 = vld [vmem:[%s11344_s3 + $0x688] sm:$0xff] }
0x1089   : > { %7835 = vmatmul.mubr.f32.vlgmr.msra.gmra.mxu1 %v7219_v28  ;;  %7905 = vmatmul.mubr.f32.vlgmr.msra.gmra.mxu0 %v7221_v49  ;;  %v7454_v28 = vld [vmem:[%s11344_s3 + $0x718] sm:$0xff]  ;;  %v7437_v49 = vld [vmem:[%s11344_s3 + $0x690] sm:$0xff]  ;;  %v7468_v31 = vld [vmem:[%s11344_s3 + $0x788] sm:$0xff] }
0x108a   : > { %9038 = vmatprep.subr.mxu1 %v7450_v50  ;;  %9073 = vmatprep.subr.mxu0 %v7482_v10  ;;  %v7469_v50 = vld [vmem:[%s11344_s3 + $0x790] sm:$0xff] }
0x108b   : > { %9039 = vmatpush3.msra.mxu1 %v7434_v11  ;;  %7974 = vmatprep.mubr.f32.mxu1 %v7224_v12  ;;  %v7453_v10 = vld [vmem:[%s11344_s3 + $0x710] sm:$0xff]  ;;  %v7136_v11 = vadd.f32 %v11144_v26, %v6611_v9  ;;  %v7207_v12 = vadd.f32 %v11152_v19, %v6619_v8  ;;  %v8081_v9 = vld [vmem:[%s11329_s6 + $0x8] sm:$0xff] }
0x108c   : > { %9074 = vmatpush3.msra.mxu0 %v7466_v22  ;;  %8044 = vmatprep.mubr.f32.mxu0 %v7226_v23  ;;  %v7420_v22 = vld [vmem:[%s11344_s3 + $0x608] sm:$0xff] }
0x108d   : > { %9040 = vmatprep.subr.mxu1 %v7449_v24  ;;  %9075 = vmatprep.subr.mxu0 %v7481_v25  ;;  %v7452_v23 = vld [vmem:[%s11344_s3 + $0x708] sm:$0xff]  ;;  %v7435_v24 = vld [vmem:[%s11344_s3 + $0x680] sm:$0xff] }
0x108e   : > { %9041 = vmatpush3.msra.mxu1 %v7433_v29  ;;  %9076 = vmatpush3.msra.mxu0 %v7465_v30  ;;  %v7467_v25 = vld [vmem:[%s11344_s3 + $0x780] sm:$0xff] }
0x108f   : > { %9042 = vmatprep.subr.mxu1 %v7448_v32  ;;  %9077 = vmatprep.subr.mxu0 %v7480_v33  ;;  %v7419_v29 = vld [vmem:[%s11344_s3 + $0x600] sm:$0xff]  ;;  %v7223_v32 = vmax.f32 %v7136_v11, 0.0  ;;  %v7225_v33 = vmax.f32 %v7207_v12, 0.0 }
0x1090   : > { %9043 = vmatpush3.msra.mxu1 %v7432_v34  ;;  %9078 = vmatpush3.msra.mxu0 %v7464_v27  ;;  %v7451_v30 = vld [vmem:[%s11344_s3 + $0x700] sm:$0xff]  ;;  %s891_s3 = sand.u32 1, %s9677_s10  }
0x1091   : > { %9044 = vmatprep.subr.mxu1 %v7447_v39  ;;  %9079 = vmatprep.subr.mxu0 %v7479_v40  ;;  %v8370_v40 = vld [vmem:[%s11346_s2] ss:$0 sm:$0xff]  ;;  %s11347_s2 = sld [smem:[#allocation22_spill]] }
0x1092   : > { %9045 = vmatpush3.msra.mxu1 %v7431_v41  ;;  %9080 = vmatpush3.msra.mxu0 %v7463_v42  ;;  %v8084_v12 = vld [vmem:[%s9867_s27] sm:$0x1] }
0x1093   : > { %9046 = vmatprep.subr.mxu1 %v7446_v43  ;;  %9081 = vmatprep.subr.mxu0 %v7478_v20 }
0x1094   : > { %9047 = vmatpush3.msra.mxu1 %v7430_v44  ;;  %9082 = vmatpush3.msra.mxu0 %v7462_v45 }
0x1095   : > { %9048 = vmatprep.subr.mxu1 %v7445_v46  ;;  %9083 = vmatprep.subr.mxu0 %v7477_v47 }
0x1096   : > { %9049 = vmatpush3.msra.mxu1 %v7429_v21  ;;  %9084 = vmatpush3.msra.mxu0 %v7461_v16 }
0x1097   : > { %9050 = vmatprep.subr.mxu1 %v7444_v51  ;;  %9085 = vmatprep.subr.mxu0 %v7476_v48 }
0x1098   : > { %9051 = vmatpush3.msra.mxu1 %v7428_v52  ;;  %9086 = vmatpush3.msra.mxu0 %v7460_v15 }
0x1099   : > { %9052 = vmatprep.subr.mxu1 %v7443_v53  ;;  %9087 = vmatprep.subr.mxu0 %v7475_v55 }
0x109a   : > { %9053 = vmatpush3.msra.mxu1 %v7427_v56  ;;  %9088 = vmatpush3.msra.mxu0 %v7459_v58 }
0x109b   : > { %9054 = vmatprep.subr.mxu1 %v7442_v59  ;;  %9089 = vmatprep.subr.mxu0 %v7474_v60 }
0x109c   : > { %9055 = vmatpush3.msra.mxu1 %v7426_v54  ;;  %9090 = vmatpush3.msra.mxu0 %v7458_v61 }
0x109d   : > { %9056 = vmatprep.subr.mxu1 %v7441_v17  ;;  %9091 = vmatprep.subr.mxu0 %v7473_v18 }
0x109e   : > { %9057 = vmatpush3.msra.mxu1 %v7425_v62  ;;  %9092 = vmatpush3.msra.mxu0 %v7457_v63 }
0x109f   : > { %9058 = vmatprep.subr.mxu1 %v7440_v0  ;;  %9093 = vmatprep.subr.mxu0 %v7472_v2 }
0x10a0   : > { %9059 = vmatpush3.msra.mxu1 %v7424_v35  ;;  %9094 = vmatpush3.msra.mxu0 %v7456_v14 }
0x10a1   : > { %9060 = vmatprep.subr.mxu1 %v7439_v3  ;;  %9095 = vmatprep.subr.mxu0 %v7471_v4 }
0x10a2   : > { %9061 = vmatpush3.msra.mxu1 %v7423_v5  ;;  %9096 = vmatpush3.msra.mxu0 %v7455_v36 }
0x10a3   : > { %9062 = vmatprep.subr.mxu1 %v7438_v6  ;;  %9097 = vmatprep.subr.mxu0 %v7470_v7  ;;  %v8083_v6 = vld [vmem:[%s11329_s6 + $0x18] sm:$0xff]  ;;  %v8082_v7 = vld [vmem:[%s11329_s6 + $0x10] sm:$0xff] }
0x10a4   : > { %9063 = vmatpush3.msra.mxu1 %v7422_v13  ;;  %9098 = vmatpush3.msra.mxu0 %v7454_v28 }
0x10a5   : > { %9064 = vmatprep.subr.mxu1 %v7437_v49  ;;  %9099 = vmatprep.subr.mxu0 %v7469_v50  ;;  %v8371_v50 = vld [vmem:[%s11347_s2] ss:$0 sm:$0xff]  ;;  %s8162_s2 = scalar_lea.sflag [#allocation3], %s891_s3 }
0x10a6   : > { %9065 = vmatpush3.msra.mxu1 %v7421_v37  ;;  %9100 = vmatpush3.msra.mxu0 %v7453_v10  ;;  %v8372_v10 = vld [vmem:[%s11348_s12] ss:$0 sm:$0xff] }
0x10a7   : > { %9066 = vmatprep.subr.mxu1 %v7436_v38  ;;  %9101 = vmatprep.subr.mxu0 %v7468_v31 }
0x10a8   : > { %9067 = vmatpush3.msra.mxu1 %v7420_v22  ;;  %9102 = vmatpush3.msra.mxu0 %v7452_v23 }
0x10a9   : > { %9068 = vmatprep.subr.mxu1 %v7435_v24  ;;  %9103 = vmatprep.subr.mxu0 %v7467_v25 }
0x10aa   : > { %9069 = vmatpush3.msra.mxu1 %v7419_v29  ;;  %9104 = vmatpush3.msra.mxu0 %v7451_v30 }
0x10ab   : > { %7975 = vmatmul.mubr.f32.vlgmr.msra.gmra.mxu1 %v7223_v32  ;;  %8045 = vmatmul.mubr.f32.vlgmr.msra.gmra.mxu0 %v7225_v33 }
0x10ac   : > { %9504 = vmatprep.subr.mxu1 %v9716_v1  ;;  %9512 = vmatprep.mubr.msk.f32.mxu1 %vm9717_vm0, %v9716_v1 }
0x10ad   : > { %9505 = vmatpush3.msra.mxu1 %v8083_v6 }
0x10ae   : > { %9506 = vmatprep.subr.mxu1 %v9716_v1 }
0x10af   : > { %9507 = vmatpush3.msra.mxu1 %v8082_v7 }
0x10b0   : > { %9508 = vmatprep.subr.mxu1 %v9716_v1 }
0x10b1   : > { %9509 = vmatpush3.msra.mxu1 %v8081_v9 }
0x10b2   : > { %9510 = vmatprep.subr.mxu1 %v9716_v1 }
0x1106   : > { %v8860_v26 = vpop.f32.mrf.mxu1  ;;  %v8895_v34 = vpop.f32.mrf.mxu0 }
0x1108   : > { %v8861_v19 = vpop.f32.mrf.mxu1  ;;  %v8896_v41 = vpop.f32.mrf.mxu0 }
0x1109   : > { %v8862_v39 = vadd.f32 %v8861_v19, %v8860_v26  ;;  %v8897_v45 = vadd.f32 %v8896_v41, %v8895_v34 }
0x110b   : > { %v7557_v43 = vadd.f32 %v8862_v39, %v8370_v40 }
0x110d   : > { %v7627_v47 = vadd.f32 %v8897_v45, %v7557_v43 }
0x1127   : > { %v8930_v27 = vpop.f32.mrf.mxu1  ;;  %v8965_v20 = vpop.f32.mrf.mxu0 }
0x1129   : > { %v8931_v42 = vpop.f32.mrf.mxu1  ;;  %v8966_v21 = vpop.f32.mrf.mxu0 }
0x112a   : > { %v8932_v46 = vadd.f32 %v8931_v42, %v8930_v27  ;;  %v8967_v52 = vadd.f32 %v8966_v21, %v8965_v20 }
0x112c   : > { %v7697_v51 = vadd.f32 %v8932_v46, %v7627_v47 }
0x112e   : > { %v7767_v53 = vadd.f32 %v8967_v52, %v7697_v51 }
0x1149   : > { %v9000_v44 = vpop.f32.mrf.mxu1  ;;  %v9035_v48 = vpop.f32.mrf.mxu0 }
0x114b   : > { %v9001_v16 = vpop.f32.mrf.mxu1  ;;  %v9036_v55 = vpop.f32.mrf.mxu0 }
0x114c   : > { %v9002_v15 = vadd.f32 %v9001_v16, %v9000_v44  ;;  %v9037_v60 = vadd.f32 %v9036_v55, %v9035_v48 }
0x114e   : > { %v7837_v56 = vadd.f32 %v9002_v15, %v7767_v53 }
0x1150   : > { %v7907_v17 = vadd.f32 %v9037_v60, %v7837_v56 }
0x116b   : > { %v9070_v58 = vpop.f32.mrf.mxu1  ;;  %v9105_v59 = vpop.f32.mrf.mxu0 }
0x116d   : > { %v9071_v54 = vpop.f32.mrf.mxu1  ;;  %v9106_v61 = vpop.f32.mrf.mxu0 }
0x116e   : > { %v9072_v18 = vadd.f32 %v9071_v54, %v9070_v58  ;;  %v9107_v63 = vadd.f32 %v9106_v61, %v9105_v59 }
0x1170   : > { %v7977_v62 = vadd.f32 %v9072_v18, %v7907_v17 }
0x1172   : > { %v8047_v0 = vadd.f32 %v9107_v63, %v7977_v62 }
0x1174   : > { %v8050_v2 = vadd.f32 %v8047_v0, %v10862_v57  ;;  %v8080_v57 = vld [vmem:[%s11329_s6] sm:$0xff]  ;;  %s892_s6 = scalar_lea.vmem [#allocation2], %s891_s3 }
0x1175   : > { %9511 = vmatpush3.msra.mxu1 %v8080_v57  ;;  %s8174_s8 = sshll.u32 %s892_s6, 4  ;;  %s8175_s8 = int_to_ptr.vmem [resolvable:$true] %s8174_s8 }
0x1176   : > { %v8053_v35 = vsel %vm1113_vm2, %v8050_v2, 0.0  ;;  %s9625_s12 = scalar_lea.vmem %s8175_s8, 16  ;;  %p9632_p0 = scmp.lt.s32.totalorder %s8175_s8, %s9630_s14 }
0x1177   : > { %8054 = vadd.xlane.f32.xlu0 %v8053_v35  ;;  %p9626_p11 = scmp.ne.s32.totalorder %s8175_s8, %s9625_s12  ;;  %p9633_p1 = scmp.lt.s32.totalorder %s9631_s0, %s9625_s12 }
0x1179   : > { %p9627_p12 = pnand %p9626_p11, %p9912_p5  ;;  %p9634_p2 = por %p9633_p1, %p9632_p0 }
0x117b   : > { %p9628_p13 = pneg %p9627_p12 }
0x117d   : > { %p9635_p3 = pnand %p9634_p2, %p9628_p13 }
0x1200   : > { %v8055_v14 = vpop.xlane.xlu0 %8054 }
0x1201   : > { %v8056_v3 = vmul.f32 0.03125, %v8055_v14 }
0x1203   : > { %v8057_v4 = vsub.f32 %v8050_v2, %v8056_v3 }
0x1205   : > { %v8058_v5 = vmul.f32 %v8057_v4, %v8057_v4 }
0x1207   : > { %v8059_v36 = vsel %vm1113_vm2, %v8058_v5, 0.0 }
0x1208   : > { %8060 = vadd.xlane.f32.xlu1 %v8059_v36 }
0x1291   : > { %v8061_v8 = vpop.xlane.xlu1 %8060 }
0x1292   : > { %v8062_v13 = vmul.f32 0.03125, %v8061_v8 }
0x1294   : > { %v8063_v28 = vadd.f32 1e-05, %v8062_v13 }
0x1296   : > { %9623 = vrsqrt.f32 %v8063_v28 }
0x12a3   : > { %v9624_v49 = vpop.eup %9623 }
0x12a4   : > { %v8065_v37 = vmul.f32 %v9624_v49, %v8057_v4 }
0x12a6   : > { %v8072_v38 = vmul.f32 %v8371_v50, %v8065_v37 }
0x12a8   : > { %v8079_v31 = vadd.f32 %v8372_v10, %v8072_v38 }
0x12aa   : > { %v8086_v11 = vrot.slane %v8079_v31, 7 }
0x12ac   : > { %9513 = vmatmul.mubr.msk.f32.vlgmr.msra.gmra.mxu1 %vm1113_vm2, %v8086_v11 }
0x136c   : > { %v8155_v1 = vpop.f32.mrf.mxu1 }
0x136d   : > { %v8156_v22 = vadd.f32 %v8155_v1, %v8084_v12 }
0x136e   : > { %v9514_v23 = vpop.f32.mrf.mxu1 }
0x136f   : > { %8160 = vst.msk [vmem:[%s892_s6] sm:$0x1] %vm8159_vm4, %v8156_v22 }
0x1370   : > { %9638 = shalt.err (!%p9635_p3)
}
0x1371   : > { %s9639_s5 = scalar_lea.hbm %s11265_s9, 16  ;;  %s9643_s6 = scalar_lea.hbm %s9872_s4, 32 }
0x1372   : > { %p9640_p4 = scmp.ne.s32.totalorder %s11265_s9, %s9639_s5  ;;  %p9644_p9 = scmp.lt.s32.totalorder %s11265_s9, %s9872_s4 }
0x1373   : > { %p9645_p10 = scmp.lt.s32.totalorder %s9643_s6, %s9639_s5 }
0x1374   : > { %p9641_p7 = pnand %p9640_p4, %p9912_p5 }
0x1375   : > { %p9646_p11 = por %p9645_p10, %p9644_p9 }
0x1376   : > { %p9642_p8 = pneg %p9641_p7 }
0x1378   : > { %p9647_p12 = pnand %p9646_p11, %p9642_p8 }
0x137a   : > { %9650 = shalt.err (!%p9647_p12)
}
0x137b   : > { %9515 = dma.vmem_to_hbm [thread:$0]  (%p9912_p5), %s8175_s8, 16, %s11265_s9, %s8162_s2  }
0x137c PF: > { %p9521_p13 = scmp.ge.s32.totalorder %s9685_s15, 2  ;;  %s8186_s13 = sand.u32 1, %s9673_s7  }
0x137d   : > { %s8187_s14 = scalar_lea.sflag [#allocation3], %s8186_s13 }
0x137e   : > { %p9518_p0 = pnand %p9521_p13, %p9916_p6 }
0x1380   : > { %p9519_p1 = pneg %p9518_p0 }
0x1382   : > { %9668 = dma.done.wait (%p9519_p1), %s8187_s14, 16  }
0x1383   : > { %9670 = vsyncadd (%p9519_p1), %s8187_s14, 4294967280  ;;  %p69_p2 = scmp.ge.s32.totalorder %s9899_s18, 4   ;;  %s11349_s7 = smov %s9677_s10 }
0x1384   : > { %s11350_s10 = smov %s9681_s11  ;;  %s11351_s11 = smov %s9910_s26 }
0x1385   : > { %s11352_s15 = smov %s9899_s18  ;;  %71 = sbr.rel (!%p69_p2) target bundleno = 57 (0x39), region = 200 }
0x138a   :  { %8191 = vsyncpa [#allocation3], 1 }
0x138b   :  { %8193 = vsyncpa [#allocation3 + $0x1], 1 }

</bundles_post_ra>
